<compile_context>
chip_gen: v7x
topology: tpu7x:2x2x1
jax: 0.10.0
libtpu: 0.0.40
codegen_flags: <defaults>
</compile_context>

<pallas_src>
import functools
import math

import jax
import jax.numpy as jnp
from jax import lax
from jax.experimental import pallas as pl
from jax.experimental.pallas import tpu as pltpu


LANE = 128      # TPU lane width   -> padded hidden / output feature size
SUBLANE = 8     # TPU sublane rows -> padded batch size


def _round_up(x, m):
    return ((x + m - 1) // m) * m


def _pad_to(a, shape):
    pads = [(0, t - s) for s, t in zip(a.shape, shape)]
    return jnp.pad(a, pads)


# ---------------------------------------------------------------------------
# Fused kernel: encoder -> n_layers x GRU (wavefront) -> decoder, all in VMEM.
# ---------------------------------------------------------------------------
def _make_fused_kernel(n_layers, S, Bp, Hp, Op):
    n_in = 4 + 4 * n_layers + 2   # x2d, enc_w, enc_b, h0, per-layer(4), dec_w, dec_b

    def kernel(*refs):
        x_ref, enc_w_ref, enc_b_ref, h0_ref = refs[:4]
        layer_refs = refs[4:4 + 4 * n_layers]
        dec_w_ref, dec_b_ref = refs[4 + 4 * n_layers:n_in]
        out_ref, hid_ref = refs[n_in:n_in + 2]
        hist, gi0_all = refs[n_in + 2:]

        w_ih_refs = [layer_refs[4 * l + 0] for l in range(n_layers)]  # (Hp,3Hp) bf16
        w_hh_refs = [layer_refs[4 * l + 1] for l in range(n_layers)]  # (Hp,3Hp) bf16
        b_gi_refs = [layer_refs[4 * l + 2] for l in range(n_layers)]  # (1,3Hp) f32
        b_hn_refs = [layer_refs[4 * l + 3] for l in range(n_layers)]  # (1,Hp)  f32

        # ---- encoder GEMM + layer-0 hoisted input-to-hidden GEMM --------------
        # Both are single big MXU matmuls over all S*Bp rows, off the recurrent
        # critical path.  bf16 operands, f32 accumulation.
        enc = (
            jnp.dot(x_ref[...], enc_w_ref[...],
                    preferred_element_type=jnp.float32)
            + enc_b_ref[...]
        )
        gi0_all[...] = (
            jnp.dot(enc.astype(jnp.bfloat16), w_ih_refs[0][...],
                    preferred_element_type=jnp.float32)
            + b_gi_refs[0][...]                                 # r/z biases folded
        )

        # ---- hoisted per-layer constants (bound once, reused for all steps) ---
        # W_hh read once per layer, pre-sliced into [r|z] and [n] column blocks.
        w_hh_rz = [w_hh_refs[l][:, :2 * Hp] for l in range(n_layers)]
        w_hh_n = [w_hh_refs[l][:, 2 * Hp:] for l in range(n_layers)]
        # Bias broadcasts hoisted out of the loop (no per-step broadcast_in_dim).
        b_hn_b = [jnp.broadcast_to(b_hn_refs[l][...], (Bp, Hp))
                  for l in range(n_layers)]
        b_gi_b = [jnp.broadcast_to(b_gi_refs[l][...], (Bp, 3 * Hp))
                  for l in range(1, n_layers)]   # layer-0 bias already folded above

        h0 = h0_ref[...]                          # (Bp, Hp) f32, same for all layers
        h = [h0] * n_layers                       # per-layer hidden carry (f32)
        y = [None] * n_layers                     # per-layer most recent output

        # ---- wavefront over (layer, timestep) ----------------------------------
        # At wavefront step k, layer l processes timestep t = k - l; layers are
        # visited in decreasing l so y[l-1] still holds the previous wavefront
        # step's output when layer l consumes it.  Serial chain = S + L - 1.
        for k in range(S + n_layers - 1):
            for l in reversed(range(n_layers)):
                t = k - l
                if t < 0 or t >= S:
                    continue
                row = t * Bp                                   # sublane-tile aligned

                if l == 0:
                    gi = gi0_all[row:row + Bp, :]              # (Bp, 3Hp) f32
                else:
                    gi = (
                        jnp.dot(y[l - 1].astype(jnp.bfloat16), w_ih_refs[l][...],
                                preferred_element_type=jnp.float32)
                        + b_gi_b[l - 1]
                    )

                h_prev = h[l]                                  # f32 carry
                hb = h_prev.astype(jnp.bfloat16)
                # Split rz / n so the r/z sigmoid can start while the n columns
                # are still draining from the MXU result FIFO.
                gh_rz = jnp.dot(hb, w_hh_rz[l],
                                preferred_element_type=jnp.float32)
                gh_n = jnp.dot(hb, w_hh_n[l],
                               preferred_element_type=jnp.float32)

                # Gate math stays f32 (v5e has no bf16 VPU/EUP; keeps accuracy).
                rz = jax.nn.sigmoid(gi[:, :2 * Hp] + gh_rz)
                r = rz[:, :Hp]
                z = rz[:, Hp:]
                n = jnp.tanh(gi[:, 2 * Hp:] + r * (gh_n + b_hn_b[l]))
                h_new = (1.0 - z) * n + z * h_prev

                h[l] = h_new
                y[l] = h_new
                if l == n_layers - 1:
                    hist[row:row + Bp, :] = h_new              # lane-dense store
                if t == S - 1:
                    hid_ref[l] = h_new                         # final hidden, layer l

        # ---- decoder: one big MXU matmul ---------------------------------------
        out_ref[...] = (
            jnp.dot(hist[...].astype(jnp.bfloat16), dec_w_ref[...],
                    preferred_element_type=jnp.float32)
            + dec_b_ref[...]
        )

    return kernel


def _full_spec(shape):
    nd = len(shape)
    return pl.BlockSpec(tuple(shape), lambda i, _nd=nd: (0,) * _nd)


def _char_rnn_fused_call(inputs, *, n_layers, S, Bp, Hp, Op):
    kernel = _make_fused_kernel(n_layers, S, Bp, Hp, Op)
    return pl.pallas_call(
        kernel,
        out_shape=(
            jax.ShapeDtypeStruct((S * Bp, Op), jnp.float32),
            jax.ShapeDtypeStruct((n_layers, Bp, Hp), jnp.float32),
        ),
        grid=(1,),
        in_specs=[_full_spec(a.shape) for a in inputs],
        out_specs=(
            pl.BlockSpec((S * Bp, Op), lambda i: (0, 0)),
            pl.BlockSpec((n_layers, Bp, Hp), lambda i: (0, 0, 0)),
        ),
        scratch_shapes=[
            pltpu.VMEM((S * Bp, Hp), jnp.float32),        # last-layer output history
            pltpu.VMEM((S * Bp, 3 * Hp), jnp.float32),    # layer-0 hoisted gi slab
        ],
        compiler_params=pltpu.CompilerParams(
            dimension_semantics=("arbitrary",),
            vmem_limit_bytes=32 * 1024 * 1024),
    )(*inputs)


# ---------------------------------------------------------------------------
# Parameter init (deterministic, PyTorch-like uniform(-1/sqrt(fan_in), ...))
# Weights are stored as (in, out); PyTorch gate order [r | z | n].
# ---------------------------------------------------------------------------
def init_params(key, n_inputs, n_hidden, n_output, n_layers):
    def uni(k, shape, fan_in):
        bound = 1.0 / math.sqrt(fan_in)
        return jax.random.uniform(k, shape, jnp.float32, -bound, bound)

    keys = iter(jax.random.split(key, 8 + 4 * n_layers))
    params = {
        "enc_w": uni(next(keys), (n_inputs, n_hidden), n_inputs),
        "enc_b": uni(next(keys), (1, n_hidden), n_inputs),
        "dec_w": uni(next(keys), (n_hidden, n_output), n_hidden),
        "dec_b": uni(next(keys), (1, n_output), n_hidden),
        "hi_w": uni(next(keys), (1, n_hidden), 1),
        "hi_b": uni(next(keys), (1, n_hidden), 1),
        "gru": [],
    }
    for _ in range(n_layers):
        in_dim = n_hidden  # GRU(n_hidden, n_hidden): all layers take H
        w_ih = uni(next(keys), (in_dim, 3 * n_hidden), n_hidden)
        w_hh = uni(next(keys), (n_hidden, 3 * n_hidden), n_hidden)
        b_ih = uni(next(keys), (1, 3 * n_hidden), n_hidden)
        b_hh = uni(next(keys), (1, 3 * n_hidden), n_hidden)
        params["gru"].append((w_ih, w_hh, b_ih, b_hh))
    return params


# ---------------------------------------------------------------------------
# CharRNN forward (jitted wrapper: layout prep + one fused pallas_call)
# ---------------------------------------------------------------------------
@jax.jit
def char_rnn_forward(x, params):
    B, S, I = x.shape
    H = params["enc_w"].shape[1]
    O = params["dec_w"].shape[1]
    n_layers = len(params["gru"])

    Hp = _round_up(H, LANE)
    Op = _round_up(O, LANE)
    Bp = _round_up(B, SUBLANE)

    # seq-major, batch padded to a full sublane tile, flattened to 2D rows.
    x_sb = jnp.transpose(x, (1, 0, 2))                       # permute(1, 0, 2)
    x_sb = jnp.pad(x_sb, ((0, 0), (0, Bp - B), (0, 0)))
    x2d = x_sb.reshape(S * Bp, I).astype(jnp.bfloat16)       # bf16 MXU operand

    # Pad weights so every gate occupies a full 128-lane block (exact math:
    # padded hidden columns remain identically zero through the recurrence).
    # All matmul operands are bf16; biases and accumulations stay f32.
    enc_w = _pad_to(params["enc_w"], (I, Hp)).astype(jnp.bfloat16)
    enc_b = _pad_to(params["enc_b"], (1, Hp))
    dec_w = _pad_to(params["dec_w"], (Hp, Op)).astype(jnp.bfloat16)
    dec_b = _pad_to(params["dec_b"], (1, Op))

    # hidden_init(ones) == W[:, 0] * 1 + b : same vector for every layer/batch.
    h0_vec = _pad_to((params["hi_w"][0] + params["hi_b"][0])[None, :], (1, Hp))
    h0 = jnp.broadcast_to(h0_vec, (Bp, Hp))

    layer_flat = []
    for (w_ih, w_hh, b_ih, b_hh) in params["gru"]:
        wih_g = [_pad_to(w_ih[:, g * H:(g + 1) * H], (Hp, Hp)) for g in range(3)]
        whh_g = [_pad_to(w_hh[:, g * H:(g + 1) * H], (Hp, Hp)) for g in range(3)]
        bih_g = [_pad_to(b_ih[:, g * H:(g + 1) * H], (1, Hp)) for g in range(3)]
        bhh_g = [_pad_to(b_hh[:, g * H:(g + 1) * H], (1, Hp)) for g in range(3)]
        w_ih_p = jnp.concatenate(wih_g, axis=1).astype(jnp.bfloat16)  # (Hp,3Hp) [r|z|n]
        w_hh_p = jnp.concatenate(whh_g, axis=1).astype(jnp.bfloat16)  # (Hp,3Hp) [r|z|n]
        # r/z biases fully folded into the gi GEMM; n keeps b_hh_n apart
        b_gi = jnp.concatenate(
            [bih_g[0] + bhh_g[0], bih_g[1] + bhh_g[1], bih_g[2]], axis=1)
        b_hn = bhh_g[2]
        layer_flat += [w_ih_p, w_hh_p, b_gi, b_hn]

    inputs = [x2d, enc_w, enc_b, h0] + layer_flat + [dec_w, dec_b]
    out2d, hid = _char_rnn_fused_call(
        inputs, n_layers=n_layers, S=S, Bp=Bp, Hp=Hp, Op=Op)

    output = out2d.reshape(S, Bp, Op)[:, :B, :O]             # (S, B, n_output)
    hidden = hid[:, :B, :H]                                  # (n_layers, B, H)
    return output, hidden


# ---------------------------------------------------------------------------
# Pure-JAX reference (unpadded, f32, straight PyTorch-GRU math) for sanity.
# ---------------------------------------------------------------------------
def _reference_forward(x, params):
    B, S, I = x.shape
    H = params["enc_w"].shape[1]
    x_sb = jnp.transpose(x, (1, 0, 2))
    enc = (jnp.dot(x_sb.reshape(S * B, I), params["enc_w"], precision="highest")
           + params["enc_b"]).reshape(S, B, H)
    h0 = jnp.broadcast_to(params["hi_w"][0] + params["hi_b"][0], (B, H))
    layer_in, finals = enc, []
    for (w_ih, w_hh, b_ih, b_hh) in params["gru"]:
        h, outs = h0, []
        for t in range(S):
            gi = jnp.dot(layer_in[t], w_ih, precision="highest") + b_ih
            gh = jnp.dot(h, w_hh, precision="highest") + b_hh
            r = jax.nn.sigmoid(gi[:, :H] + gh[:, :H])
            z = jax.nn.sigmoid(gi[:, H:2 * H] + gh[:, H:2 * H])
            n = jnp.tanh(gi[:, 2 * H:] + r * gh[:, 2 * H:])
            h = (1.0 - z) * n + z * h
            outs.append(h)
        layer_in = jnp.stack(outs, axis=0)
        finals.append(h)
    hidden = jnp.stack(finals, axis=0)
    out = (jnp.dot(layer_in.reshape(S * B, H), params["dec_w"], precision="highest")
           + params["dec_b"]).reshape(S, B, -1)
    return out, hidden


if __name__ == "__main__":
    # small shapes: batch=2, seq=8, n_inputs=16, n_hidden=32, n_output=16, 2 layers
    batch, seq = 2, 8
    n_inputs, n_hidden, n_output, n_layers = 16, 32, 16, 2

    key = jax.random.PRNGKey(0)
    k_x, k_p = jax.random.split(key)
    x = jax.random.normal(k_x, (batch, seq, n_inputs), jnp.float32)
    params = init_params(k_p, n_inputs, n_hidden, n_output, n_layers)

    output, hidden = char_rnn_forward(x, params)
    jax.block_until_ready((output, hidden))

    assert output.shape == (seq, batch, n_output)
    assert hidden.shape == (n_layers, batch, n_hidden)

    # Tolerance accounts for bf16 MXU operands (f32 accumulation / f32 carry)
    # vs. the all-f32 'highest'-precision reference, compounded over S steps.
    ref_out, ref_hid = _reference_forward(x, params)
    assert jnp.allclose(output, ref_out, atol=3e-2, rtol=3e-2)
    assert jnp.allclose(hidden, ref_hid, atol=3e-2, rtol=3e-2)

    print("KERNEL_OK")
</pallas_src>

<mosaic_0001>
module attributes {stable_mosaic.version = 11 : i64} {
  func.func @kernel(%arg0: i32, %arg1: memref<64x16xbf16, #tpu.memory_space<vmem>>, %arg2: memref<16x128xbf16, #tpu.memory_space<vmem>>, %arg3: memref<1x128xf32, #tpu.memory_space<vmem>>, %arg4: memref<8x128xf32, #tpu.memory_space<vmem>>, %arg5: memref<128x384xbf16, #tpu.memory_space<vmem>>, %arg6: memref<128x384xbf16, #tpu.memory_space<vmem>>, %arg7: memref<1x384xf32, #tpu.memory_space<vmem>>, %arg8: memref<1x128xf32, #tpu.memory_space<vmem>>, %arg9: memref<128x384xbf16, #tpu.memory_space<vmem>>, %arg10: memref<128x384xbf16, #tpu.memory_space<vmem>>, %arg11: memref<1x384xf32, #tpu.memory_space<vmem>>, %arg12: memref<1x128xf32, #tpu.memory_space<vmem>>, %arg13: memref<128x128xbf16, #tpu.memory_space<vmem>>, %arg14: memref<1x128xf32, #tpu.memory_space<vmem>>, %arg15: memref<64x128xf32, #tpu.memory_space<vmem>>, %arg16: memref<2x8x128xf32, #tpu.memory_space<vmem>>, %arg17: memref<64x128xf32, #tpu.memory_space<vmem>>, %arg18: memref<64x384xf32, #tpu.memory_space<vmem>>) attributes {dimension_semantics = [#tpu.dimension_semantics<arbitrary>], iteration_bounds = array<i64: 1>, scalar_prefetch = 0 : i64, scratch_operands = 2 : i64, tpu.core_type = #tpu.core_type<tc>, window_params = [{pipeline_mode = #tpu.pipeline_mode<synchronous>, transform_indices = @transform_0, window_bounds = array<i64: 64, 16>}, {pipeline_mode = #tpu.pipeline_mode<synchronous>, transform_indices = @transform_1, window_bounds = array<i64: 16, 128>}, {pipeline_mode = #tpu.pipeline_mode<synchronous>, transform_indices = @transform_2, window_bounds = array<i64: 1, 128>}, {pipeline_mode = #tpu.pipeline_mode<synchronous>, transform_indices = @transform_3, window_bounds = array<i64: 8, 128>}, {pipeline_mode = #tpu.pipeline_mode<synchronous>, transform_indices = @transform_4, window_bounds = array<i64: 128, 384>}, {pipeline_mode = #tpu.pipeline_mode<synchronous>, transform_indices = @transform_5, window_bounds = array<i64: 128, 384>}, {pipeline_mode = #tpu.pipeline_mode<synchronous>, transform_indices = @transform_6, window_bounds = array<i64: 1, 384>}, {pipeline_mode = #tpu.pipeline_mode<synchronous>, transform_indices = @transform_7, window_bounds = array<i64: 1, 128>}, {pipeline_mode = #tpu.pipeline_mode<synchronous>, transform_indices = @transform_8, window_bounds = array<i64: 128, 384>}, {pipeline_mode = #tpu.pipeline_mode<synchronous>, transform_indices = @transform_9, window_bounds = array<i64: 128, 384>}, {pipeline_mode = #tpu.pipeline_mode<synchronous>, transform_indices = @transform_10, window_bounds = array<i64: 1, 384>}, {pipeline_mode = #tpu.pipeline_mode<synchronous>, transform_indices = @transform_11, window_bounds = array<i64: 1, 128>}, {pipeline_mode = #tpu.pipeline_mode<synchronous>, transform_indices = @transform_12, window_bounds = array<i64: 128, 128>}, {pipeline_mode = #tpu.pipeline_mode<synchronous>, transform_indices = @transform_13, window_bounds = array<i64: 1, 128>}, {pipeline_mode = #tpu.pipeline_mode<synchronous>, transform_indices = @transform_14, window_bounds = array<i64: 64, 128>}, {pipeline_mode = #tpu.pipeline_mode<synchronous>, transform_indices = @transform_15, window_bounds = array<i64: 2, 8, 128>}]} {
    %c0 = arith.constant 0 : index
    %c0_0 = arith.constant 0 : index
    %0 = vector.load %arg1[%c0, %c0_0] : memref<64x16xbf16, #tpu.memory_space<vmem>>, vector<64x16xbf16>
    %c0_1 = arith.constant 0 : index
    %c0_2 = arith.constant 0 : index
    %1 = vector.load %arg2[%c0_1, %c0_2] : memref<16x128xbf16, #tpu.memory_space<vmem>>, vector<16x128xbf16>
    %cst = arith.constant dense<0.000000e+00> : vector<64x128xf32>
    %2 = tpu.matmul %0, %1, %cst {dimension_numbers = #tpu.dot_dimension_numbers<[1], [0], [0], [1], [0, 0, 1, 1], [], []>} : vector<64x16xbf16>, vector<16x128xbf16>, vector<64x128xf32> -> vector<64x128xf32>
    %c0_3 = arith.constant 0 : index
    %c0_4 = arith.constant 0 : index
    %3 = vector.load %arg3[%c0_3, %c0_4] : memref<1x128xf32, #tpu.memory_space<vmem>>, vector<1x128xf32>
    %4 = vector.broadcast %3 : vector<1x128xf32> to vector<64x128xf32>
    %5 = arith.addf %2, %4 : vector<64x128xf32>
    %6 = arith.truncf %5 : vector<64x128xf32> to vector<64x128xbf16>
    %c0_5 = arith.constant 0 : index
    %c0_6 = arith.constant 0 : index
    %7 = vector.load %arg5[%c0_5, %c0_6] : memref<128x384xbf16, #tpu.memory_space<vmem>>, vector<128x384xbf16>
    %cst_7 = arith.constant dense<0.000000e+00> : vector<64x384xf32>
    %8 = tpu.matmul %6, %7, %cst_7 {dimension_numbers = #tpu.dot_dimension_numbers<[1], [0], [0], [1], [0, 0, 1, 1], [], []>} : vector<64x128xbf16>, vector<128x384xbf16>, vector<64x384xf32> -> vector<64x384xf32>
    %c0_8 = arith.constant 0 : index
    %c0_9 = arith.constant 0 : index
    %9 = vector.load %arg7[%c0_8, %c0_9] : memref<1x384xf32, #tpu.memory_space<vmem>>, vector<1x384xf32>
    %10 = vector.broadcast %9 : vector<1x384xf32> to vector<64x384xf32>
    %11 = arith.addf %8, %10 : vector<64x384xf32>
    %c0_10 = arith.constant 0 : index
    %c0_11 = arith.constant 0 : index
    %12 = vector.load %arg18[%c0_10, %c0_11] : memref<64x384xf32, #tpu.memory_space<vmem>>, vector<64x384xf32>
    tpu.vector_store %arg18[%c0_10, %c0_11], %11 {strides = array<i32>} : memref<64x384xf32, #tpu.memory_space<vmem>>, vector<64x384xf32>,
    %c0_12 = arith.constant 0 : index
    %c0_13 = arith.constant 0 : index
    %13 = vector.load %arg6[%c0_12, %c0_13] : memref<128x384xbf16, #tpu.memory_space<vmem>>, vector<128x256xbf16>
    %c0_14 = arith.constant 0 : index
    %c0_15 = arith.constant 0 : index
    %14 = vector.load %arg10[%c0_14, %c0_15] : memref<128x384xbf16, #tpu.memory_space<vmem>>, vector<128x256xbf16>
    %c0_16 = arith.constant 0 : index
    %c256 = arith.constant 256 : index
    %15 = vector.load %arg6[%c0_16, %c256] : memref<128x384xbf16, #tpu.memory_space<vmem>>, vector<128x128xbf16>
    %c0_17 = arith.constant 0 : index
    %c256_18 = arith.constant 256 : index
    %16 = vector.load %arg10[%c0_17, %c256_18] : memref<128x384xbf16, #tpu.memory_space<vmem>>, vector<128x128xbf16>
    %c0_19 = arith.constant 0 : index
    %c0_20 = arith.constant 0 : index
    %17 = vector.load %arg8[%c0_19, %c0_20] : memref<1x128xf32, #tpu.memory_space<vmem>>, vector<1x128xf32>
    %18 = vector.shape_cast %17 : vector<1x128xf32> to vector<1x128xf32>
    %19 = vector.broadcast %18 : vector<1x128xf32> to vector<8x128xf32>
    %c0_21 = arith.constant 0 : index
    %c0_22 = arith.constant 0 : index
    %20 = vector.load %arg12[%c0_21, %c0_22] : memref<1x128xf32, #tpu.memory_space<vmem>>, vector<1x128xf32>
    %21 = vector.shape_cast %20 : vector<1x128xf32> to vector<1x128xf32>
    %22 = vector.broadcast %21 : vector<1x128xf32> to vector<8x128xf32>
    %c0_23 = arith.constant 0 : index
    %c0_24 = arith.constant 0 : index
    %23 = vector.load %arg11[%c0_23, %c0_24] : memref<1x384xf32, #tpu.memory_space<vmem>>, vector<1x384xf32>
    %24 = vector.shape_cast %23 : vector<1x384xf32> to vector<1x384xf32>
    %25 = vector.broadcast %24 : vector<1x384xf32> to vector<8x384xf32>
    %c0_25 = arith.constant 0 : index
    %c0_26 = arith.constant 0 : index
    %26 = vector.load %arg4[%c0_25, %c0_26] : memref<8x128xf32, #tpu.memory_space<vmem>>, vector<8x128xf32>
    %c0_27 = arith.constant 0 : index
    %c0_28 = arith.constant 0 : index
    %27 = vector.load %arg18[%c0_27, %c0_28] : memref<64x384xf32, #tpu.memory_space<vmem>>, vector<8x384xf32>
    %28 = arith.truncf %26 : vector<8x128xf32> to vector<8x128xbf16>
    %cst_29 = arith.constant dense<0.000000e+00> : vector<8x256xf32>
    %29 = tpu.matmul %28, %13, %cst_29 {dimension_numbers = #tpu.dot_dimension_numbers<[1], [0], [0], [1], [0, 0, 1, 1], [], []>} : vector<8x128xbf16>, vector<128x256xbf16>, vector<8x256xf32> -> vector<8x256xf32>
    %cst_30 = arith.constant dense<0.000000e+00> : vector<8x128xf32>
    %30 = tpu.matmul %28, %15, %cst_30 {dimension_numbers = #tpu.dot_dimension_numbers<[1], [0], [0], [1], [0, 0, 1, 1], [], []>} : vector<8x128xbf16>, vector<128x128xbf16>, vector<8x128xf32> -> vector<8x128xf32>
    %31 = vector.extract_strided_slice %27 {offsets = [0, 0], sizes = [8, 256], strides = [1, 1]} : vector<8x384xf32> to vector<8x256xf32>
    %32 = arith.addf %31, %29 : vector<8x256xf32>
    %33 = arith.negf %32 : vector<8x256xf32>
    %34 = math.exp %33 : vector<8x256xf32>
    %cst_31 = arith.constant 1.000000e+00 : f32
    %35 = vector.broadcast %cst_31 : f32 to vector<8x256xf32>
    %36 = arith.addf %35, %34 : vector<8x256xf32>
    %37 = arith.divf %35, %36 : vector<8x256xf32>
    %38 = vector.extract_strided_slice %37 {offsets = [0, 0], sizes = [8, 128], strides = [1, 1]} : vector<8x256xf32> to vector<8x128xf32>
    %39 = vector.extract_strided_slice %37 {offsets = [0, 128], sizes = [8, 128], strides = [1, 1]} : vector<8x256xf32> to vector<8x128xf32>
    %40 = vector.extract_strided_slice %27 {offsets = [0, 256], sizes = [8, 128], strides = [1, 1]} : vector<8x384xf32> to vector<8x128xf32>
    %41 = arith.addf %30, %19 : vector<8x128xf32>
    %42 = arith.mulf %38, %41 : vector<8x128xf32>
    %43 = arith.addf %40, %42 : vector<8x128xf32>
    %44 = math.tanh %43 : vector<8x128xf32>
    %cst_32 = arith.constant 1.000000e+00 : f32
    %45 = vector.broadcast %cst_32 : f32 to vector<8x128xf32>
    %46 = arith.subf %45, %39 : vector<8x128xf32>
    %47 = arith.mulf %46, %44 : vector<8x128xf32>
    %48 = arith.mulf %39, %26 : vector<8x128xf32>
    %49 = arith.addf %47, %48 : vector<8x128xf32>
    %50 = arith.truncf %49 : vector<8x128xf32> to vector<8x128xbf16>
    %c0_33 = arith.constant 0 : index
    %c0_34 = arith.constant 0 : index
    %51 = vector.load %arg9[%c0_33, %c0_34] : memref<128x384xbf16, #tpu.memory_space<vmem>>, vector<128x384xbf16>
    %cst_35 = arith.constant dense<0.000000e+00> : vector<8x384xf32>
    %52 = tpu.matmul %50, %51, %cst_35 {dimension_numbers = #tpu.dot_dimension_numbers<[1], [0], [0], [1], [0, 0, 1, 1], [], []>} : vector<8x128xbf16>, vector<128x384xbf16>, vector<8x384xf32> -> vector<8x384xf32>
    %53 = arith.addf %52, %25 : vector<8x384xf32>
    %54 = arith.truncf %26 : vector<8x128xf32> to vector<8x128xbf16>
    %cst_36 = arith.constant dense<0.000000e+00> : vector<8x256xf32>
    %55 = tpu.matmul %54, %14, %cst_36 {dimension_numbers = #tpu.dot_dimension_numbers<[1], [0], [0], [1], [0, 0, 1, 1], [], []>} : vector<8x128xbf16>, vector<128x256xbf16>, vector<8x256xf32> -> vector<8x256xf32>
    %cst_37 = arith.constant dense<0.000000e+00> : vector<8x128xf32>
    %56 = tpu.matmul %54, %16, %cst_37 {dimension_numbers = #tpu.dot_dimension_numbers<[1], [0], [0], [1], [0, 0, 1, 1], [], []>} : vector<8x128xbf16>, vector<128x128xbf16>, vector<8x128xf32> -> vector<8x128xf32>
    %57 = vector.extract_strided_slice %53 {offsets = [0, 0], sizes = [8, 256], strides = [1, 1]} : vector<8x384xf32> to vector<8x256xf32>
    %58 = arith.addf %57, %55 : vector<8x256xf32>
    %59 = arith.negf %58 : vector<8x256xf32>
    %60 = math.exp %59 : vector<8x256xf32>
    %cst_38 = arith.constant 1.000000e+00 : f32
    %61 = vector.broadcast %cst_38 : f32 to vector<8x256xf32>
    %62 = arith.addf %61, %60 : vector<8x256xf32>
    %63 = arith.divf %61, %62 : vector<8x256xf32>
    %64 = vector.extract_strided_slice %63 {offsets = [0, 0], sizes = [8, 128], strides = [1, 1]} : vector<8x256xf32> to vector<8x128xf32>
    %65 = vector.extract_strided_slice %63 {offsets = [0, 128], sizes = [8, 128], strides = [1, 1]} : vector<8x256xf32> to vector<8x128xf32>
    %66 = vector.extract_strided_slice %53 {offsets = [0, 256], sizes = [8, 128], strides = [1, 1]} : vector<8x384xf32> to vector<8x128xf32>
    %67 = arith.addf %56, %22 : vector<8x128xf32>
    %68 = arith.mulf %64, %67 : vector<8x128xf32>
    %69 = arith.addf %66, %68 : vector<8x128xf32>
    %70 = math.tanh %69 : vector<8x128xf32>
    %cst_39 = arith.constant 1.000000e+00 : f32
    %71 = vector.broadcast %cst_39 : f32 to vector<8x128xf32>
    %72 = arith.subf %71, %65 : vector<8x128xf32>
    %73 = arith.mulf %72, %70 : vector<8x128xf32>
    %74 = arith.mulf %65, %26 : vector<8x128xf32>
    %75 = arith.addf %73, %74 : vector<8x128xf32>
    %c0_40 = arith.constant 0 : index
    %c0_41 = arith.constant 0 : index
    %76 = vector.load %arg17[%c0_40, %c0_41] : memref<64x128xf32, #tpu.memory_space<vmem>>, vector<8x128xf32>
    tpu.vector_store %arg17[%c0_40, %c0_41], %75 {strides = array<i32>} : memref<64x128xf32, #tpu.memory_space<vmem>>, vector<8x128xf32>,
    %c8 = arith.constant 8 : index
    %c0_42 = arith.constant 0 : index
    %77 = vector.load %arg18[%c8, %c0_42] : memref<64x384xf32, #tpu.memory_space<vmem>>, vector<8x384xf32>
    %78 = arith.truncf %49 : vector<8x128xf32> to vector<8x128xbf16>
    %cst_43 = arith.constant dense<0.000000e+00> : vector<8x256xf32>
    %79 = tpu.matmul %78, %13, %cst_43 {dimension_numbers = #tpu.dot_dimension_numbers<[1], [0], [0], [1], [0, 0, 1, 1], [], []>} : vector<8x128xbf16>, vector<128x256xbf16>, vector<8x256xf32> -> vector<8x256xf32>
    %cst_44 = arith.constant dense<0.000000e+00> : vector<8x128xf32>
    %80 = tpu.matmul %78, %15, %cst_44 {dimension_numbers = #tpu.dot_dimension_numbers<[1], [0], [0], [1], [0, 0, 1, 1], [], []>} : vector<8x128xbf16>, vector<128x128xbf16>, vector<8x128xf32> -> vector<8x128xf32>
    %81 = vector.extract_strided_slice %77 {offsets = [0, 0], sizes = [8, 256], strides = [1, 1]} : vector<8x384xf32> to vector<8x256xf32>
    %82 = arith.addf %81, %79 : vector<8x256xf32>
    %83 = arith.negf %82 : vector<8x256xf32>
    %84 = math.exp %83 : vector<8x256xf32>
    %cst_45 = arith.constant 1.000000e+00 : f32
    %85 = vector.broadcast %cst_45 : f32 to vector<8x256xf32>
    %86 = arith.addf %85, %84 : vector<8x256xf32>
    %87 = arith.divf %85, %86 : vector<8x256xf32>
    %88 = vector.extract_strided_slice %87 {offsets = [0, 0], sizes = [8, 128], strides = [1, 1]} : vector<8x256xf32> to vector<8x128xf32>
    %89 = vector.extract_strided_slice %87 {offsets = [0, 128], sizes = [8, 128], strides = [1, 1]} : vector<8x256xf32> to vector<8x128xf32>
    %90 = vector.extract_strided_slice %77 {offsets = [0, 256], sizes = [8, 128], strides = [1, 1]} : vector<8x384xf32> to vector<8x128xf32>
    %91 = arith.addf %80, %19 : vector<8x128xf32>
    %92 = arith.mulf %88, %91 : vector<8x128xf32>
    %93 = arith.addf %90, %92 : vector<8x128xf32>
    %94 = math.tanh %93 : vector<8x128xf32>
    %cst_46 = arith.constant 1.000000e+00 : f32
    %95 = vector.broadcast %cst_46 : f32 to vector<8x128xf32>
    %96 = arith.subf %95, %89 : vector<8x128xf32>
    %97 = arith.mulf %96, %94 : vector<8x128xf32>
    %98 = arith.mulf %89, %49 : vector<8x128xf32>
    %99 = arith.addf %97, %98 : vector<8x128xf32>
    %100 = arith.truncf %99 : vector<8x128xf32> to vector<8x128xbf16>
    %c0_47 = arith.constant 0 : index
    %c0_48 = arith.constant 0 : index
    %101 = vector.load %arg9[%c0_47, %c0_48] : memref<128x384xbf16, #tpu.memory_space<vmem>>, vector<128x384xbf16>
    %cst_49 = arith.constant dense<0.000000e+00> : vector<8x384xf32>
    %102 = tpu.matmul %100, %101, %cst_49 {dimension_numbers = #tpu.dot_dimension_numbers<[1], [0], [0], [1], [0, 0, 1, 1], [], []>} : vector<8x128xbf16>, vector<128x384xbf16>, vector<8x384xf32> -> vector<8x384xf32>
    %103 = arith.addf %102, %25 : vector<8x384xf32>
    %104 = arith.truncf %75 : vector<8x128xf32> to vector<8x128xbf16>
    %cst_50 = arith.constant dense<0.000000e+00> : vector<8x256xf32>
    %105 = tpu.matmul %104, %14, %cst_50 {dimension_numbers = #tpu.dot_dimension_numbers<[1], [0], [0], [1], [0, 0, 1, 1], [], []>} : vector<8x128xbf16>, vector<128x256xbf16>, vector<8x256xf32> -> vector<8x256xf32>
    %cst_51 = arith.constant dense<0.000000e+00> : vector<8x128xf32>
    %106 = tpu.matmul %104, %16, %cst_51 {dimension_numbers = #tpu.dot_dimension_numbers<[1], [0], [0], [1], [0, 0, 1, 1], [], []>} : vector<8x128xbf16>, vector<128x128xbf16>, vector<8x128xf32> -> vector<8x128xf32>
    %107 = vector.extract_strided_slice %103 {offsets = [0, 0], sizes = [8, 256], strides = [1, 1]} : vector<8x384xf32> to vector<8x256xf32>
    %108 = arith.addf %107, %105 : vector<8x256xf32>
    %109 = arith.negf %108 : vector<8x256xf32>
    %110 = math.exp %109 : vector<8x256xf32>
    %cst_52 = arith.constant 1.000000e+00 : f32
    %111 = vector.broadcast %cst_52 : f32 to vector<8x256xf32>
    %112 = arith.addf %111, %110 : vector<8x256xf32>
    %113 = arith.divf %111, %112 : vector<8x256xf32>
    %114 = vector.extract_strided_slice %113 {offsets = [0, 0], sizes = [8, 128], strides = [1, 1]} : vector<8x256xf32> to vector<8x128xf32>
    %115 = vector.extract_strided_slice %113 {offsets = [0, 128], sizes = [8, 128], strides = [1, 1]} : vector<8x256xf32> to vector<8x128xf32>
    %116 = vector.extract_strided_slice %103 {offsets = [0, 256], sizes = [8, 128], strides = [1, 1]} : vector<8x384xf32> to vector<8x128xf32>
    %117 = arith.addf %106, %22 : vector<8x128xf32>
    %118 = arith.mulf %114, %117 : vector<8x128xf32>
    %119 = arith.addf %116, %118 : vector<8x128xf32>
    %120 = math.tanh %119 : vector<8x128xf32>
    %cst_53 = arith.constant 1.000000e+00 : f32
    %121 = vector.broadcast %cst_53 : f32 to vector<8x128xf32>
    %122 = arith.subf %121, %115 : vector<8x128xf32>
    %123 = arith.mulf %122, %120 : vector<8x128xf32>
    %124 = arith.mulf %115, %75 : vector<8x128xf32>
    %125 = arith.addf %123, %124 : vector<8x128xf32>
    %c8_54 = arith.constant 8 : index
    %c0_55 = arith.constant 0 : index
    %126 = vector.load %arg17[%c8_54, %c0_55] : memref<64x128xf32, #tpu.memory_space<vmem>>, vector<8x128xf32>
    tpu.vector_store %arg17[%c8_54, %c0_55], %125 {strides = array<i32>} : memref<64x128xf32, #tpu.memory_space<vmem>>, vector<8x128xf32>,
    %c16 = arith.constant 16 : index
    %c0_56 = arith.constant 0 : index
    %127 = vector.load %arg18[%c16, %c0_56] : memref<64x384xf32, #tpu.memory_space<vmem>>, vector<8x384xf32>
    %128 = arith.truncf %99 : vector<8x128xf32> to vector<8x128xbf16>
    %cst_57 = arith.constant dense<0.000000e+00> : vector<8x256xf32>
    %129 = tpu.matmul %128, %13, %cst_57 {dimension_numbers = #tpu.dot_dimension_numbers<[1], [0], [0], [1], [0, 0, 1, 1], [], []>} : vector<8x128xbf16>, vector<128x256xbf16>, vector<8x256xf32> -> vector<8x256xf32>
    %cst_58 = arith.constant dense<0.000000e+00> : vector<8x128xf32>
    %130 = tpu.matmul %128, %15, %cst_58 {dimension_numbers = #tpu.dot_dimension_numbers<[1], [0], [0], [1], [0, 0, 1, 1], [], []>} : vector<8x128xbf16>, vector<128x128xbf16>, vector<8x128xf32> -> vector<8x128xf32>
    %131 = vector.extract_strided_slice %127 {offsets = [0, 0], sizes = [8, 256], strides = [1, 1]} : vector<8x384xf32> to vector<8x256xf32>
    %132 = arith.addf %131, %129 : vector<8x256xf32>
    %133 = arith.negf %132 : vector<8x256xf32>
    %134 = math.exp %133 : vector<8x256xf32>
    %cst_59 = arith.constant 1.000000e+00 : f32
    %135 = vector.broadcast %cst_59 : f32 to vector<8x256xf32>
    %136 = arith.addf %135, %134 : vector<8x256xf32>
    %137 = arith.divf %135, %136 : vector<8x256xf32>
    %138 = vector.extract_strided_slice %137 {offsets = [0, 0], sizes = [8, 128], strides = [1, 1]} : vector<8x256xf32> to vector<8x128xf32>
    %139 = vector.extract_strided_slice %137 {offsets = [0, 128], sizes = [8, 128], strides = [1, 1]} : vector<8x256xf32> to vector<8x128xf32>
    %140 = vector.extract_strided_slice %127 {offsets = [0, 256], sizes = [8, 128], strides = [1, 1]} : vector<8x384xf32> to vector<8x128xf32>
    %141 = arith.addf %130, %19 : vector<8x128xf32>
    %142 = arith.mulf %138, %141 : vector<8x128xf32>
    %143 = arith.addf %140, %142 : vector<8x128xf32>
    %144 = math.tanh %143 : vector<8x128xf32>
    %cst_60 = arith.constant 1.000000e+00 : f32
    %145 = vector.broadcast %cst_60 : f32 to vector<8x128xf32>
    %146 = arith.subf %145, %139 : vector<8x128xf32>
    %147 = arith.mulf %146, %144 : vector<8x128xf32>
    %148 = arith.mulf %139, %99 : vector<8x128xf32>
    %149 = arith.addf %147, %148 : vector<8x128xf32>
    %150 = arith.truncf %149 : vector<8x128xf32> to vector<8x128xbf16>
    %c0_61 = arith.constant 0 : index
    %c0_62 = arith.constant 0 : index
    %151 = vector.load %arg9[%c0_61, %c0_62] : memref<128x384xbf16, #tpu.memory_space<vmem>>, vector<128x384xbf16>
    %cst_63 = arith.constant dense<0.000000e+00> : vector<8x384xf32>
    %152 = tpu.matmul %150, %151, %cst_63 {dimension_numbers = #tpu.dot_dimension_numbers<[1], [0], [0], [1], [0, 0, 1, 1], [], []>} : vector<8x128xbf16>, vector<128x384xbf16>, vector<8x384xf32> -> vector<8x384xf32>
    %153 = arith.addf %152, %25 : vector<8x384xf32>
    %154 = arith.truncf %125 : vector<8x128xf32> to vector<8x128xbf16>
    %cst_64 = arith.constant dense<0.000000e+00> : vector<8x256xf32>
    %155 = tpu.matmul %154, %14, %cst_64 {dimension_numbers = #tpu.dot_dimension_numbers<[1], [0], [0], [1], [0, 0, 1, 1], [], []>} : vector<8x128xbf16>, vector<128x256xbf16>, vector<8x256xf32> -> vector<8x256xf32>
    %cst_65 = arith.constant dense<0.000000e+00> : vector<8x128xf32>
    %156 = tpu.matmul %154, %16, %cst_65 {dimension_numbers = #tpu.dot_dimension_numbers<[1], [0], [0], [1], [0, 0, 1, 1], [], []>} : vector<8x128xbf16>, vector<128x128xbf16>, vector<8x128xf32> -> vector<8x128xf32>
    %157 = vector.extract_strided_slice %153 {offsets = [0, 0], sizes = [8, 256], strides = [1, 1]} : vector<8x384xf32> to vector<8x256xf32>
    %158 = arith.addf %157, %155 : vector<8x256xf32>
    %159 = arith.negf %158 : vector<8x256xf32>
    %160 = math.exp %159 : vector<8x256xf32>
    %cst_66 = arith.constant 1.000000e+00 : f32
    %161 = vector.broadcast %cst_66 : f32 to vector<8x256xf32>
    %162 = arith.addf %161, %160 : vector<8x256xf32>
    %163 = arith.divf %161, %162 : vector<8x256xf32>
    %164 = vector.extract_strided_slice %163 {offsets = [0, 0], sizes = [8, 128], strides = [1, 1]} : vector<8x256xf32> to vector<8x128xf32>
    %165 = vector.extract_strided_slice %163 {offsets = [0, 128], sizes = [8, 128], strides = [1, 1]} : vector<8x256xf32> to vector<8x128xf32>
    %166 = vector.extract_strided_slice %153 {offsets = [0, 256], sizes = [8, 128], strides = [1, 1]} : vector<8x384xf32> to vector<8x128xf32>
    %167 = arith.addf %156, %22 : vector<8x128xf32>
    %168 = arith.mulf %164, %167 : vector<8x128xf32>
    %169 = arith.addf %166, %168 : vector<8x128xf32>
    %170 = math.tanh %169 : vector<8x128xf32>
    %cst_67 = arith.constant 1.000000e+00 : f32
    %171 = vector.broadcast %cst_67 : f32 to vector<8x128xf32>
    %172 = arith.subf %171, %165 : vector<8x128xf32>
    %173 = arith.mulf %172, %170 : vector<8x128xf32>
    %174 = arith.mulf %165, %125 : vector<8x128xf32>
    %175 = arith.addf %173, %174 : vector<8x128xf32>
    %c16_68 = arith.constant 16 : index
    %c0_69 = arith.constant 0 : index
    %176 = vector.load %arg17[%c16_68, %c0_69] : memref<64x128xf32, #tpu.memory_space<vmem>>, vector<8x128xf32>
    tpu.vector_store %arg17[%c16_68, %c0_69], %175 {strides = array<i32>} : memref<64x128xf32, #tpu.memory_space<vmem>>, vector<8x128xf32>,
    %c24 = arith.constant 24 : index
    %c0_70 = arith.constant 0 : index
    %177 = vector.load %arg18[%c24, %c0_70] : memref<64x384xf32, #tpu.memory_space<vmem>>, vector<8x384xf32>
    %178 = arith.truncf %149 : vector<8x128xf32> to vector<8x128xbf16>
    %cst_71 = arith.constant dense<0.000000e+00> : vector<8x256xf32>
    %179 = tpu.matmul %178, %13, %cst_71 {dimension_numbers = #tpu.dot_dimension_numbers<[1], [0], [0], [1], [0, 0, 1, 1], [], []>} : vector<8x128xbf16>, vector<128x256xbf16>, vector<8x256xf32> -> vector<8x256xf32>
    %cst_72 = arith.constant dense<0.000000e+00> : vector<8x128xf32>
    %180 = tpu.matmul %178, %15, %cst_72 {dimension_numbers = #tpu.dot_dimension_numbers<[1], [0], [0], [1], [0, 0, 1, 1], [], []>} : vector<8x128xbf16>, vector<128x128xbf16>, vector<8x128xf32> -> vector<8x128xf32>
    %181 = vector.extract_strided_slice %177 {offsets = [0, 0], sizes = [8, 256], strides = [1, 1]} : vector<8x384xf32> to vector<8x256xf32>
    %182 = arith.addf %181, %179 : vector<8x256xf32>
    %183 = arith.negf %182 : vector<8x256xf32>
    %184 = math.exp %183 : vector<8x256xf32>
    %cst_73 = arith.constant 1.000000e+00 : f32
    %185 = vector.broadcast %cst_73 : f32 to vector<8x256xf32>
    %186 = arith.addf %185, %184 : vector<8x256xf32>
    %187 = arith.divf %185, %186 : vector<8x256xf32>
    %188 = vector.extract_strided_slice %187 {offsets = [0, 0], sizes = [8, 128], strides = [1, 1]} : vector<8x256xf32> to vector<8x128xf32>
    %189 = vector.extract_strided_slice %187 {offsets = [0, 128], sizes = [8, 128], strides = [1, 1]} : vector<8x256xf32> to vector<8x128xf32>
    %190 = vector.extract_strided_slice %177 {offsets = [0, 256], sizes = [8, 128], strides = [1, 1]} : vector<8x384xf32> to vector<8x128xf32>
    %191 = arith.addf %180, %19 : vector<8x128xf32>
    %192 = arith.mulf %188, %191 : vector<8x128xf32>
    %193 = arith.addf %190, %192 : vector<8x128xf32>
    %194 = math.tanh %193 : vector<8x128xf32>
    %cst_74 = arith.constant 1.000000e+00 : f32
    %195 = vector.broadcast %cst_74 : f32 to vector<8x128xf32>
    %196 = arith.subf %195, %189 : vector<8x128xf32>
    %197 = arith.mulf %196, %194 : vector<8x128xf32>
    %198 = arith.mulf %189, %149 : vector<8x128xf32>
    %199 = arith.addf %197, %198 : vector<8x128xf32>
    %200 = arith.truncf %199 : vector<8x128xf32> to vector<8x128xbf16>
    %c0_75 = arith.constant 0 : index
    %c0_76 = arith.constant 0 : index
    %201 = vector.load %arg9[%c0_75, %c0_76] : memref<128x384xbf16, #tpu.memory_space<vmem>>, vector<128x384xbf16>
    %cst_77 = arith.constant dense<0.000000e+00> : vector<8x384xf32>
    %202 = tpu.matmul %200, %201, %cst_77 {dimension_numbers = #tpu.dot_dimension_numbers<[1], [0], [0], [1], [0, 0, 1, 1], [], []>} : vector<8x128xbf16>, vector<128x384xbf16>, vector<8x384xf32> -> vector<8x384xf32>
    %203 = arith.addf %202, %25 : vector<8x384xf32>
    %204 = arith.truncf %175 : vector<8x128xf32> to vector<8x128xbf16>
    %cst_78 = arith.constant dense<0.000000e+00> : vector<8x256xf32>
    %205 = tpu.matmul %204, %14, %cst_78 {dimension_numbers = #tpu.dot_dimension_numbers<[1], [0], [0], [1], [0, 0, 1, 1], [], []>} : vector<8x128xbf16>, vector<128x256xbf16>, vector<8x256xf32> -> vector<8x256xf32>
    %cst_79 = arith.constant dense<0.000000e+00> : vector<8x128xf32>
    %206 = tpu.matmul %204, %16, %cst_79 {dimension_numbers = #tpu.dot_dimension_numbers<[1], [0], [0], [1], [0, 0, 1, 1], [], []>} : vector<8x128xbf16>, vector<128x128xbf16>, vector<8x128xf32> -> vector<8x128xf32>
    %207 = vector.extract_strided_slice %203 {offsets = [0, 0], sizes = [8, 256], strides = [1, 1]} : vector<8x384xf32> to vector<8x256xf32>
    %208 = arith.addf %207, %205 : vector<8x256xf32>
    %209 = arith.negf %208 : vector<8x256xf32>
    %210 = math.exp %209 : vector<8x256xf32>
    %cst_80 = arith.constant 1.000000e+00 : f32
    %211 = vector.broadcast %cst_80 : f32 to vector<8x256xf32>
    %212 = arith.addf %211, %210 : vector<8x256xf32>
    %213 = arith.divf %211, %212 : vector<8x256xf32>
    %214 = vector.extract_strided_slice %213 {offsets = [0, 0], sizes = [8, 128], strides = [1, 1]} : vector<8x256xf32> to vector<8x128xf32>
    %215 = vector.extract_strided_slice %213 {offsets = [0, 128], sizes = [8, 128], strides = [1, 1]} : vector<8x256xf32> to vector<8x128xf32>
    %216 = vector.extract_strided_slice %203 {offsets = [0, 256], sizes = [8, 128], strides = [1, 1]} : vector<8x384xf32> to vector<8x128xf32>
    %217 = arith.addf %206, %22 : vector<8x128xf32>
    %218 = arith.mulf %214, %217 : vector<8x128xf32>
    %219 = arith.addf %216, %218 : vector<8x128xf32>
    %220 = math.tanh %219 : vector<8x128xf32>
    %cst_81 = arith.constant 1.000000e+00 : f32
    %221 = vector.broadcast %cst_81 : f32 to vector<8x128xf32>
    %222 = arith.subf %221, %215 : vector<8x128xf32>
    %223 = arith.mulf %222, %220 : vector<8x128xf32>
    %224 = arith.mulf %215, %175 : vector<8x128xf32>
    %225 = arith.addf %223, %224 : vector<8x128xf32>
    %c24_82 = arith.constant 24 : index
    %c0_83 = arith.constant 0 : index
    %226 = vector.load %arg17[%c24_82, %c0_83] : memref<64x128xf32, #tpu.memory_space<vmem>>, vector<8x128xf32>
    tpu.vector_store %arg17[%c24_82, %c0_83], %225 {strides = array<i32>} : memref<64x128xf32, #tpu.memory_space<vmem>>, vector<8x128xf32>,
    %c32 = arith.constant 32 : index
    %c0_84 = arith.constant 0 : index
    %227 = vector.load %arg18[%c32, %c0_84] : memref<64x384xf32, #tpu.memory_space<vmem>>, vector<8x384xf32>
    %228 = arith.truncf %199 : vector<8x128xf32> to vector<8x128xbf16>
    %cst_85 = arith.constant dense<0.000000e+00> : vector<8x256xf32>
    %229 = tpu.matmul %228, %13, %cst_85 {dimension_numbers = #tpu.dot_dimension_numbers<[1], [0], [0], [1], [0, 0, 1, 1], [], []>} : vector<8x128xbf16>, vector<128x256xbf16>, vector<8x256xf32> -> vector<8x256xf32>
    %cst_86 = arith.constant dense<0.000000e+00> : vector<8x128xf32>
    %230 = tpu.matmul %228, %15, %cst_86 {dimension_numbers = #tpu.dot_dimension_numbers<[1], [0], [0], [1], [0, 0, 1, 1], [], []>} : vector<8x128xbf16>, vector<128x128xbf16>, vector<8x128xf32> -> vector<8x128xf32>
    %231 = vector.extract_strided_slice %227 {offsets = [0, 0], sizes = [8, 256], strides = [1, 1]} : vector<8x384xf32> to vector<8x256xf32>
    %232 = arith.addf %231, %229 : vector<8x256xf32>
    %233 = arith.negf %232 : vector<8x256xf32>
    %234 = math.exp %233 : vector<8x256xf32>
    %cst_87 = arith.constant 1.000000e+00 : f32
    %235 = vector.broadcast %cst_87 : f32 to vector<8x256xf32>
    %236 = arith.addf %235, %234 : vector<8x256xf32>
    %237 = arith.divf %235, %236 : vector<8x256xf32>
    %238 = vector.extract_strided_slice %237 {offsets = [0, 0], sizes = [8, 128], strides = [1, 1]} : vector<8x256xf32> to vector<8x128xf32>
    %239 = vector.extract_strided_slice %237 {offsets = [0, 128], sizes = [8, 128], strides = [1, 1]} : vector<8x256xf32> to vector<8x128xf32>
    %240 = vector.extract_strided_slice %227 {offsets = [0, 256], sizes = [8, 128], strides = [1, 1]} : vector<8x384xf32> to vector<8x128xf32>
    %241 = arith.addf %230, %19 : vector<8x128xf32>
    %242 = arith.mulf %238, %241 : vector<8x128xf32>
    %243 = arith.addf %240, %242 : vector<8x128xf32>
    %244 = math.tanh %243 : vector<8x128xf32>
    %cst_88 = arith.constant 1.000000e+00 : f32
    %245 = vector.broadcast %cst_88 : f32 to vector<8x128xf32>
    %246 = arith.subf %245, %239 : vector<8x128xf32>
    %247 = arith.mulf %246, %244 : vector<8x128xf32>
    %248 = arith.mulf %239, %199 : vector<8x128xf32>
    %249 = arith.addf %247, %248 : vector<8x128xf32>
    %250 = arith.truncf %249 : vector<8x128xf32> to vector<8x128xbf16>
    %c0_89 = arith.constant 0 : index
    %c0_90 = arith.constant 0 : index
    %251 = vector.load %arg9[%c0_89, %c0_90] : memref<128x384xbf16, #tpu.memory_space<vmem>>, vector<128x384xbf16>
    %cst_91 = arith.constant dense<0.000000e+00> : vector<8x384xf32>
    %252 = tpu.matmul %250, %251, %cst_91 {dimension_numbers = #tpu.dot_dimension_numbers<[1], [0], [0], [1], [0, 0, 1, 1], [], []>} : vector<8x128xbf16>, vector<128x384xbf16>, vector<8x384xf32> -> vector<8x384xf32>
    %253 = arith.addf %252, %25 : vector<8x384xf32>
    %254 = arith.truncf %225 : vector<8x128xf32> to vector<8x128xbf16>
    %cst_92 = arith.constant dense<0.000000e+00> : vector<8x256xf32>
    %255 = tpu.matmul %254, %14, %cst_92 {dimension_numbers = #tpu.dot_dimension_numbers<[1], [0], [0], [1], [0, 0, 1, 1], [], []>} : vector<8x128xbf16>, vector<128x256xbf16>, vector<8x256xf32> -> vector<8x256xf32>
    %cst_93 = arith.constant dense<0.000000e+00> : vector<8x128xf32>
    %256 = tpu.matmul %254, %16, %cst_93 {dimension_numbers = #tpu.dot_dimension_numbers<[1], [0], [0], [1], [0, 0, 1, 1], [], []>} : vector<8x128xbf16>, vector<128x128xbf16>, vector<8x128xf32> -> vector<8x128xf32>
    %257 = vector.extract_strided_slice %253 {offsets = [0, 0], sizes = [8, 256], strides = [1, 1]} : vector<8x384xf32> to vector<8x256xf32>
    %258 = arith.addf %257, %255 : vector<8x256xf32>
    %259 = arith.negf %258 : vector<8x256xf32>
    %260 = math.exp %259 : vector<8x256xf32>
    %cst_94 = arith.constant 1.000000e+00 : f32
    %261 = vector.broadcast %cst_94 : f32 to vector<8x256xf32>
    %262 = arith.addf %261, %260 : vector<8x256xf32>
    %263 = arith.divf %261, %262 : vector<8x256xf32>
    %264 = vector.extract_strided_slice %263 {offsets = [0, 0], sizes = [8, 128], strides = [1, 1]} : vector<8x256xf32> to vector<8x128xf32>
    %265 = vector.extract_strided_slice %263 {offsets = [0, 128], sizes = [8, 128], strides = [1, 1]} : vector<8x256xf32> to vector<8x128xf32>
    %266 = vector.extract_strided_slice %253 {offsets = [0, 256], sizes = [8, 128], strides = [1, 1]} : vector<8x384xf32> to vector<8x128xf32>
    %267 = arith.addf %256, %22 : vector<8x128xf32>
    %268 = arith.mulf %264, %267 : vector<8x128xf32>
    %269 = arith.addf %266, %268 : vector<8x128xf32>
    %270 = math.tanh %269 : vector<8x128xf32>
    %cst_95 = arith.constant 1.000000e+00 : f32
    %271 = vector.broadcast %cst_95 : f32 to vector<8x128xf32>
    %272 = arith.subf %271, %265 : vector<8x128xf32>
    %273 = arith.mulf %272, %270 : vector<8x128xf32>
    %274 = arith.mulf %265, %225 : vector<8x128xf32>
    %275 = arith.addf %273, %274 : vector<8x128xf32>
    %c32_96 = arith.constant 32 : index
    %c0_97 = arith.constant 0 : index
    %276 = vector.load %arg17[%c32_96, %c0_97] : memref<64x128xf32, #tpu.memory_space<vmem>>, vector<8x128xf32>
    tpu.vector_store %arg17[%c32_96, %c0_97], %275 {strides = array<i32>} : memref<64x128xf32, #tpu.memory_space<vmem>>, vector<8x128xf32>,
    %c40 = arith.constant 40 : index
    %c0_98 = arith.constant 0 : index
    %277 = vector.load %arg18[%c40, %c0_98] : memref<64x384xf32, #tpu.memory_space<vmem>>, vector<8x384xf32>
    %278 = arith.truncf %249 : vector<8x128xf32> to vector<8x128xbf16>
    %cst_99 = arith.constant dense<0.000000e+00> : vector<8x256xf32>
    %279 = tpu.matmul %278, %13, %cst_99 {dimension_numbers = #tpu.dot_dimension_numbers<[1], [0], [0], [1], [0, 0, 1, 1], [], []>} : vector<8x128xbf16>, vector<128x256xbf16>, vector<8x256xf32> -> vector<8x256xf32>
    %cst_100 = arith.constant dense<0.000000e+00> : vector<8x128xf32>
    %280 = tpu.matmul %278, %15, %cst_100 {dimension_numbers = #tpu.dot_dimension_numbers<[1], [0], [0], [1], [0, 0, 1, 1], [], []>} : vector<8x128xbf16>, vector<128x128xbf16>, vector<8x128xf32> -> vector<8x128xf32>
    %281 = vector.extract_strided_slice %277 {offsets = [0, 0], sizes = [8, 256], strides = [1, 1]} : vector<8x384xf32> to vector<8x256xf32>
    %282 = arith.addf %281, %279 : vector<8x256xf32>
    %283 = arith.negf %282 : vector<8x256xf32>
    %284 = math.exp %283 : vector<8x256xf32>
    %cst_101 = arith.constant 1.000000e+00 : f32
    %285 = vector.broadcast %cst_101 : f32 to vector<8x256xf32>
    %286 = arith.addf %285, %284 : vector<8x256xf32>
    %287 = arith.divf %285, %286 : vector<8x256xf32>
    %288 = vector.extract_strided_slice %287 {offsets = [0, 0], sizes = [8, 128], strides = [1, 1]} : vector<8x256xf32> to vector<8x128xf32>
    %289 = vector.extract_strided_slice %287 {offsets = [0, 128], sizes = [8, 128], strides = [1, 1]} : vector<8x256xf32> to vector<8x128xf32>
    %290 = vector.extract_strided_slice %277 {offsets = [0, 256], sizes = [8, 128], strides = [1, 1]} : vector<8x384xf32> to vector<8x128xf32>
    %291 = arith.addf %280, %19 : vector<8x128xf32>
    %292 = arith.mulf %288, %291 : vector<8x128xf32>
    %293 = arith.addf %290, %292 : vector<8x128xf32>
    %294 = math.tanh %293 : vector<8x128xf32>
    %cst_102 = arith.constant 1.000000e+00 : f32
    %295 = vector.broadcast %cst_102 : f32 to vector<8x128xf32>
    %296 = arith.subf %295, %289 : vector<8x128xf32>
    %297 = arith.mulf %296, %294 : vector<8x128xf32>
    %298 = arith.mulf %289, %249 : vector<8x128xf32>
    %299 = arith.addf %297, %298 : vector<8x128xf32>
    %300 = arith.truncf %299 : vector<8x128xf32> to vector<8x128xbf16>
    %c0_103 = arith.constant 0 : index
    %c0_104 = arith.constant 0 : index
    %301 = vector.load %arg9[%c0_103, %c0_104] : memref<128x384xbf16, #tpu.memory_space<vmem>>, vector<128x384xbf16>
    %cst_105 = arith.constant dense<0.000000e+00> : vector<8x384xf32>
    %302 = tpu.matmul %300, %301, %cst_105 {dimension_numbers = #tpu.dot_dimension_numbers<[1], [0], [0], [1], [0, 0, 1, 1], [], []>} : vector<8x128xbf16>, vector<128x384xbf16>, vector<8x384xf32> -> vector<8x384xf32>
    %303 = arith.addf %302, %25 : vector<8x384xf32>
    %304 = arith.truncf %275 : vector<8x128xf32> to vector<8x128xbf16>
    %cst_106 = arith.constant dense<0.000000e+00> : vector<8x256xf32>
    %305 = tpu.matmul %304, %14, %cst_106 {dimension_numbers = #tpu.dot_dimension_numbers<[1], [0], [0], [1], [0, 0, 1, 1], [], []>} : vector<8x128xbf16>, vector<128x256xbf16>, vector<8x256xf32> -> vector<8x256xf32>
    %cst_107 = arith.constant dense<0.000000e+00> : vector<8x128xf32>
    %306 = tpu.matmul %304, %16, %cst_107 {dimension_numbers = #tpu.dot_dimension_numbers<[1], [0], [0], [1], [0, 0, 1, 1], [], []>} : vector<8x128xbf16>, vector<128x128xbf16>, vector<8x128xf32> -> vector<8x128xf32>
    %307 = vector.extract_strided_slice %303 {offsets = [0, 0], sizes = [8, 256], strides = [1, 1]} : vector<8x384xf32> to vector<8x256xf32>
    %308 = arith.addf %307, %305 : vector<8x256xf32>
    %309 = arith.negf %308 : vector<8x256xf32>
    %310 = math.exp %309 : vector<8x256xf32>
    %cst_108 = arith.constant 1.000000e+00 : f32
    %311 = vector.broadcast %cst_108 : f32 to vector<8x256xf32>
    %312 = arith.addf %311, %310 : vector<8x256xf32>
    %313 = arith.divf %311, %312 : vector<8x256xf32>
    %314 = vector.extract_strided_slice %313 {offsets = [0, 0], sizes = [8, 128], strides = [1, 1]} : vector<8x256xf32> to vector<8x128xf32>
    %315 = vector.extract_strided_slice %313 {offsets = [0, 128], sizes = [8, 128], strides = [1, 1]} : vector<8x256xf32> to vector<8x128xf32>
    %316 = vector.extract_strided_slice %303 {offsets = [0, 256], sizes = [8, 128], strides = [1, 1]} : vector<8x384xf32> to vector<8x128xf32>
    %317 = arith.addf %306, %22 : vector<8x128xf32>
    %318 = arith.mulf %314, %317 : vector<8x128xf32>
    %319 = arith.addf %316, %318 : vector<8x128xf32>
    %320 = math.tanh %319 : vector<8x128xf32>
    %cst_109 = arith.constant 1.000000e+00 : f32
    %321 = vector.broadcast %cst_109 : f32 to vector<8x128xf32>
    %322 = arith.subf %321, %315 : vector<8x128xf32>
    %323 = arith.mulf %322, %320 : vector<8x128xf32>
    %324 = arith.mulf %315, %275 : vector<8x128xf32>
    %325 = arith.addf %323, %324 : vector<8x128xf32>
    %c40_110 = arith.constant 40 : index
    %c0_111 = arith.constant 0 : index
    %326 = vector.load %arg17[%c40_110, %c0_111] : memref<64x128xf32, #tpu.memory_space<vmem>>, vector<8x128xf32>
    tpu.vector_store %arg17[%c40_110, %c0_111], %325 {strides = array<i32>} : memref<64x128xf32, #tpu.memory_space<vmem>>, vector<8x128xf32>,
    %c48 = arith.constant 48 : index
    %c0_112 = arith.constant 0 : index
    %327 = vector.load %arg18[%c48, %c0_112] : memref<64x384xf32, #tpu.memory_space<vmem>>, vector<8x384xf32>
    %328 = arith.truncf %299 : vector<8x128xf32> to vector<8x128xbf16>
    %cst_113 = arith.constant dense<0.000000e+00> : vector<8x256xf32>
    %329 = tpu.matmul %328, %13, %cst_113 {dimension_numbers = #tpu.dot_dimension_numbers<[1], [0], [0], [1], [0, 0, 1, 1], [], []>} : vector<8x128xbf16>, vector<128x256xbf16>, vector<8x256xf32> -> vector<8x256xf32>
    %cst_114 = arith.constant dense<0.000000e+00> : vector<8x128xf32>
    %330 = tpu.matmul %328, %15, %cst_114 {dimension_numbers = #tpu.dot_dimension_numbers<[1], [0], [0], [1], [0, 0, 1, 1], [], []>} : vector<8x128xbf16>, vector<128x128xbf16>, vector<8x128xf32> -> vector<8x128xf32>
    %331 = vector.extract_strided_slice %327 {offsets = [0, 0], sizes = [8, 256], strides = [1, 1]} : vector<8x384xf32> to vector<8x256xf32>
    %332 = arith.addf %331, %329 : vector<8x256xf32>
    %333 = arith.negf %332 : vector<8x256xf32>
    %334 = math.exp %333 : vector<8x256xf32>
    %cst_115 = arith.constant 1.000000e+00 : f32
    %335 = vector.broadcast %cst_115 : f32 to vector<8x256xf32>
    %336 = arith.addf %335, %334 : vector<8x256xf32>
    %337 = arith.divf %335, %336 : vector<8x256xf32>
    %338 = vector.extract_strided_slice %337 {offsets = [0, 0], sizes = [8, 128], strides = [1, 1]} : vector<8x256xf32> to vector<8x128xf32>
    %339 = vector.extract_strided_slice %337 {offsets = [0, 128], sizes = [8, 128], strides = [1, 1]} : vector<8x256xf32> to vector<8x128xf32>
    %340 = vector.extract_strided_slice %327 {offsets = [0, 256], sizes = [8, 128], strides = [1, 1]} : vector<8x384xf32> to vector<8x128xf32>
    %341 = arith.addf %330, %19 : vector<8x128xf32>
    %342 = arith.mulf %338, %341 : vector<8x128xf32>
    %343 = arith.addf %340, %342 : vector<8x128xf32>
    %344 = math.tanh %343 : vector<8x128xf32>
    %cst_116 = arith.constant 1.000000e+00 : f32
    %345 = vector.broadcast %cst_116 : f32 to vector<8x128xf32>
    %346 = arith.subf %345, %339 : vector<8x128xf32>
    %347 = arith.mulf %346, %344 : vector<8x128xf32>
    %348 = arith.mulf %339, %299 : vector<8x128xf32>
    %349 = arith.addf %347, %348 : vector<8x128xf32>
    %350 = arith.truncf %349 : vector<8x128xf32> to vector<8x128xbf16>
    %c0_117 = arith.constant 0 : index
    %c0_118 = arith.constant 0 : index
    %351 = vector.load %arg9[%c0_117, %c0_118] : memref<128x384xbf16, #tpu.memory_space<vmem>>, vector<128x384xbf16>
    %cst_119 = arith.constant dense<0.000000e+00> : vector<8x384xf32>
    %352 = tpu.matmul %350, %351, %cst_119 {dimension_numbers = #tpu.dot_dimension_numbers<[1], [0], [0], [1], [0, 0, 1, 1], [], []>} : vector<8x128xbf16>, vector<128x384xbf16>, vector<8x384xf32> -> vector<8x384xf32>
    %353 = arith.addf %352, %25 : vector<8x384xf32>
    %354 = arith.truncf %325 : vector<8x128xf32> to vector<8x128xbf16>
    %cst_120 = arith.constant dense<0.000000e+00> : vector<8x256xf32>
    %355 = tpu.matmul %354, %14, %cst_120 {dimension_numbers = #tpu.dot_dimension_numbers<[1], [0], [0], [1], [0, 0, 1, 1], [], []>} : vector<8x128xbf16>, vector<128x256xbf16>, vector<8x256xf32> -> vector<8x256xf32>
    %cst_121 = arith.constant dense<0.000000e+00> : vector<8x128xf32>
    %356 = tpu.matmul %354, %16, %cst_121 {dimension_numbers = #tpu.dot_dimension_numbers<[1], [0], [0], [1], [0, 0, 1, 1], [], []>} : vector<8x128xbf16>, vector<128x128xbf16>, vector<8x128xf32> -> vector<8x128xf32>
    %357 = vector.extract_strided_slice %353 {offsets = [0, 0], sizes = [8, 256], strides = [1, 1]} : vector<8x384xf32> to vector<8x256xf32>
    %358 = arith.addf %357, %355 : vector<8x256xf32>
    %359 = arith.negf %358 : vector<8x256xf32>
    %360 = math.exp %359 : vector<8x256xf32>
    %cst_122 = arith.constant 1.000000e+00 : f32
    %361 = vector.broadcast %cst_122 : f32 to vector<8x256xf32>
    %362 = arith.addf %361, %360 : vector<8x256xf32>
    %363 = arith.divf %361, %362 : vector<8x256xf32>
    %364 = vector.extract_strided_slice %363 {offsets = [0, 0], sizes = [8, 128], strides = [1, 1]} : vector<8x256xf32> to vector<8x128xf32>
    %365 = vector.extract_strided_slice %363 {offsets = [0, 128], sizes = [8, 128], strides = [1, 1]} : vector<8x256xf32> to vector<8x128xf32>
    %366 = vector.extract_strided_slice %353 {offsets = [0, 256], sizes = [8, 128], strides = [1, 1]} : vector<8x384xf32> to vector<8x128xf32>
    %367 = arith.addf %356, %22 : vector<8x128xf32>
    %368 = arith.mulf %364, %367 : vector<8x128xf32>
    %369 = arith.addf %366, %368 : vector<8x128xf32>
    %370 = math.tanh %369 : vector<8x128xf32>
    %cst_123 = arith.constant 1.000000e+00 : f32
    %371 = vector.broadcast %cst_123 : f32 to vector<8x128xf32>
    %372 = arith.subf %371, %365 : vector<8x128xf32>
    %373 = arith.mulf %372, %370 : vector<8x128xf32>
    %374 = arith.mulf %365, %325 : vector<8x128xf32>
    %375 = arith.addf %373, %374 : vector<8x128xf32>
    %c48_124 = arith.constant 48 : index
    %c0_125 = arith.constant 0 : index
    %376 = vector.load %arg17[%c48_124, %c0_125] : memref<64x128xf32, #tpu.memory_space<vmem>>, vector<8x128xf32>
    tpu.vector_store %arg17[%c48_124, %c0_125], %375 {strides = array<i32>} : memref<64x128xf32, #tpu.memory_space<vmem>>, vector<8x128xf32>,
    %c56 = arith.constant 56 : index
    %c0_126 = arith.constant 0 : index
    %377 = vector.load %arg18[%c56, %c0_126] : memref<64x384xf32, #tpu.memory_space<vmem>>, vector<8x384xf32>
    %378 = arith.truncf %349 : vector<8x128xf32> to vector<8x128xbf16>
    %cst_127 = arith.constant dense<0.000000e+00> : vector<8x256xf32>
    %379 = tpu.matmul %378, %13, %cst_127 {dimension_numbers = #tpu.dot_dimension_numbers<[1], [0], [0], [1], [0, 0, 1, 1], [], []>} : vector<8x128xbf16>, vector<128x256xbf16>, vector<8x256xf32> -> vector<8x256xf32>
    %cst_128 = arith.constant dense<0.000000e+00> : vector<8x128xf32>
    %380 = tpu.matmul %378, %15, %cst_128 {dimension_numbers = #tpu.dot_dimension_numbers<[1], [0], [0], [1], [0, 0, 1, 1], [], []>} : vector<8x128xbf16>, vector<128x128xbf16>, vector<8x128xf32> -> vector<8x128xf32>
    %381 = vector.extract_strided_slice %377 {offsets = [0, 0], sizes = [8, 256], strides = [1, 1]} : vector<8x384xf32> to vector<8x256xf32>
    %382 = arith.addf %381, %379 : vector<8x256xf32>
    %383 = arith.negf %382 : vector<8x256xf32>
    %384 = math.exp %383 : vector<8x256xf32>
    %cst_129 = arith.constant 1.000000e+00 : f32
    %385 = vector.broadcast %cst_129 : f32 to vector<8x256xf32>
    %386 = arith.addf %385, %384 : vector<8x256xf32>
    %387 = arith.divf %385, %386 : vector<8x256xf32>
    %388 = vector.extract_strided_slice %387 {offsets = [0, 0], sizes = [8, 128], strides = [1, 1]} : vector<8x256xf32> to vector<8x128xf32>
    %389 = vector.extract_strided_slice %387 {offsets = [0, 128], sizes = [8, 128], strides = [1, 1]} : vector<8x256xf32> to vector<8x128xf32>
    %390 = vector.extract_strided_slice %377 {offsets = [0, 256], sizes = [8, 128], strides = [1, 1]} : vector<8x384xf32> to vector<8x128xf32>
    %391 = arith.addf %380, %19 : vector<8x128xf32>
    %392 = arith.mulf %388, %391 : vector<8x128xf32>
    %393 = arith.addf %390, %392 : vector<8x128xf32>
    %394 = math.tanh %393 : vector<8x128xf32>
    %cst_130 = arith.constant 1.000000e+00 : f32
    %395 = vector.broadcast %cst_130 : f32 to vector<8x128xf32>
    %396 = arith.subf %395, %389 : vector<8x128xf32>
    %397 = arith.mulf %396, %394 : vector<8x128xf32>
    %398 = arith.mulf %389, %349 : vector<8x128xf32>
    %399 = arith.addf %397, %398 : vector<8x128xf32>
    %c0_131 = arith.constant 0 : index
    %c0_132 = arith.constant 0 : index
    %c0_133 = arith.constant 0 : index
    %400 = vector.load %arg16[%c0_131, %c0_132, %c0_133] : memref<2x8x128xf32, #tpu.memory_space<vmem>>, vector<1x8x128xf32>
    %401 = vector.shape_cast %400 : vector<1x8x128xf32> to vector<8x128xf32>
    %402 = vector.shape_cast %399 : vector<8x128xf32> to vector<1x8x128xf32>
    tpu.vector_store %arg16[%c0_131, %c0_132, %c0_133], %402 {strides = array<i32>} : memref<2x8x128xf32, #tpu.memory_space<vmem>>, vector<1x8x128xf32>,
    %403 = arith.truncf %399 : vector<8x128xf32> to vector<8x128xbf16>
    %c0_134 = arith.constant 0 : index
    %c0_135 = arith.constant 0 : index
    %404 = vector.load %arg9[%c0_134, %c0_135] : memref<128x384xbf16, #tpu.memory_space<vmem>>, vector<128x384xbf16>
    %cst_136 = arith.constant dense<0.000000e+00> : vector<8x384xf32>
    %405 = tpu.matmul %403, %404, %cst_136 {dimension_numbers = #tpu.dot_dimension_numbers<[1], [0], [0], [1], [0, 0, 1, 1], [], []>} : vector<8x128xbf16>, vector<128x384xbf16>, vector<8x384xf32> -> vector<8x384xf32>
    %406 = arith.addf %405, %25 : vector<8x384xf32>
    %407 = arith.truncf %375 : vector<8x128xf32> to vector<8x128xbf16>
    %cst_137 = arith.constant dense<0.000000e+00> : vector<8x256xf32>
    %408 = tpu.matmul %407, %14, %cst_137 {dimension_numbers = #tpu.dot_dimension_numbers<[1], [0], [0], [1], [0, 0, 1, 1], [], []>} : vector<8x128xbf16>, vector<128x256xbf16>, vector<8x256xf32> -> vector<8x256xf32>
    %cst_138 = arith.constant dense<0.000000e+00> : vector<8x128xf32>
    %409 = tpu.matmul %407, %16, %cst_138 {dimension_numbers = #tpu.dot_dimension_numbers<[1], [0], [0], [1], [0, 0, 1, 1], [], []>} : vector<8x128xbf16>, vector<128x128xbf16>, vector<8x128xf32> -> vector<8x128xf32>
    %410 = vector.extract_strided_slice %406 {offsets = [0, 0], sizes = [8, 256], strides = [1, 1]} : vector<8x384xf32> to vector<8x256xf32>
    %411 = arith.addf %410, %408 : vector<8x256xf32>
    %412 = arith.negf %411 : vector<8x256xf32>
    %413 = math.exp %412 : vector<8x256xf32>
    %cst_139 = arith.constant 1.000000e+00 : f32
    %414 = vector.broadcast %cst_139 : f32 to vector<8x256xf32>
    %415 = arith.addf %414, %413 : vector<8x256xf32>
    %416 = arith.divf %414, %415 : vector<8x256xf32>
    %417 = vector.extract_strided_slice %416 {offsets = [0, 0], sizes = [8, 128], strides = [1, 1]} : vector<8x256xf32> to vector<8x128xf32>
    %418 = vector.extract_strided_slice %416 {offsets = [0, 128], sizes = [8, 128], strides = [1, 1]} : vector<8x256xf32> to vector<8x128xf32>
    %419 = vector.extract_strided_slice %406 {offsets = [0, 256], sizes = [8, 128], strides = [1, 1]} : vector<8x384xf32> to vector<8x128xf32>
    %420 = arith.addf %409, %22 : vector<8x128xf32>
    %421 = arith.mulf %417, %420 : vector<8x128xf32>
    %422 = arith.addf %419, %421 : vector<8x128xf32>
    %423 = math.tanh %422 : vector<8x128xf32>
    %cst_140 = arith.constant 1.000000e+00 : f32
    %424 = vector.broadcast %cst_140 : f32 to vector<8x128xf32>
    %425 = arith.subf %424, %418 : vector<8x128xf32>
    %426 = arith.mulf %425, %423 : vector<8x128xf32>
    %427 = arith.mulf %418, %375 : vector<8x128xf32>
    %428 = arith.addf %426, %427 : vector<8x128xf32>
    %c56_141 = arith.constant 56 : index
    %c0_142 = arith.constant 0 : index
    %429 = vector.load %arg17[%c56_141, %c0_142] : memref<64x128xf32, #tpu.memory_space<vmem>>, vector<8x128xf32>
    tpu.vector_store %arg17[%c56_141, %c0_142], %428 {strides = array<i32>} : memref<64x128xf32, #tpu.memory_space<vmem>>, vector<8x128xf32>,
    %c1 = arith.constant 1 : index
    %c0_143 = arith.constant 0 : index
    %c0_144 = arith.constant 0 : index
    %430 = vector.load %arg16[%c1, %c0_143, %c0_144] : memref<2x8x128xf32, #tpu.memory_space<vmem>>, vector<1x8x128xf32>
    %431 = vector.shape_cast %430 : vector<1x8x128xf32> to vector<8x128xf32>
    %432 = vector.shape_cast %428 : vector<8x128xf32> to vector<1x8x128xf32>
    tpu.vector_store %arg16[%c1, %c0_143, %c0_144], %432 {strides = array<i32>} : memref<2x8x128xf32, #tpu.memory_space<vmem>>, vector<1x8x128xf32>,
    %c0_145 = arith.constant 0 : index
    %c0_146 = arith.constant 0 : index
    %433 = vector.load %arg17[%c0_145, %c0_146] : memref<64x128xf32, #tpu.memory_space<vmem>>, vector<64x128xf32>
    %434 = arith.truncf %433 : vector<64x128xf32> to vector<64x128xbf16>
    %c0_147 = arith.constant 0 : index
    %c0_148 = arith.constant 0 : index
    %435 = vector.load %arg13[%c0_147, %c0_148] : memref<128x128xbf16, #tpu.memory_space<vmem>>, vector<128x128xbf16>
    %cst_149 = arith.constant dense<0.000000e+00> : vector<64x128xf32>
    %436 = tpu.matmul %434, %435, %cst_149 {dimension_numbers = #tpu.dot_dimension_numbers<[1], [0], [0], [1], [0, 0, 1, 1], [], []>} : vector<64x128xbf16>, vector<128x128xbf16>, vector<64x128xf32> -> vector<64x128xf32>
    %c0_150 = arith.constant 0 : index
    %c0_151 = arith.constant 0 : index
    %437 = vector.load %arg14[%c0_150, %c0_151] : memref<1x128xf32, #tpu.memory_space<vmem>>, vector<1x128xf32>
    %438 = vector.broadcast %437 : vector<1x128xf32> to vector<64x128xf32>
    %439 = arith.addf %436, %438 : vector<64x128xf32>
    %c0_152 = arith.constant 0 : index
    %c0_153 = arith.constant 0 : index
    %440 = vector.load %arg15[%c0_152, %c0_153] : memref<64x128xf32, #tpu.memory_space<vmem>>, vector<64x128xf32>
    tpu.vector_store %arg15[%c0_152, %c0_153], %439 {strides = array<i32>} : memref<64x128xf32, #tpu.memory_space<vmem>>, vector<64x128xf32>,
    return
  }
  func.func @transform_0(%arg0: i32) -> (i32, i32) {
    %c0_i32 = arith.constant 0 : i32
    %c0_i32_0 = arith.constant 0 : i32
    %c0_i32_1 = arith.constant 0 : i32
    return %c0_i32, %c0_i32_0 : i32, i32
  }
  func.func @transform_1(%arg0: i32) -> (i32, i32) {
    %c0_i32 = arith.constant 0 : i32
    %c0_i32_0 = arith.constant 0 : i32
    %c0_i32_1 = arith.constant 0 : i32
    return %c0_i32, %c0_i32_0 : i32, i32
  }
  func.func @transform_2(%arg0: i32) -> (i32, i32) {
    %c0_i32 = arith.constant 0 : i32
    %c0_i32_0 = arith.constant 0 : i32
    %c0_i32_1 = arith.constant 0 : i32
    return %c0_i32, %c0_i32_0 : i32, i32
  }
  func.func @transform_3(%arg0: i32) -> (i32, i32) {
    %c0_i32 = arith.constant 0 : i32
    %c0_i32_0 = arith.constant 0 : i32
    %c0_i32_1 = arith.constant 0 : i32
    return %c0_i32, %c0_i32_0 : i32, i32
  }
  func.func @transform_4(%arg0: i32) -> (i32, i32) {
    %c0_i32 = arith.constant 0 : i32
    %c0_i32_0 = arith.constant 0 : i32
    %c0_i32_1 = arith.constant 0 : i32
    return %c0_i32, %c0_i32_0 : i32, i32
  }
  func.func @transform_5(%arg0: i32) -> (i32, i32) {
    %c0_i32 = arith.constant 0 : i32
    %c0_i32_0 = arith.constant 0 : i32
    %c0_i32_1 = arith.constant 0 : i32
    return %c0_i32, %c0_i32_0 : i32, i32
  }
  func.func @transform_6(%arg0: i32) -> (i32, i32) {
    %c0_i32 = arith.constant 0 : i32
    %c0_i32_0 = arith.constant 0 : i32
    %c0_i32_1 = arith.constant 0 : i32
    return %c0_i32, %c0_i32_0 : i32, i32
  }
  func.func @transform_7(%arg0: i32) -> (i32, i32) {
    %c0_i32 = arith.constant 0 : i32
    %c0_i32_0 = arith.constant 0 : i32
    %c0_i32_1 = arith.constant 0 : i32
    return %c0_i32, %c0_i32_0 : i32, i32
  }
  func.func @transform_8(%arg0: i32) -> (i32, i32) {
    %c0_i32 = arith.constant 0 : i32
    %c0_i32_0 = arith.constant 0 : i32
    %c0_i32_1 = arith.constant 0 : i32
    return %c0_i32, %c0_i32_0 : i32, i32
  }
  func.func @transform_9(%arg0: i32) -> (i32, i32) {
    %c0_i32 = arith.constant 0 : i32
    %c0_i32_0 = arith.constant 0 : i32
    %c0_i32_1 = arith.constant 0 : i32
    return %c0_i32, %c0_i32_0 : i32, i32
  }
  func.func @transform_10(%arg0: i32) -> (i32, i32) {
    %c0_i32 = arith.constant 0 : i32
    %c0_i32_0 = arith.constant 0 : i32
    %c0_i32_1 = arith.constant 0 : i32
    return %c0_i32, %c0_i32_0 : i32, i32
  }
  func.func @transform_11(%arg0: i32) -> (i32, i32) {
    %c0_i32 = arith.constant 0 : i32
    %c0_i32_0 = arith.constant 0 : i32
    %c0_i32_1 = arith.constant 0 : i32
    return %c0_i32, %c0_i32_0 : i32, i32
  }
  func.func @transform_12(%arg0: i32) -> (i32, i32) {
    %c0_i32 = arith.constant 0 : i32
    %c0_i32_0 = arith.constant 0 : i32
    %c0_i32_1 = arith.constant 0 : i32
    return %c0_i32, %c0_i32_0 : i32, i32
  }
  func.func @transform_13(%arg0: i32) -> (i32, i32) {
    %c0_i32 = arith.constant 0 : i32
    %c0_i32_0 = arith.constant 0 : i32
    %c0_i32_1 = arith.constant 0 : i32
    return %c0_i32, %c0_i32_0 : i32, i32
  }
  func.func @transform_14(%arg0: i32) -> (i32, i32) {
    %c0_i32 = arith.constant 0 : i32
    %c0_i32_0 = arith.constant 0 : i32
    %c0_i32_1 = arith.constant 0 : i32
    return %c0_i32, %c0_i32_0 : i32, i32
  }
  func.func @transform_15(%arg0: i32) -> (i32, i32, i32) {
    %c0_i32 = arith.constant 0 : i32
    %c0_i32_0 = arith.constant 0 : i32
    %c0_i32_1 = arith.constant 0 : i32
    %c0_i32_2 = arith.constant 0 : i32
    return %c0_i32, %c0_i32_0, %c0_i32_1 : i32, i32, i32
  }
}

</mosaic_0001>

<bundles_post_ra>
// kernel: char_rnn_forward.1
= control target key start
LH: loop header
LB: loop body
LE: loop exit
PB: predicated region body
PF: predicated region fallthrough
CT: control target
= control target key end

     0   :  { %vm93_vm0 = vcmask 130048   ;;  %v8818_v38 = vmov 0   ;;  %vm6327_vm1 = vmmov 0   ;;  %s8799_s1 = inlined_call_operand.vmem [shape: bf16[16,128], index: 1, kind: input, shape index: {}]   ;;  %s8800_s0 = inlined_call_operand.vmem [shape: bf16[64,16], index: 0, kind: input, shape index: {}]   ;;  %s8801_s4 = inlined_call_operand.vmem [shape: bf16[128,384], index: 4, kind: input, shape index: {}]   ;;  %s8802_s5 = inlined_call_operand.vmem [shape: bf16[128,384], index: 5, kind: input, shape index: {}]   ;;  %s8803_s3 = inlined_call_operand.vmem [shape: f32[8,128], index: 3, kind: input, shape index: {}]   ;;  %s8804_s2 = inlined_call_operand.vmem [shape: f32[1,128], index: 2, kind: input, shape index: {}]   ;;  %s8805_s8 = inlined_call_operand.vmem [shape: bf16[128,384], index: 8, kind: input, shape index: {}]   ;;  %s8806_s9 = inlined_call_operand.vmem [shape: bf16[128,384], index: 9, kind: input, shape index: {}]   ;;  %s8807_s6 = inlined_call_operand.vmem [shape: f32[1,384], index: 6, kind: input, shape index: {}]   ;;  %s8808_s7 = inlined_call_operand.vmem [shape: f32[1,128], index: 7, kind: input, shape index: {}]   ;;  %s8809_s10 = inlined_call_operand.vmem [shape: f32[1,384], index: 10, kind: input, shape index: {}]   ;;  %s8810_s11 = inlined_call_operand.vmem [shape: f32[1,128], index: 11, kind: input, shape index: {}]   ;;  %s8811_s12 = inlined_call_operand.vmem [shape: bf16[128,128], index: 12, kind: input, shape index: {}]   ;;  %s8812_s15 = inlined_call_operand.vmem [shape: f32[2,8,128], index: 15, kind: output, shape index: {1}]   ;;  %s8813_s13 = inlined_call_operand.vmem [shape: f32[1,128], index: 13, kind: input, shape index: {}]   ;;  %s8814_s14 = inlined_call_operand.vmem [shape: f32[64,128], index: 14, kind: output, shape index: {0}]  }
   0x1   :  { %v5793_v0 = vld [vmem:[%s8799_s1] sm:$0xff]   ;;  %v5795_v2 = vld [vmem:[%s8800_s0 + $0x8] sm:$0xff]   ;;  %v5796_v3 = vld [vmem:[%s8800_s0 + $0x10] sm:$0xff]   ;;  %384 = vmatprep.mubr.bf16.mxu0 %v8818_v38 }
   0x2   :  { %v5794_v1 = vld [vmem:[%s8800_s0] sm:$0xff]   ;;  %5204 = vmatprep.subr.bf16.mxu1 %v5793_v0  ;;  %v5797_v7 = vld [vmem:[%s8800_s0 + $0x18] sm:$0xff]   ;;  %v5818_v18 = vld [vmem:[%s8801_s4 + $0x48] ss:$12 sps:$4 sm:$0xff]  }
   0x3   :  { %5205 = vmatpush3.bf16.msra.mxu1 %v5793_v0  ;;  %5206 = vmatprep.mubr.msk.bf16.mxu1 %vm93_vm0, %v5794_v1  ;;  %v5798_v4 = vld [vmem:[%s8801_s4 + $0x4] ss:$12 sps:$4 sm:$0xff]   ;;  %v5800_v5 = vld [vmem:[%s8801_s4] ss:$12 sps:$4 sm:$0xff]   ;;  %v5803_v8 = vld [vmem:[%s8801_s4 + $0x1c] ss:$12 sps:$4 sm:$0xff]  }
   0x4   :  { %352 = vmatprep.subr.bf16.mxu0 %v5798_v4  ;;  %v5801_v6 = vld [vmem:[%s8802_s5 + $0x4] ss:$12 sps:$4 sm:$0xff]   ;;  %v5805_v9 = vld [vmem:[%s8802_s5] ss:$12 sps:$4 sm:$0xff]   ;;  %v5807_v11 = vld [vmem:[%s8802_s5 + $0x1c] ss:$12 sps:$4 sm:$0xff]  }
   0x5   :  { %353 = vmatpush1.bf16.msra.mxu0 %v5800_v5  ;;  %v5806_v10 = vld [vmem:[%s8801_s4 + $0x18] ss:$12 sps:$4 sm:$0xff]   ;;  %694 = vmatprep.subr.bf16.mxu1 %v5801_v6  ;;  %v5809_v12 = vld [vmem:[%s8801_s4 + $0x34] ss:$12 sps:$4 sm:$0xff]   ;;  %v5812_v14 = vld [vmem:[%s8801_s4 + $0x30] ss:$12 sps:$4 sm:$0xff]  }
   0x6   :  { %5207 = vmatmul.mubr.msk.bf16.vlgmr.msra.gmra.mrb[0].mxu1 %vm93_vm0, %v5795_v2  ;;  %354 = vmatprep.subr.bf16.mxu0 %v5803_v8  ;;  %v5811_v13 = vld [vmem:[%s8802_s5 + $0x18] ss:$12 sps:$4 sm:$0xff]   ;;  %v5813_v15 = vld [vmem:[%s8802_s5 + $0x34] ss:$12 sps:$4 sm:$0xff]   ;;  %v5817_v17 = vld [vmem:[%s8802_s5 + $0x30] ss:$12 sps:$4 sm:$0xff]  }
   0x7   :  { %5210 = vmatprep.mubr.msk.bf16.mxu1 %vm93_vm0, %v5796_v3  ;;  %695 = vmatpush1.bf16.msra.mxu1 %v5805_v9  ;;  %v5815_v16 = vld [vmem:[%s8801_s4 + $0x4c] ss:$12 sps:$4 sm:$0xff]   ;;  %v5821_v20 = vld [vmem:[%s8801_s4 + $0x64] ss:$12 sps:$4 sm:$0xff]   ;;  %v5823_v21 = vld [vmem:[%s8802_s5 + $0x48] ss:$12 sps:$4 sm:$0xff]  }
   0x8   :  { %696 = vmatprep.subr.bf16.mxu1 %v5807_v11  ;;  %v5819_v19 = vld [vmem:[%s8802_s5 + $0x4c] ss:$12 sps:$4 sm:$0xff]   ;;  %v5825_v23 = vld [vmem:[%s8802_s5 + $0x64] ss:$12 sps:$4 sm:$0xff]   ;;  %v5827_v24 = vld [vmem:[%s8801_s4 + $0x7c] ss:$12 sps:$4 sm:$0xff]  }
   0x9   :  { %355 = vmatpush1.bf16.msra.mxu0 %v5806_v10  ;;  %v5824_v22 = vld [vmem:[%s8801_s4 + $0x60] ss:$12 sps:$4 sm:$0xff]   ;;  %v5830_v26 = vld [vmem:[%s8801_s4 + $0x78] ss:$12 sps:$4 sm:$0xff]   ;;  %v5831_v27 = vld [vmem:[%s8802_s5 + $0x7c] ss:$12 sps:$4 sm:$0xff]  }
   0xa   :  { %356 = vmatprep.subr.bf16.mxu0 %v5809_v12  ;;  %v5829_v25 = vld [vmem:[%s8802_s5 + $0x60] ss:$12 sps:$4 sm:$0xff]   ;;  %v5835_v29 = vld [vmem:[%s8802_s5 + $0x78] ss:$12 sps:$4 sm:$0xff]   ;;  %v5836_v30 = vld [vmem:[%s8801_s4 + $0x90] ss:$12 sps:$4 sm:$0xff]  }
   0xb   :  { %697 = vmatpush1.bf16.msra.mxu1 %v5811_v13  ;;  %v5833_v28 = vld [vmem:[%s8801_s4 + $0x94] ss:$12 sps:$4 sm:$0xff]   ;;  %v5839_v32 = vld [vmem:[%s8801_s4 + $0xac] ss:$12 sps:$4 sm:$0xff]   ;;  %v5841_v33 = vld [vmem:[%s8802_s5 + $0x90] ss:$12 sps:$4 sm:$0xff]  }
   0xc   :  { %698 = vmatprep.subr.bf16.mxu1 %v5813_v15  ;;  %v5837_v31 = vld [vmem:[%s8802_s5 + $0x94] ss:$12 sps:$4 sm:$0xff]   ;;  %v5843_v35 = vld [vmem:[%s8802_s5 + $0xac] ss:$12 sps:$4 sm:$0xff]   ;;  %v5849_v0 = vld [vmem:[%s8801_s4 + $0x50] ss:$12 sps:$4 sm:$0xff]  }
   0xd   :  { %357 = vmatpush1.bf16.msra.mxu0 %v5812_v14  ;;  %v5842_v34 = vld [vmem:[%s8801_s4 + $0xa8] ss:$12 sps:$4 sm:$0xff]   ;;  %v6531_v39 = vld [vmem:[%s8803_s3] sm:$0xff]  ;;  %v5853_v4 = vld [vmem:[%s8801_s4 + $0xb0] ss:$12 sps:$4 sm:$0xff]   ;;  %v8820_v6 = vmov 0.0  }
   0xe   :  { %5211 = vmatmul.mubr.msk.bf16.gmra.mrb[4].mxu1 %vm93_vm0, %v5797_v7  ;;  %358 = vmatprep.subr.bf16.mxu0 %v5815_v16  ;;  %v5845_v36 = vld [vmem:[%s8801_s4 + $0x8] ss:$12 sps:$4 sm:$0xff]   ;;  %v6535_v40 = vpack.c.bf16 %v6531_v39, %v6531_v39  ;;  %v4641_v42 = vld [vmem:[%s8804_s2] ss:$0 sm:$0xff]  ;;  %v5848_v58 = vld [vmem:[%s8801_s4 + $0x38] ss:$12 sps:$4 sm:$0xff]  }
   0xf   :  { %699 = vmatpush1.bf16.msra.mxu1 %v5817_v17  ;;  %v5846_v37 = vld [vmem:[%s8802_s5 + $0xa8] ss:$12 sps:$4 sm:$0xff]   ;;  %726 = vmatprep.mubr.bf16.mxu1 %v8818_v38  ;;  %v5847_v52 = vld [vmem:[%s8801_s4 + $0x20] ss:$12 sps:$4 sm:$0xff]   ;;  %v5852_v3 = vld [vmem:[%s8801_s4 + $0x98] ss:$12 sps:$4 sm:$0xff]  }
  0x10   :  { %700 = vmatprep.subr.bf16.mxu1 %v5819_v19  ;;  %v5850_v1 = vld [vmem:[%s8801_s4 + $0x68] ss:$12 sps:$4 sm:$0xff]   ;;  %v5851_v2 = vld [vmem:[%s8801_s4 + $0x80] ss:$12 sps:$4 sm:$0xff]   ;;  %v6583_v8 = vld [vmem:[%s8802_s5 + $0x38] ss:$12 sps:$4 sm:$0xff]  }
  0x11   :  { %359 = vmatpush1.bf16.msra.mxu0 %v5818_v18  ;;  %v6569_v5 = vld [vmem:[%s8802_s5 + $0x8] ss:$12 sps:$4 sm:$0xff]   ;;  %v6576_v7 = vld [vmem:[%s8802_s5 + $0x20] ss:$12 sps:$4 sm:$0xff]   ;;  %v6590_v9 = vld [vmem:[%s8802_s5 + $0x50] ss:$12 sps:$4 sm:$0xff]  }
  0x12   :  { %360 = vmatprep.subr.bf16.mxu0 %v5821_v20  ;;  %v6599_v10 = vld [vmem:[%s8802_s5 + $0x68] ss:$12 sps:$4 sm:$0xff]   ;;  %v6606_v11 = vld [vmem:[%s8802_s5 + $0x80] ss:$12 sps:$4 sm:$0xff]   ;;  %v6613_v12 = vld [vmem:[%s8802_s5 + $0x98] ss:$12 sps:$4 sm:$0xff]  }
  0x13   :  { %701 = vmatpush1.bf16.msra.mxu1 %v5823_v21  ;;  %v6620_v13 = vld [vmem:[%s8802_s5 + $0xb0] ss:$12 sps:$4 sm:$0xff]   ;;  %v6635_v18 = vld [vmem:[%s8805_s8] ss:$12 sps:$4 sm:$0xff]   ;;  %v5865_v20 = vld [vmem:[%s8805_s8 + $0x8] ss:$12 sps:$4 sm:$0xff]  }
  0x14   :  { %702 = vmatprep.subr.bf16.mxu1 %v5825_v23  ;;  %v6640_v19 = vld [vmem:[%s8805_s8 + $0x4] ss:$12 sps:$4 sm:$0xff]   ;;  %v5869_v23 = vld [vmem:[%s8805_s8 + $0x20] ss:$12 sps:$4 sm:$0xff]  }
  0x15   :  { %361 = vmatpush1.bf16.msra.mxu0 %v5824_v22  ;;  %v6649_v21 = vld [vmem:[%s8805_s8 + $0x18] ss:$12 sps:$4 sm:$0xff]   ;;  %v6654_v22 = vld [vmem:[%s8805_s8 + $0x1c] ss:$12 sps:$4 sm:$0xff]  }
  0x16   :  { %362 = vmatprep.subr.bf16.mxu0 %v5827_v24  ;;  %v6665_v24 = vld [vmem:[%s8805_s8 + $0x34] ss:$12 sps:$4 sm:$0xff]  }
  0x17   :  { %703 = vmatpush1.bf16.msra.mxu1 %v5829_v25  ;;  %v6670_v25 = vld [vmem:[%s8805_s8 + $0x30] ss:$12 sps:$4 sm:$0xff]  }
  0x18   :  { %704 = vmatprep.subr.bf16.mxu1 %v5831_v27  ;;  %v6682_v27 = vld [vmem:[%s8805_s8 + $0x4c] ss:$12 sps:$4 sm:$0xff]  }
  0x19   :  { %363 = vmatpush1.bf16.msra.mxu0 %v5830_v26  ;;  %v5873_v26 = vld [vmem:[%s8805_s8 + $0x38] ss:$12 sps:$4 sm:$0xff]  }
  0x1a   :  { %364 = vmatprep.subr.bf16.mxu0 %v5833_v28  ;;  %v6688_v28 = vld [vmem:[%s8805_s8 + $0x48] ss:$12 sps:$4 sm:$0xff]  }
  0x1b   :  { %705 = vmatpush1.bf16.msra.mxu1 %v5835_v29  ;;  %v5877_v29 = vld [vmem:[%s8805_s8 + $0x50] ss:$12 sps:$4 sm:$0xff]  }
  0x1c   :  { %706 = vmatprep.subr.bf16.mxu1 %v5837_v31  ;;  %v6704_v31 = vld [vmem:[%s8805_s8 + $0x60] ss:$12 sps:$4 sm:$0xff]  }
  0x1d   :  { %365 = vmatpush1.bf16.msra.mxu0 %v5836_v30  ;;  %v6698_v30 = vld [vmem:[%s8805_s8 + $0x64] ss:$12 sps:$4 sm:$0xff]  }
  0x1e   :  { %366 = vmatprep.subr.bf16.mxu0 %v5839_v32  ;;  %v5881_v32 = vld [vmem:[%s8805_s8 + $0x68] ss:$12 sps:$4 sm:$0xff]  }
  0x1f   :  { %707 = vmatpush1.bf16.msra.mxu1 %v5841_v33  ;;  %v6713_v33 = vld [vmem:[%s8805_s8 + $0x7c] ss:$12 sps:$4 sm:$0xff]  }
  0x20   :  { %708 = vmatprep.subr.bf16.mxu1 %v5843_v35  ;;  %v5885_v35 = vld [vmem:[%s8805_s8 + $0x80] ss:$12 sps:$4 sm:$0xff]  }
  0x21   :  { %367 = vmatpush1.bf16.msra.mxu0 %v5842_v34  ;;  %v6719_v34 = vld [vmem:[%s8805_s8 + $0x78] ss:$12 sps:$4 sm:$0xff]  }
  0x22   :  { %5214 = vmatprep.subr.bf16.mxu0 %v5845_v36 }
  0x23   :  { %709 = vmatpush1.bf16.msra.mxu1 %v5846_v37  ;;  %v6734_v37 = vld [vmem:[%s8805_s8 + $0x90] ss:$12 sps:$4 sm:$0xff]  }
  0x24   :  { %1005 = vmatprep.subr.bf16.mxu1 %v6640_v19 }
  0x26   :  { %727 = vmatmul.mubr.bf16.vlgmr.msra.gmra.mrb[8].mxu1 %v6535_v40 }
  0x27   :  { %1037 = vmatprep.mubr.bf16.mxu1 %v8818_v38  ;;  %1006 = vmatpush1.bf16.msra.mxu1 %v6635_v18 }
  0x28   :  { %1007 = vmatprep.subr.bf16.mxu1 %v6654_v22 }
  0x2b   :  { %1008 = vmatpush1.bf16.msra.mxu1 %v6649_v21 }
  0x2c   :  { %1009 = vmatprep.subr.bf16.mxu1 %v6665_v24 }
  0x2f   :  { %1010 = vmatpush1.bf16.msra.mxu1 %v6670_v25 }
  0x30   :  { %1011 = vmatprep.subr.bf16.mxu1 %v6682_v27 }
  0x33   :  { %1012 = vmatpush1.bf16.msra.mxu1 %v6688_v28 }
  0x34   :  { %1013 = vmatprep.subr.bf16.mxu1 %v6698_v30 }
  0x37   :  { %1014 = vmatpush1.bf16.msra.mxu1 %v6704_v31 }
  0x38   :  { %1015 = vmatprep.subr.bf16.mxu1 %v6713_v33 }
  0x3b   :  { %1016 = vmatpush1.bf16.msra.mxu1 %v6719_v34 }
  0xd9   :  { %v5208_v41 = vpop.f32.mrb[0].mxu1 }
  0xda   :  { %v140_v43 = vpop.f32.mrb[1].mxu1  ;;  %v149_v45 = vadd.f32 %v5208_v41, %v4641_v42  ;;  %v5889_v41 = vld [vmem:[%s8805_s8 + $0x98] ss:$12 sps:$4 sm:$0xff]  }
  0xdb   :  { %v5209_v44 = vpop.f32.mrb[2].mxu1  ;;  %v141_v48 = vadd.f32 %v4641_v42, %v140_v43  ;;  %v6750_v43 = vld [vmem:[%s8805_s8 + $0xa8] ss:$12 sps:$4 sm:$0xff]  }
  0xdc   :  { %v152_v46 = vadd.f32 %v5209_v44, %v4641_v42  ;;  %v143_v47 = vpop.f32.mrb[3].mxu1  ;;  %v5893_v44 = vld [vmem:[%s8805_s8 + $0xb0] ss:$12 sps:$4 sm:$0xff]  }
  0xdd   :  { %v144_v49 = vadd.f32 %v4641_v42, %v143_v47 }
  0xde   :  { %v172_v50 = vpack.c.bf16 %v152_v46, %v149_v45  ;;  %v6758_v45 = vld [vmem:[%s8806_s9 + $0x4] ss:$12 sps:$4 sm:$0xff]   ;;  %v209_v46 = vlaneseq }
  0xdf   :  { %v171_v51 = vpack.c.bf16 %v144_v49, %v141_v48  ;;  %v207_v48 = vld [vmem:[%s8807_s6] sm:$0x7] }
  0xe0   :  { %v6766_v47 = vshrl.u32 %v209_v46, 7 }
  0xe1   :  { %385 = vmatmul.mubr.bf16.vlgmr.msra.gmra.mrb[0].mxu0 %v171_v51  ;;  %v5212_v53 = vpop.f32.mrb[4].mxu1 }
  0xe2   :  { %5215 = vmatpush3.bf16.msra.mxu0 %v5845_v36  ;;  %v165_v54 = vadd.f32 %v5212_v53, %v4641_v42  ;;  %v156_v55 = vpop.f32.mrb[5].mxu1  ;;  %394 = vmatprep.mubr.bf16.mxu0 %v8818_v38  ;;  %v6729_v36 = vld [vmem:[%s8805_s8 + $0x94] ss:$12 sps:$4 sm:$0xff]   ;;  %v8817_v49 = vsub.s32 0, %v6766_v47 }
  0xe3   :  { %5216 = vmatprep.subr.bf16.mxu0 %v5847_v52  ;;  %v157_v56 = vadd.f32 %v4641_v42, %v156_v55  ;;  %v5213_v57 = vpop.f32.mrb[6].mxu1  ;;  %1017 = vmatprep.subr.bf16.mxu1 %v6729_v36 }
  0xe4   :  { %v168_v59 = vadd.f32 %v5213_v57, %v4641_v42  ;;  %v159_v60 = vpop.f32.mrb[7].mxu1  ;;  %1018 = vmatpush1.bf16.msra.mxu1 %v6734_v37 }
  0xe5   :  { %v160_v61 = vadd.f32 %v4641_v42, %v159_v60  ;;  %v6742_v42 = vld [vmem:[%s8805_s8 + $0xac] ss:$12 sps:$4 sm:$0xff]  }
  0xe6   :  { %5217 = vmatpush3.bf16.msra.mxu0 %v5847_v52  ;;  %v174_v62 = vpack.c.bf16 %v168_v59, %v165_v54  ;;  %1019 = vmatprep.subr.bf16.mxu1 %v6742_v42 }
  0xe7   :  { %5218 = vmatprep.subr.bf16.mxu0 %v5848_v58  ;;  %v173_v63 = vpack.c.bf16 %v160_v61, %v157_v56 }
  0xe8   :  { %1020 = vmatpush1.bf16.msra.mxu1 %v6750_v43 }
  0xe9   :  { %395 = vmatmul.mubr.bf16.gmra.mrb[4].mxu0 %v172_v50  ;;  %1166 = vmatprep.subr.bf16.mxu1 %v6758_v45 }
  0xea   :  { %5219 = vmatpush3.bf16.msra.mxu0 %v5848_v58  ;;  %404 = vmatprep.mubr.bf16.mxu0 %v8818_v38 }
  0xeb   :  { %5220 = vmatprep.subr.bf16.mxu0 %v5849_v0 }
  0xee   :  { %5221 = vmatpush3.bf16.msra.mxu0 %v5849_v0 }
  0xef   :  { %5222 = vmatprep.subr.bf16.mxu0 %v5850_v1 }
  0xf1   :  { %405 = vmatmul.mubr.bf16.gmra.mrb[8].mxu0 %v173_v63 }
  0xf2   :  { %5223 = vmatpush3.bf16.msra.mxu0 %v5850_v1  ;;  %414 = vmatprep.mubr.bf16.mxu0 %v8818_v38 }
  0xf3   :  { %5224 = vmatprep.subr.bf16.mxu0 %v5851_v2 }
  0xf6   :  { %5225 = vmatpush3.bf16.msra.mxu0 %v5851_v2 }
  0xf7   :  { %5226 = vmatprep.subr.bf16.mxu0 %v5852_v3 }
  0xf9   :  { %415 = vmatmul.mubr.bf16.gmra.mrb[12].mxu0 %v174_v62  ;;  %v6628_v14 = vpop.f32.mrb[8].mxu1 }
  0xfa   :  { %5227 = vmatpush3.bf16.msra.mxu0 %v5852_v3  ;;  %5230 = vmatprep.mubr.bf16.mxu0 %v171_v51  ;;  %v6630_v15 = vpop.f32.mrb[9].mxu1  ;;  %v212_v51 = vrot.slane %v207_v48, %v8817_v49 }
  0xfb   :  { %5228 = vmatprep.subr.bf16.mxu0 %v5853_v4  ;;  %v732_v16 = vpop.f32.mrb[10].mxu1 }
  0xfc   :  { %v733_v17 = vpop.f32.mrb[11].mxu1 }
  0xfe   :  { %5229 = vmatpush3.bf16.msra.mxu0 %v5853_v4 }
  0xff   :  { %5238 = vmatprep.subr.bf16.mxu0 %v8820_v6 }
 0x101   :  { %5231 = vmatmul.mubr.bf16.vlgmr.msra.gmra.mrb[16].mxu0 %v172_v50  ;;  %v8816_v50 = vsub.s32 1, %v6766_v47 }
 0x102   :  { %5239 = vmatpush3.bf16.msra.mxu0 %v6569_v5  ;;  %5234 = vmatprep.mubr.bf16.mxu0 %v173_v63 }
 0x103   :  { %5240 = vmatprep.subr.bf16.mxu0 %v8820_v6  ;;  %v216_v52 = vrot.slane %v207_v48, %v8816_v50 }
 0x106   :  { %5241 = vmatpush3.bf16.msra.mxu0 %v6576_v7 }
 0x107   :  { %5242 = vmatprep.subr.bf16.mxu0 %v8820_v6 }
 0x109   :  { %5235 = vmatmul.mubr.bf16.gmra.mrb[20].mxu0 %v174_v62 }
 0x10a   :  { %5243 = vmatpush3.bf16.msra.mxu0 %v6583_v8  ;;  %5254 = vmatprep.mubr.msk.bf16.mxu0 %vm6327_vm1, %v8820_v6 }
 0x10b   :  { %5244 = vmatprep.subr.bf16.mxu0 %v8820_v6 }
 0x10e   :  { %5245 = vmatpush3.bf16.msra.mxu0 %v6590_v9 }
 0x10f   :  { %5246 = vmatprep.subr.bf16.mxu0 %v8820_v6 }
 0x112   :  { %5247 = vmatpush3.bf16.msra.mxu0 %v6599_v10 }
 0x113   :  { %5248 = vmatprep.subr.bf16.mxu0 %v8820_v6 }
 0x116   :  { %5249 = vmatpush3.bf16.msra.mxu0 %v6606_v11 }
 0x117   :  { %5250 = vmatprep.subr.bf16.mxu0 %v8820_v6 }
 0x11a   :  { %5251 = vmatpush3.bf16.msra.mxu0 %v6613_v12 }
 0x11b   :  { %5252 = vmatprep.subr.bf16.mxu0 %v8820_v6 }
 0x11e   :  { %5253 = vmatpush3.bf16.msra.mxu0 %v6620_v13 }
 0x11f   :  { %5258 = vmatprep.subr.bf16.mxu0 %v8820_v6 }
 0x121   :  { %5255 = vmatmul.mubr.bf16.vlgmr.msra.gmra.mrb[24].mxu0 %v6535_v40 }
 0x122   :  { %5274 = vmatprep.mubr.msk.bf16.mxu0 %vm6327_vm1, %v8820_v6  ;;  %5259 = vmatpush3.bf16.msra.mxu0 %v5865_v20 }
 0x123   :  { %5260 = vmatprep.subr.bf16.mxu0 %v8820_v6 }
 0x126   :  { %5261 = vmatpush3.bf16.msra.mxu0 %v5869_v23 }
 0x127   :  { %5262 = vmatprep.subr.bf16.mxu0 %v8820_v6 }
 0x12a   :  { %5263 = vmatpush3.bf16.msra.mxu0 %v5873_v26 }
 0x12b   :  { %5264 = vmatprep.subr.bf16.mxu0 %v8820_v6 }
 0x12e   :  { %5265 = vmatpush3.bf16.msra.mxu0 %v5877_v29 }
 0x12f   :  { %5266 = vmatprep.subr.bf16.mxu0 %v8820_v6 }
 0x132   :  { %5267 = vmatpush3.bf16.msra.mxu0 %v5881_v32 }
 0x133   :  { %5268 = vmatprep.subr.bf16.mxu0 %v8820_v6 }
 0x136   :  { %5269 = vmatpush3.bf16.msra.mxu0 %v5885_v35 }
 0x137   :  { %5270 = vmatprep.subr.bf16.mxu0 %v8820_v6 }
 0x13a   :  { %5271 = vmatpush3.bf16.msra.mxu0 %v5889_v41 }
 0x13b   :  { %5272 = vmatprep.subr.bf16.mxu0 %v8820_v6 }
 0x13e   :  { %5273 = vmatpush3.bf16.msra.mxu0 %v5893_v44 }
 0x13f   :  { %5278 = vmatprep.subr.bf16.mxu0 %v8820_v6 }
 0x1b4   :  { %v386_v53 = vpop.f32.mrb[0].mxu0 }
 0x1b5   :  { %v387_v54 = vadd.f32 %v386_v53, %v212_v51  ;;  %v388_v55 = vpop.f32.mrb[1].mxu0  ;;  %v8815_v53 = vsub.s32 2, %v6766_v47 }
 0x1b6   :  { %v389_v56 = vadd.f32 %v388_v55, %v216_v52  ;;  %v390_v57 = vpop.f32.mrb[2].mxu0 }
 0x1b7   :  { %v6777_v58 = vadd.f32 %v390_v57, %v212_v51  ;;  %v735_v59 = vadd.f32 %v6628_v14, %v387_v54  ;;  %v392_v60 = vpop.f32.mrb[3].mxu0 }
 0x1b8   :  { %v6780_v61 = vadd.f32 %v392_v60, %v216_v52  ;;  %v736_v62 = vadd.f32 %v6630_v15, %v389_v56 }
 0x1ba   :  { %v4694_v50 = vmul.f32 -1.442695, %v736_v62 }
 0x1bc   :  { %v396_v63 = vpop.f32.mrb[4].mxu0 }
 0x1bd   :  { %v6783_v0 = vadd.f32 %v396_v63, %v212_v51  ;;  %v398_v1 = vpop.f32.mrb[5].mxu0  ;;  %v220_v63 = vrot.slane %v207_v48, %v8815_v53 }
 0x1be   :  { %v6785_v2 = vadd.f32 %v398_v1, %v216_v52  ;;  %v400_v3 = vpop.f32.mrb[6].mxu0 }
 0x1bf   :  { %8908 = vst [vmem:[#allocation4_spill] sm:$0xff] %v6783_v0  ;;  %v6787_v4 = vadd.f32 %v400_v3, %v212_v51  ;;  %v402_v16 = vpop.f32.mrb[7].mxu0  ;;  %v7058_v0 = vld [vmem:[%s8802_s5 + $0x60] ss:$12 sps:$4 sm:$0xff]  }
 0x1c0   :  { %8909 = vst [vmem:[#allocation5_spill] sm:$0xff] %v6785_v2  ;;  %v6789_v17 = vadd.f32 %v402_v16, %v216_v52  ;;  %v7044_v2 = vld [vmem:[%s8802_s5 + $0x48] ss:$12 sps:$4 sm:$0xff]  }
 0x1c1   :  { %8910 = vst [vmem:[#allocation6_spill] sm:$0xff] %v6787_v4  ;;  %v7006_v4 = vld [vmem:[%s8802_s5 + $0x1c] ss:$12 sps:$4 sm:$0xff]  }
 0x1c2   :  { %8911 = vst [vmem:[#allocation7_spill] sm:$0xff] %v6789_v17  ;;  %v6999_v17 = vld [vmem:[%s8802_s5] ss:$12 sps:$4 sm:$0xff]  }
 0x1c4   :  { %v406_v20 = vpop.f32.mrb[8].mxu0 }
 0x1c5   :  { %v6791_v23 = vadd.f32 %v406_v20, %v212_v51  ;;  %v408_v14 = vpop.f32.mrb[9].mxu0 }
 0x1c6   :  { %v6793_v26 = vadd.f32 %v408_v14, %v216_v52  ;;  %v410_v29 = vpop.f32.mrb[10].mxu0  ;;  %v4693_v14 = vmul.f32 -1.442695, %v735_v59 }
 0x1c7   :  { %8912 = vst [vmem:[#allocation8_spill] sm:$0xff] %v6791_v23  ;;  %v6795_v15 = vadd.f32 %v410_v29, %v212_v51  ;;  %v412_v32 = vpop.f32.mrb[11].mxu0  ;;  %v6981_v23 = vld [vmem:[%s8806_s9 + $0xb0] ss:$12 sps:$4 sm:$0xff]  }
 0x1c8   :  { %8913 = vst [vmem:[#allocation9_spill] sm:$0xff] %v6793_v26  ;;  %v6797_v35 = vadd.f32 %v412_v32, %v216_v52  ;;  %6038 = vpow2.f32 %v4693_v14  ;;  %v6827_v14 = vld [vmem:[%s8808_s7] ss:$0 sm:$0xff]  ;;  %v6976_v26 = vld [vmem:[%s8806_s9 + $0xa8] ss:$12 sps:$4 sm:$0xff]  }
 0x1c9   :  { %8914 = vst [vmem:[#allocation10_spill] sm:$0xff] %v6795_v15  ;;  %6040 = vpow2.f32 %v4694_v50  ;;  %v6962_v15 = vld [vmem:[%s8806_s9 + $0x98] ss:$12 sps:$4 sm:$0xff]  }
 0x1ca   :  { %8915 = vst [vmem:[#allocation11_spill] sm:$0xff] %v6797_v35  ;;  %v6957_v35 = vld [vmem:[%s8806_s9 + $0x90] ss:$12 sps:$4 sm:$0xff]  }
 0x1cc   :  { %v416_v41 = vpop.f32.mrb[12].mxu0 }
 0x1cd   :  { %v6799_v44 = vadd.f32 %v416_v41, %v212_v51  ;;  %v418_v46 = vpop.f32.mrb[13].mxu0 }
 0x1ce   :  { %v6802_v54 = vadd.f32 %v418_v46, %v216_v52  ;;  %v420_v55 = vpop.f32.mrb[14].mxu0 }
 0x1cf   :  { %8916 = vst [vmem:[#allocation12_spill] sm:$0xff] %v6799_v44  ;;  %v6804_v56 = vadd.f32 %v420_v55, %v212_v51  ;;  %v422_v57 = vpop.f32.mrb[15].mxu0  ;;  %v6943_v44 = vld [vmem:[%s8806_s9 + $0x80] ss:$12 sps:$4 sm:$0xff]  }
 0x1d0   :  { %8917 = vst [vmem:[#allocation13_spill] sm:$0xff] %v6802_v54  ;;  %v6806_v60 = vadd.f32 %v422_v57, %v216_v52 }
 0x1d1   :  { %8918 = vst [vmem:[#allocation14_spill] sm:$0xff] %v6804_v56 }
 0x1d2   :  { %8919 = vst [vmem:[#allocation15_spill] sm:$0xff] %v6806_v60  ;;  %v6039_v59 = vpop.eup %6038 }
 0x1d4   :  { %v5232_v1 = vpop.f32.mrb[16].mxu0 }
 0x1d5   :  { %v6810_v3 = vadd.f32 %v5232_v1, %v220_v63  ;;  %v459_v16 = vpop.f32.mrb[17].mxu0 }
 0x1d6   :  { %v5233_v20 = vpop.f32.mrb[18].mxu0 }
 0x1d7   :  { %8920 = vst [vmem:[#allocation16_spill] sm:$0xff] %v6810_v3  ;;  %v6812_v29 = vadd.f32 %v5233_v20, %v220_v63  ;;  %v462_v32 = vpop.f32.mrb[19].mxu0  ;;  %v743_v20 = vadd.f32 1.0, %v6039_v59  ;;  %v7030_v3 = vld [vmem:[%s8802_s5 + $0x30] ss:$12 sps:$4 sm:$0xff]  }
 0x1d8   :  { %v6814_v41 = vadd.f32 %v462_v32, %v220_v63  ;;  %v6041_v32 = vpop.eup %6040 }
 0x1d9   :  { %8921 = vst [vmem:[#allocation17_spill] sm:$0xff] %v6812_v29  ;;  %6042 = vrcp.f32 %v743_v20  ;;  %v6990_v29 = vld [vmem:[%s8802_s5 + $0x4] ss:$12 sps:$4 sm:$0xff]  }
 0x1dc   :  { %v5236_v51 = vpop.f32.mrb[20].mxu0 }
 0x1dd   :  { %v6816_v46 = vadd.f32 %v5236_v51, %v220_v63  ;;  %v475_v52 = vpop.f32.mrb[21].mxu0  ;;  %v744_v51 = vadd.f32 1.0, %v6041_v32  ;;  %v6836_v32 = vld [vmem:[%s8806_s9] ss:$12 sps:$4 sm:$0xff]  }
 0x1de   :  { %v6818_v55 = vadd.f32 %v475_v52, %v220_v63  ;;  %v5237_v57 = vpop.f32.mrb[22].mxu0 }
 0x1df   :  { %8922 = vst [vmem:[#allocation18_spill] sm:$0xff] %v6816_v46  ;;  %v6820_v48 = vadd.f32 %v5237_v57, %v220_v63  ;;  %v478_v1 = vpop.f32.mrb[23].mxu0  ;;  %6044 = vrcp.f32 %v744_v51  ;;  %v6893_v51 = vld [vmem:[%s8806_s9 + $0x4c] ss:$12 sps:$4 sm:$0xff]  }
 0x1e0   :  { %8923 = vst [vmem:[#allocation19_spill] sm:$0xff] %v6818_v55  ;;  %v6822_v53 = vadd.f32 %v478_v1, %v220_v63  ;;  %v460_v1 = vadd.f32 %v459_v16, %v220_v63  ;;  %v6871_v63 = vld [vmem:[%s8806_s9 + $0x34] ss:$12 sps:$4 sm:$0xff]   ;;  %v8927_v16 = vmov 0   ;;  %v6969_v55 = vld [vmem:[%s8806_s9 + $0xac] ss:$12 sps:$4 sm:$0xff]  }
 0x1e1   :  { %8924 = vst [vmem:[#allocation20_spill] sm:$0xff] %v6820_v48 }
 0x1e2   :  { %8925 = vst [vmem:[#allocation21_spill] sm:$0xff] %v6822_v53  ;;  %v6950_v53 = vld [vmem:[%s8806_s9 + $0x94] ss:$12 sps:$4 sm:$0xff]  }
 0x1e3   :  { %v6043_v38 = vpop.eup %6042 }
 0x1e9   :  { %v6045_v59 = vpop.eup %6044 }
 0x1ea   :  { %v840_v20 = vsub.f32 1.0, %v6045_v59  ;;  %v842_v46 = vmul.f32 %v6045_v59, %v6531_v39  ;;  %v6850_v39 = vld [vmem:[%s8806_s9 + $0x1c] ss:$12 sps:$4 sm:$0xff]  }
 0x1eb   :  { %v6931_v59 = vld [vmem:[%s8806_s9 + $0x7c] ss:$12 sps:$4 sm:$0xff]  }
 0x1f4   :  { %v831_v52 = vpop.f32.mrb[24].mxu0 }
 0x1f5   :  { %v832_v49 = vadd.f32 %v6827_v14, %v831_v52  ;;  %v5256_v57 = vpop.f32.mrb[25].mxu0  ;;  %v6900_v52 = vld [vmem:[%s8806_s9 + $0x48] ss:$12 sps:$4 sm:$0xff]  }
 0x1f6   :  { %v834_v6 = vpop.f32.mrb[26].mxu0  ;;  %v6905_v57 = vld [vmem:[%s8806_s9 + $0x50] ss:$12 sps:$4 sm:$0xff]  }
 0x1f7   :  { %v837_v62 = vmul.f32 %v6043_v38, %v832_v49  ;;  %v5257_v48 = vpop.f32.mrb[27].mxu0  ;;  %v6841_v38 = vld [vmem:[%s8806_s9 + $0x8] ss:$12 sps:$4 sm:$0xff]   ;;  %v6859_v49 = vld [vmem:[%s8806_s9 + $0x18] ss:$12 sps:$4 sm:$0xff]  }
 0x1f8   :  { %v6886_v48 = vld [vmem:[%s8806_s9 + $0x38] ss:$12 sps:$4 sm:$0xff]  }
 0x1f9   :  { %v838_v50 = vadd.f32 %v837_v62, %v460_v1  ;;  %v6912_v1 = vld [vmem:[%s8806_s9 + $0x64] ss:$12 sps:$4 sm:$0xff]   ;;  %v6919_v62 = vld [vmem:[%s8806_s9 + $0x60] ss:$12 sps:$4 sm:$0xff]  }
 0x1fb   :  { %6046 = vtanh.f32 %v838_v50  ;;  %v6924_v50 = vld [vmem:[%s8806_s9 + $0x68] ss:$12 sps:$4 sm:$0xff]  }
 0x205   :  { %v6047_v60 = vpop.eup %6046 }
 0x206   :  { %v841_v56 = vmul.f32 %v6047_v60, %v840_v20  ;;  %v8926_v60 = vmov 0.0   ;;  %v6938_v20 = vld [vmem:[%s8806_s9 + $0x78] ss:$12 sps:$4 sm:$0xff]  }
 0x208   :  { %v6831_v54 = vadd.f32 %v842_v46, %v841_v56  ;;  %v6864_v56 = vld [vmem:[%s8806_s9 + $0x20] ss:$12 sps:$4 sm:$0xff]   ;;  %v6881_v46 = vld [vmem:[%s8806_s9 + $0x30] ss:$12 sps:$4 sm:$0xff]  }
 0x20a   :  { %v6845_v6 = vpack.c.bf16 %v6831_v54, %v6831_v54 }
 0x20c   :  { %1038 = vmatmul.mubr.bf16.vlgmr.msra.gmra.mrb[12].mxu1 %v6845_v6  ;;  %5275 = vmatmul.mubr.bf16.vlgmr.msra.gmra.mrb[28].mxu0 %v6845_v6 }
 0x20d   :  { %1167 = vmatpush1.bf16.msra.mxu1 %v6836_v32  ;;  %5279 = vmatpush3.bf16.msra.mxu0 %v6841_v38 }
 0x20e   :  { %1168 = vmatprep.subr.bf16.mxu1 %v6850_v39  ;;  %5280 = vmatprep.subr.bf16.mxu0 %v8926_v60 }
 0x20f   :  { %1198 = vmatprep.mubr.bf16.mxu1 %v8927_v16  ;;  %5294 = vmatprep.mubr.msk.bf16.mxu0 %vm6327_vm1, %v8926_v60 }
 0x211   :  { %1169 = vmatpush1.bf16.msra.mxu1 %v6859_v49  ;;  %5281 = vmatpush3.bf16.msra.mxu0 %v6864_v56 }
 0x212   :  { %1170 = vmatprep.subr.bf16.mxu1 %v6871_v63  ;;  %5282 = vmatprep.subr.bf16.mxu0 %v8926_v60 }
 0x215   :  { %1171 = vmatpush1.bf16.msra.mxu1 %v6881_v46  ;;  %5283 = vmatpush3.bf16.msra.mxu0 %v6886_v48 }
 0x216   :  { %1172 = vmatprep.subr.bf16.mxu1 %v6893_v51  ;;  %5284 = vmatprep.subr.bf16.mxu0 %v8926_v60 }
 0x219   :  { %1173 = vmatpush1.bf16.msra.mxu1 %v6900_v52  ;;  %5285 = vmatpush3.bf16.msra.mxu0 %v6905_v57 }
 0x21a   :  { %1174 = vmatprep.subr.bf16.mxu1 %v6912_v1  ;;  %5286 = vmatprep.subr.bf16.mxu0 %v8926_v60 }
 0x21d   :  { %1175 = vmatpush1.bf16.msra.mxu1 %v6919_v62  ;;  %5287 = vmatpush3.bf16.msra.mxu0 %v6924_v50 }
 0x21e   :  { %1176 = vmatprep.subr.bf16.mxu1 %v6931_v59  ;;  %5288 = vmatprep.subr.bf16.mxu0 %v8926_v60 }
 0x221   :  { %1177 = vmatpush1.bf16.msra.mxu1 %v6938_v20  ;;  %5289 = vmatpush3.bf16.msra.mxu0 %v6943_v44 }
 0x222   :  { %1178 = vmatprep.subr.bf16.mxu1 %v6950_v53  ;;  %5290 = vmatprep.subr.bf16.mxu0 %v8926_v60 }
 0x225   :  { %1179 = vmatpush1.bf16.msra.mxu1 %v6957_v35  ;;  %5291 = vmatpush3.bf16.msra.mxu0 %v6962_v15 }
 0x226   :  { %1180 = vmatprep.subr.bf16.mxu1 %v6969_v55  ;;  %5292 = vmatprep.subr.bf16.mxu0 %v8926_v60 }
 0x229   :  { %1181 = vmatpush1.bf16.msra.mxu1 %v6976_v26  ;;  %5293 = vmatpush3.bf16.msra.mxu0 %v6981_v23 }
 0x22a   :  { %1320 = vmatprep.subr.bf16.mxu1 %v6990_v29  ;;  %5298 = vmatprep.subr.bf16.mxu0 %v8926_v60 }
 0x22c   :  { %1199 = vmatmul.mubr.bf16.vlgmr.msra.gmra.mrb[12].mxu1 %v6535_v40  ;;  %5295 = vmatmul.mubr.bf16.vlgmr.msra.gmra.mrb[32].mxu0 %v6535_v40  ;;  %v7016_v40 = vld [vmem:[%s8802_s5 + $0x18] ss:$12 sps:$4 sm:$0xff]  }
 0x22d   :  { %1321 = vmatpush1.bf16.msra.mxu1 %v6999_v17  ;;  %5299 = vmatpush3.bf16.msra.mxu0 %v6569_v5  ;;  %v7023_v5 = vld [vmem:[%s8802_s5 + $0x34] ss:$12 sps:$4 sm:$0xff]  }
 0x22e   :  { %1322 = vmatprep.subr.bf16.mxu1 %v7006_v4  ;;  %5300 = vmatprep.subr.bf16.mxu0 %v8926_v60 }
 0x22f   :  { %1352 = vmatprep.mubr.bf16.mxu1 %v8927_v16  ;;  %5314 = vmatprep.mubr.msk.bf16.mxu0 %vm6327_vm1, %v8926_v60 }
 0x231   :  { %1323 = vmatpush1.bf16.msra.mxu1 %v7016_v40  ;;  %5301 = vmatpush3.bf16.msra.mxu0 %v6576_v7  ;;  %v7037_v7 = vld [vmem:[%s8802_s5 + $0x4c] ss:$12 sps:$4 sm:$0xff]  }
 0x232   :  { %1324 = vmatprep.subr.bf16.mxu1 %v7023_v5  ;;  %5302 = vmatprep.subr.bf16.mxu0 %v8926_v60 }
 0x235   :  { %1325 = vmatpush1.bf16.msra.mxu1 %v7030_v3  ;;  %5303 = vmatpush3.bf16.msra.mxu0 %v6583_v8  ;;  %v7051_v8 = vld [vmem:[%s8802_s5 + $0x64] ss:$12 sps:$4 sm:$0xff]  }
 0x236   :  { %1326 = vmatprep.subr.bf16.mxu1 %v7037_v7  ;;  %5304 = vmatprep.subr.bf16.mxu0 %v8926_v60  ;;  %8928 = vst [vmem:[#allocation22_spill] sm:$0xff] %v7051_v8 }
 0x239   :  { %1327 = vmatpush1.bf16.msra.mxu1 %v7044_v2  ;;  %5305 = vmatpush3.bf16.msra.mxu0 %v6590_v9  ;;  %v7065_v9 = vld [vmem:[%s8802_s5 + $0x7c] ss:$12 sps:$4 sm:$0xff]  }
 0x23a   :  { %1328 = vmatprep.subr.bf16.mxu1 %v7051_v8  ;;  %5306 = vmatprep.subr.bf16.mxu0 %v8926_v60  ;;  %8929 = vst [vmem:[#allocation23_spill] sm:$0xff] %v7065_v9  ;;  %v7072_v8 = vld [vmem:[%s8802_s5 + $0x78] ss:$12 sps:$4 sm:$0xff]  }
 0x23b   :  { %8930 = vst [vmem:[#allocation24_spill] sm:$0xff] %v7072_v8 }
 0x23d   :  { %1329 = vmatpush1.bf16.msra.mxu1 %v7058_v0  ;;  %5307 = vmatpush3.bf16.msra.mxu0 %v6599_v10  ;;  %v7079_v10 = vld [vmem:[%s8802_s5 + $0x94] ss:$12 sps:$4 sm:$0xff]  }
 0x23e   :  { %1330 = vmatprep.subr.bf16.mxu1 %v7065_v9  ;;  %5308 = vmatprep.subr.bf16.mxu0 %v8926_v60  ;;  %8931 = vst [vmem:[#allocation25_spill] sm:$0xff] %v7079_v10  ;;  %v7086_v9 = vld [vmem:[%s8802_s5 + $0x90] ss:$12 sps:$4 sm:$0xff]  }
 0x23f   :  { %8932 = vst [vmem:[#allocation26_spill] sm:$0xff] %v7086_v9 }
 0x241   :  { %1331 = vmatpush1.bf16.msra.mxu1 %v7072_v8  ;;  %5309 = vmatpush3.bf16.msra.mxu0 %v6606_v11  ;;  %v7093_v11 = vld [vmem:[%s8802_s5 + $0xac] ss:$12 sps:$4 sm:$0xff]  }
 0x242   :  { %1332 = vmatprep.subr.bf16.mxu1 %v7079_v10  ;;  %5310 = vmatprep.subr.bf16.mxu0 %v8926_v60  ;;  %8933 = vst [vmem:[#allocation27_spill] sm:$0xff] %v7093_v11  ;;  %v7100_v10 = vld [vmem:[%s8802_s5 + $0xa8] ss:$12 sps:$4 sm:$0xff]  }
 0x243   :  { %8934 = vst [vmem:[#allocation28_spill] sm:$0xff] %v7100_v10 }
 0x245   :  { %1333 = vmatpush1.bf16.msra.mxu1 %v7086_v9  ;;  %5311 = vmatpush3.bf16.msra.mxu0 %v6613_v12  ;;  %v5926_v12 = vld [vmem:[%s8805_s8 + $0x8] ss:$12 sps:$4 sm:$0xff]  }
 0x246   :  { %1334 = vmatprep.subr.bf16.mxu1 %v7093_v11  ;;  %5312 = vmatprep.subr.bf16.mxu0 %v8926_v60 }
 0x249   :  { %1335 = vmatpush1.bf16.msra.mxu1 %v7100_v10  ;;  %5313 = vmatpush3.bf16.msra.mxu0 %v6620_v13  ;;  %v5927_v13 = vld [vmem:[%s8805_s8 + $0x20] ss:$12 sps:$4 sm:$0xff]  }
 0x24a   :  { %1583 = vmatprep.subr.bf16.mxu1 %v6640_v19  ;;  %5318 = vmatprep.subr.bf16.mxu0 %v8926_v60  ;;  %v5929_v19 = vld [vmem:[%s8805_s8 + $0x50] ss:$12 sps:$4 sm:$0xff]  }
 0x24c   :  { %1353 = vmatmul.mubr.bf16.vlgmr.msra.gmra.mrb[16].mxu1 %v6845_v6  ;;  %5315 = vmatmul.mubr.bf16.vlgmr.msra.gmra.mrb[36].mxu0 %v6845_v6 }
 0x24d   :  { %1584 = vmatpush1.bf16.msra.mxu1 %v6635_v18  ;;  %1615 = vmatprep.mubr.bf16.mxu1 %v8927_v16  ;;  %v5928_v18 = vld [vmem:[%s8805_s8 + $0x38] ss:$12 sps:$4 sm:$0xff]  }
 0x24e   :  { %1585 = vmatprep.subr.bf16.mxu1 %v6654_v22  ;;  %5334 = vmatprep.mubr.msk.bf16.mxu0 %vm6327_vm1, %v8926_v60  ;;  %v5931_v22 = vld [vmem:[%s8805_s8 + $0x80] ss:$12 sps:$4 sm:$0xff]  }
 0x24f   :  { %5319 = vmatpush3.bf16.msra.mxu0 %v5926_v12 }
 0x250   :  { %5320 = vmatprep.subr.bf16.mxu0 %v8926_v60 }
 0x251   :  { %1586 = vmatpush1.bf16.msra.mxu1 %v6649_v21  ;;  %v5930_v21 = vld [vmem:[%s8805_s8 + $0x68] ss:$12 sps:$4 sm:$0xff]  }
 0x252   :  { %1587 = vmatprep.subr.bf16.mxu1 %v6665_v24  ;;  %v5932_v24 = vld [vmem:[%s8805_s8 + $0x98] ss:$12 sps:$4 sm:$0xff]  }
 0x253   :  { %5321 = vmatpush3.bf16.msra.mxu0 %v5927_v13 }
 0x254   :  { %5322 = vmatprep.subr.bf16.mxu0 %v8926_v60 }
 0x255   :  { %1588 = vmatpush1.bf16.msra.mxu1 %v6670_v25  ;;  %v5933_v25 = vld [vmem:[%s8805_s8 + $0xb0] ss:$12 sps:$4 sm:$0xff]  }
 0x256   :  { %1589 = vmatprep.subr.bf16.mxu1 %v6682_v27 }
 0x257   :  { %5323 = vmatpush3.bf16.msra.mxu0 %v5928_v18 }
 0x258   :  { %5324 = vmatprep.subr.bf16.mxu0 %v8926_v60 }
 0x259   :  { %1590 = vmatpush1.bf16.msra.mxu1 %v6688_v28 }
 0x25a   :  { %1591 = vmatprep.subr.bf16.mxu1 %v6698_v30 }
 0x25b   :  { %5325 = vmatpush3.bf16.msra.mxu0 %v5929_v19 }
 0x25c   :  { %5326 = vmatprep.subr.bf16.mxu0 %v8926_v60 }
 0x25d   :  { %1592 = vmatpush1.bf16.msra.mxu1 %v6704_v31 }
 0x25e   :  { %1593 = vmatprep.subr.bf16.mxu1 %v6713_v33  ;;  %v592_v33 = vld [vmem:[%s8809_s10] sm:$0x7] }
 0x25f   :  { %5327 = vmatpush3.bf16.msra.mxu0 %v5930_v21 }
 0x260   :  { %5328 = vmatprep.subr.bf16.mxu0 %v8926_v60 }
 0x261   :  { %1594 = vmatpush1.bf16.msra.mxu1 %v6719_v34  ;;  %v8935_v34 = vsub.s32 0, %v6766_v47 }
 0x262   :  { %1595 = vmatprep.subr.bf16.mxu1 %v6729_v36 }
 0x263   :  { %5329 = vmatpush3.bf16.msra.mxu0 %v5931_v22  ;;  %v7164_v36 = vrot.slane %v592_v33, %v8935_v34 }
 0x264   :  { %5330 = vmatprep.subr.bf16.mxu0 %v8926_v60 }
 0x265   :  { %1596 = vmatpush1.bf16.msra.mxu1 %v6734_v37  ;;  %8936 = vst [vmem:[#allocation29_spill] sm:$0xff] %v7164_v36 }
 0x266   :  { %1597 = vmatprep.subr.bf16.mxu1 %v6742_v42  ;;  %v8937_v42 = vsub.s32 1, %v6766_v47 }
 0x267   :  { %5331 = vmatpush3.bf16.msra.mxu0 %v5932_v24 }
 0x268   :  { %5332 = vmatprep.subr.bf16.mxu0 %v8926_v60 }
 0x269   :  { %1598 = vmatpush1.bf16.msra.mxu1 %v6750_v43  ;;  %v7168_v43 = vrot.slane %v592_v33, %v8937_v42  ;;  %v8940_v42 = vsub.s32 2, %v6766_v47 }
 0x26a   :  { %1665 = vmatprep.subr.bf16.mxu1 %v6758_v45 }
 0x26b   :  { %5333 = vmatpush3.bf16.msra.mxu0 %v5933_v25  ;;  %8938 = vst [vmem:[#allocation30_spill] sm:$0xff] %v7168_v43 }
 0x26c   :  { %5338 = vmatprep.subr.bf16.mxu0 %v8926_v60 }
 0x2df   :  { %v1080_v27 = vpop.f32.mrb[28].mxu0 }
 0x2e0   :  { %v5276_v28 = vpop.f32.mrb[29].mxu0 }
 0x2e1   :  { %v1083_v30 = vpop.f32.mrb[30].mxu0 }
 0x2e2   :  { %v5277_v31 = vpop.f32.mrb[31].mxu0 }
 0x2ff   :  { %v1200_v37 = vpop.f32.mrb[12].mxu1  ;;  %v1303_v45 = vpop.f32.mrb[32].mxu0 }
 0x300   :  { %v5742_v6 = vadd.f32 %v1200_v37, %v7164_v36  ;;  %v1202_v12 = vpop.f32.mrb[13].mxu1  ;;  %v5296_v13 = vpop.f32.mrb[33].mxu0  ;;  %v7175_v37 = vld [vmem:[%s8810_s11] ss:$0 sm:$0xff] }
 0x301   :  { %v1204_v18 = vpop.f32.mrb[14].mxu1  ;;  %v1306_v19 = vpop.f32.mrb[34].mxu0  ;;  %v5743_v25 = vadd.f32 %v1202_v12, %v7168_v43  ;;  %8939 = vst [vmem:[#allocation31_spill] sm:$0xff] %v7175_v37  ;;  %v7179_v13 = vrot.slane %v592_v33, %v8940_v42 }
 0x302   :  { %v4743_v21 = vmul.f32 -1.442695, %v5742_v6  ;;  %v1205_v22 = vpop.f32.mrb[15].mxu1  ;;  %v5297_v24 = vpop.f32.mrb[35].mxu0  ;;  %v1304_v18 = vadd.f32 %v7175_v37, %v1303_v45 }
 0x303   :  { %v4744_v28 = vmul.f32 -1.442695, %v5743_v25  ;;  %v1081_v19 = vadd.f32 %v1080_v27, %v7179_v13 }
 0x304   :  { %6048 = vpow2.f32 %v4743_v21 }
 0x305   :  { %6050 = vpow2.f32 %v4744_v28 }
 0x30e   :  { %v6049_v30 = vpop.eup %6048 }
 0x30f   :  { %v1215_v31 = vadd.f32 1.0, %v6049_v30  ;;  %v6051_v34 = vpop.eup %6050 }
 0x310   :  { %v1216_v6 = vadd.f32 1.0, %v6051_v34 }
 0x311   :  { %6052 = vrcp.f32 %v1215_v31 }
 0x312   :  { %6054 = vrcp.f32 %v1216_v6 }
 0x31b   :  { %v6053_v12 = vpop.eup %6052 }
 0x31c   :  { %v1309_v21 = vmul.f32 %v6053_v12, %v1304_v18  ;;  %v6055_v37 = vpop.eup %6054 }
 0x31d   :  { %v1312_v6 = vsub.f32 1.0, %v6055_v37 }
 0x31e   :  { %v1310_v22 = vadd.f32 %v1309_v21, %v1081_v19 }
 0x31f   :  { %v1354_v24 = vpop.f32.mrb[16].mxu1  ;;  %v1409_v25 = vpop.f32.mrb[36].mxu0 }
 0x320   :  { %6056 = vtanh.f32 %v1310_v22  ;;  %v1361_v28 = vadd.f32 %v1354_v24, %v6777_v58  ;;  %v1356_v30 = vpop.f32.mrb[17].mxu1  ;;  %v5316_v31 = vpop.f32.mrb[37].mxu0  ;;  %v6214_v58 = vld [vmem:[%s8803_s3] sm:$0xff] }
 0x321   :  { %v1362_v47 = vadd.f32 %v1356_v30, %v6780_v61  ;;  %v1358_v33 = vpop.f32.mrb[18].mxu1  ;;  %v1412_v42 = vpop.f32.mrb[38].mxu0  ;;  %v1314_v19 = vmul.f32 %v6214_v58, %v6055_v37  ;;  %v8942_v58 = vld [vmem:[#allocation22_spill] sm:$0xff] }
 0x322   :  { %v4753_v34 = vmul.f32 -1.442695, %v1361_v28  ;;  %v1359_v43 = vpop.f32.mrb[19].mxu1  ;;  %v5317_v45 = vpop.f32.mrb[39].mxu0  ;;  %v1410_v28 = vadd.f32 %v6827_v14, %v1409_v25  ;;  %v7254_v25 = vld [vmem:[%s8802_s5 + $0x20] ss:$12 sps:$4 sm:$0xff]  }
 0x323   :  { %v4754_v27 = vmul.f32 -1.442695, %v1362_v47 }
 0x324   :  { %6058 = vpow2.f32 %v4753_v34 }
 0x325   :  { %6060 = vpow2.f32 %v4754_v27 }
 0x32a   :  { %v6057_v18 = vpop.eup %6056 }
 0x32b   :  { %v1313_v12 = vmul.f32 %v6057_v18, %v1312_v6  ;;  %v7263_v18 = vld [vmem:[%s8802_s5 + $0x38] ss:$12 sps:$4 sm:$0xff]  }
 0x32d   :  { %v7188_v21 = vadd.f32 %v1314_v19, %v1313_v12  ;;  %v7272_v12 = vld [vmem:[%s8802_s5 + $0x50] ss:$12 sps:$4 sm:$0xff]   ;;  %v7281_v19 = vld [vmem:[%s8802_s5 + $0x68] ss:$12 sps:$4 sm:$0xff]  }
 0x32e   :  { %v6059_v61 = vpop.eup %6058  ;;  %8943 = vst [vmem:[#allocation22_spill] sm:$0xff] %v7281_v19 }
 0x32f   :  { %8941 = vst [vmem:[#allocation32_spill] sm:$0xff] %v7188_v21  ;;  %v1369_v22 = vadd.f32 1.0, %v6059_v61  ;;  %v6061_v24 = vpop.eup %6060  ;;  %v8944_v61 = vld [vmem:[#allocation23_spill] sm:$0xff] }
 0x330   :  { %v1370_v43 = vadd.f32 1.0, %v6061_v24  ;;  %v8946_v24 = vld [vmem:[#allocation25_spill] sm:$0xff] }
 0x331   :  { %6062 = vrcp.f32 %v1369_v22  ;;  %v7290_v22 = vld [vmem:[%s8802_s5 + $0x80] ss:$12 sps:$4 sm:$0xff]  }
 0x332   :  { %6064 = vrcp.f32 %v1370_v43  ;;  %8945 = vst [vmem:[#allocation33_spill] sm:$0xff] %v7290_v22  ;;  %v7299_v43 = vld [vmem:[%s8802_s5 + $0x98] ss:$12 sps:$4 sm:$0xff]  }
 0x333   :  { %8947 = vst [vmem:[#allocation34_spill] sm:$0xff] %v7299_v43 }
 0x33b   :  { %v6063_v30 = vpop.eup %6062 }
 0x33c   :  { %v1415_v31 = vmul.f32 %v6063_v30, %v1410_v28  ;;  %v6065_v33 = vpop.eup %6064  ;;  %v7308_v28 = vld [vmem:[%s8802_s5 + $0xb0] ss:$12 sps:$4 sm:$0xff]  }
 0x33d   :  { %v1418_v42 = vsub.f32 1.0, %v6065_v33  ;;  %v1420_v37 = vmul.f32 %v6065_v33, %v6831_v54  ;;  %v1664_v54 = vpack.c.bf16 %v7188_v21, %v7188_v21  ;;  %8948 = vst [vmem:[#allocation35_spill] sm:$0xff] %v7308_v28  ;;  %v7320_v30 = vld [vmem:[%s8805_s8 + $0x4] ss:$12 sps:$4 sm:$0xff]   ;;  %v7335_v33 = vld [vmem:[%s8805_s8 + $0x1c] ss:$12 sps:$4 sm:$0xff]  }
 0x33e   :  { %v1416_v47 = vadd.f32 %v1415_v31, %v6814_v41  ;;  %v7242_v41 = vld [vmem:[%s8802_s5 + $0x8] ss:$12 sps:$4 sm:$0xff]   ;;  %8949 = vst [vmem:[#allocation36_spill] sm:$0xff] %v7320_v30  ;;  %v7325_v31 = vld [vmem:[%s8805_s8] ss:$12 sps:$4 sm:$0xff]   ;;  %8951 = vst [vmem:[#allocation38_spill] sm:$0xff] %v7335_v33 }
 0x33f   :  { %8950 = vst [vmem:[#allocation37_spill] sm:$0xff] %v7325_v31 }
 0x340   :  { %6066 = vtanh.f32 %v1416_v47  ;;  %v5937_v47 = vld [vmem:[%s8805_s8 + $0x8] ss:$12 sps:$4 sm:$0xff]  }
 0x34a   :  { %v6067_v34 = vpop.eup %6066 }
 0x34b   :  { %v1419_v45 = vmul.f32 %v6067_v34, %v1418_v42  ;;  %v7341_v42 = vld [vmem:[%s8805_s8 + $0x18] ss:$12 sps:$4 sm:$0xff]   ;;  %v5941_v34 = vld [vmem:[%s8805_s8 + $0x20] ss:$12 sps:$4 sm:$0xff]  }
 0x34c   :  { %8952 = vst [vmem:[#allocation39_spill] sm:$0xff] %v7341_v42 }
 0x34d   :  { %v7193_v27 = vadd.f32 %v1420_v37, %v1419_v45  ;;  %v7351_v45 = vld [vmem:[%s8805_s8 + $0x34] ss:$12 sps:$4 sm:$0xff]   ;;  %v7357_v37 = vld [vmem:[%s8805_s8 + $0x30] ss:$12 sps:$4 sm:$0xff]  }
 0x34e   :  { %8953 = vst [vmem:[#allocation40_spill] sm:$0xff] %v7351_v45  ;;  %8954 = vst [vmem:[#allocation41_spill] sm:$0xff] %v7357_v37 }
 0x34f   :  { %v7197_v6 = vpack.c.bf16 %v7193_v27, %v7193_v27 }
 0x351   :  { %1616 = vmatmul.mubr.bf16.vlgmr.msra.gmra.mrb[20].mxu1 %v7197_v6  ;;  %5335 = vmatmul.mubr.bf16.vlgmr.msra.gmra.mrb[40].mxu0 %v7197_v6 }
 0x352   :  { %1666 = vmatpush1.bf16.msra.mxu1 %v6836_v32  ;;  %5339 = vmatpush3.bf16.msra.mxu0 %v6841_v38 }
 0x353   :  { %1667 = vmatprep.subr.bf16.mxu1 %v6850_v39  ;;  %5340 = vmatprep.subr.bf16.mxu0 %v8926_v60 }
 0x354   :  { %1697 = vmatprep.mubr.bf16.mxu1 %v8927_v16  ;;  %5354 = vmatprep.mubr.msk.bf16.mxu0 %vm6327_vm1, %v8926_v60 }
 0x356   :  { %1668 = vmatpush1.bf16.msra.mxu1 %v6859_v49  ;;  %5341 = vmatpush3.bf16.msra.mxu0 %v6864_v56 }
 0x357   :  { %1669 = vmatprep.subr.bf16.mxu1 %v6871_v63  ;;  %5342 = vmatprep.subr.bf16.mxu0 %v8926_v60 }
 0x35a   :  { %1670 = vmatpush1.bf16.msra.mxu1 %v6881_v46  ;;  %5343 = vmatpush3.bf16.msra.mxu0 %v6886_v48 }
 0x35b   :  { %1671 = vmatprep.subr.bf16.mxu1 %v6893_v51  ;;  %5344 = vmatprep.subr.bf16.mxu0 %v8926_v60 }
 0x35e   :  { %1672 = vmatpush1.bf16.msra.mxu1 %v6900_v52  ;;  %5345 = vmatpush3.bf16.msra.mxu0 %v6905_v57 }
 0x35f   :  { %1673 = vmatprep.subr.bf16.mxu1 %v6912_v1  ;;  %5346 = vmatprep.subr.bf16.mxu0 %v8926_v60 }
 0x362   :  { %1674 = vmatpush1.bf16.msra.mxu1 %v6919_v62  ;;  %5347 = vmatpush3.bf16.msra.mxu0 %v6924_v50 }
 0x363   :  { %1675 = vmatprep.subr.bf16.mxu1 %v6931_v59  ;;  %5348 = vmatprep.subr.bf16.mxu0 %v8926_v60 }
 0x366   :  { %1676 = vmatpush1.bf16.msra.mxu1 %v6938_v20  ;;  %5349 = vmatpush3.bf16.msra.mxu0 %v6943_v44 }
 0x367   :  { %1677 = vmatprep.subr.bf16.mxu1 %v6950_v53  ;;  %5350 = vmatprep.subr.bf16.mxu0 %v8926_v60 }
 0x36a   :  { %1678 = vmatpush1.bf16.msra.mxu1 %v6957_v35  ;;  %5351 = vmatpush3.bf16.msra.mxu0 %v6962_v15 }
 0x36b   :  { %1679 = vmatprep.subr.bf16.mxu1 %v6969_v55  ;;  %5352 = vmatprep.subr.bf16.mxu0 %v8926_v60 }
 0x36e   :  { %1680 = vmatpush1.bf16.msra.mxu1 %v6976_v26  ;;  %5353 = vmatpush3.bf16.msra.mxu0 %v6981_v23 }
 0x36f   :  { %1771 = vmatprep.subr.bf16.mxu1 %v6990_v29  ;;  %5358 = vmatprep.subr.bf16.mxu0 %v8926_v60 }
 0x371   :  { %1698 = vmatmul.mubr.bf16.vlgmr.msra.gmra.mrb[20].mxu1 %v1664_v54  ;;  %5355 = vmatmul.mubr.bf16.vlgmr.msra.gmra.mrb[44].mxu0 %v1664_v54  ;;  %v6223_v54 = vld [vmem:[%s8805_s8 + $0x4c] ss:$12 sps:$4 sm:$0xff]  }
 0x372   :  { %1772 = vmatpush1.bf16.msra.mxu1 %v6999_v17  ;;  %5359 = vmatpush3.bf16.msra.mxu0 %v7242_v41 }
 0x373   :  { %1773 = vmatprep.subr.bf16.mxu1 %v7006_v4  ;;  %5360 = vmatprep.subr.bf16.mxu0 %v8926_v60 }
 0x374   :  { %1803 = vmatprep.mubr.bf16.mxu1 %v8927_v16  ;;  %5374 = vmatprep.mubr.msk.bf16.mxu0 %vm6327_vm1, %v8926_v60 }
 0x376   :  { %1774 = vmatpush1.bf16.msra.mxu1 %v7016_v40  ;;  %5361 = vmatpush3.bf16.msra.mxu0 %v7254_v25 }
 0x377   :  { %1775 = vmatprep.subr.bf16.mxu1 %v7023_v5  ;;  %5362 = vmatprep.subr.bf16.mxu0 %v8926_v60 }
 0x37a   :  { %1776 = vmatpush1.bf16.msra.mxu1 %v7030_v3  ;;  %5363 = vmatpush3.bf16.msra.mxu0 %v7263_v18 }
 0x37b   :  { %1777 = vmatprep.subr.bf16.mxu1 %v7037_v7  ;;  %5364 = vmatprep.subr.bf16.mxu0 %v8926_v60 }
 0x37e   :  { %1778 = vmatpush1.bf16.msra.mxu1 %v7044_v2  ;;  %5365 = vmatpush3.bf16.msra.mxu0 %v7272_v12 }
 0x37f   :  { %1779 = vmatprep.subr.bf16.mxu1 %v8942_v58  ;;  %5366 = vmatprep.subr.bf16.mxu0 %v8926_v60 }
 0x382   :  { %1780 = vmatpush1.bf16.msra.mxu1 %v7058_v0  ;;  %5367 = vmatpush3.bf16.msra.mxu0 %v7281_v19 }
 0x383   :  { %1781 = vmatprep.subr.bf16.mxu1 %v8944_v61  ;;  %5368 = vmatprep.subr.bf16.mxu0 %v8926_v60  ;;  %v8957_v61 = vld [vmem:[#allocation31_spill] sm:$0xff] }
 0x386   :  { %1782 = vmatpush1.bf16.msra.mxu1 %v7072_v8  ;;  %5369 = vmatpush3.bf16.msra.mxu0 %v7290_v22 }
 0x387   :  { %1783 = vmatprep.subr.bf16.mxu1 %v8946_v24  ;;  %5370 = vmatprep.subr.bf16.mxu0 %v8926_v60  ;;  %v8956_v24 = vld [vmem:[#allocation30_spill] sm:$0xff] }
 0x38a   :  { %1784 = vmatpush1.bf16.msra.mxu1 %v7086_v9  ;;  %5371 = vmatpush3.bf16.msra.mxu0 %v7299_v43 }
 0x38b   :  { %1785 = vmatprep.subr.bf16.mxu1 %v7093_v11  ;;  %5372 = vmatprep.subr.bf16.mxu0 %v8926_v60 }
 0x38e   :  { %1786 = vmatpush1.bf16.msra.mxu1 %v7100_v10  ;;  %5373 = vmatpush3.bf16.msra.mxu0 %v7308_v28 }
 0x38f   :  { %5378 = vmatprep.subr.bf16.mxu0 %v8926_v60  ;;  %2034 = vmatprep.subr.bf16.mxu1 %v7320_v30 }
 0x391   :  { %1804 = vmatmul.mubr.bf16.vlgmr.msra.gmra.mrb[24].mxu1 %v7197_v6  ;;  %5375 = vmatmul.mubr.bf16.vlgmr.msra.gmra.mrb[48].mxu0 %v7197_v6  ;;  %v5945_v6 = vld [vmem:[%s8805_s8 + $0x38] ss:$12 sps:$4 sm:$0xff]  }
 0x392   :  { %2066 = vmatprep.mubr.bf16.mxu1 %v8927_v16  ;;  %5394 = vmatprep.mubr.msk.bf16.mxu0 %vm6327_vm1, %v8926_v60 }
 0x393   :  { %2035 = vmatpush1.bf16.msra.mxu1 %v7325_v31  ;;  %5379 = vmatpush3.bf16.msra.mxu0 %v5937_v47  ;;  %v5946_v47 = vld [vmem:[%s8805_s8 + $0x50] ss:$12 sps:$4 sm:$0xff]  }
 0x394   :  { %5380 = vmatprep.subr.bf16.mxu0 %v8926_v60  ;;  %2036 = vmatprep.subr.bf16.mxu1 %v7335_v33 }
 0x397   :  { %2037 = vmatpush1.bf16.msra.mxu1 %v7341_v42  ;;  %5381 = vmatpush3.bf16.msra.mxu0 %v5941_v34  ;;  %v6224_v34 = vld [vmem:[%s8805_s8 + $0x48] ss:$12 sps:$4 sm:$0xff]  }
 0x398   :  { %5382 = vmatprep.subr.bf16.mxu0 %v8926_v60  ;;  %2038 = vmatprep.subr.bf16.mxu1 %v7351_v45 }
 0x39b   :  { %2039 = vmatpush1.bf16.msra.mxu1 %v7357_v37  ;;  %5383 = vmatpush3.bf16.msra.mxu0 %v5945_v6  ;;  %v6225_v6 = vld [vmem:[%s8805_s8 + $0x64] ss:$12 sps:$4 sm:$0xff]   ;;  %v6226_v37 = vld [vmem:[%s8805_s8 + $0x60] ss:$12 sps:$4 sm:$0xff]  }
 0x39c   :  { %2040 = vmatprep.subr.bf16.mxu1 %v6223_v54  ;;  %5384 = vmatprep.subr.bf16.mxu0 %v8926_v60  ;;  %v5947_v54 = vld [vmem:[%s8805_s8 + $0x68] ss:$12 sps:$4 sm:$0xff]  }
 0x39f   :  { %2041 = vmatpush1.bf16.msra.mxu1 %v6224_v34  ;;  %5385 = vmatpush3.bf16.msra.mxu0 %v5946_v47  ;;  %v5948_v47 = vld [vmem:[%s8805_s8 + $0x80] ss:$12 sps:$4 sm:$0xff]   ;;  %v6227_v34 = vld [vmem:[%s8805_s8 + $0x7c] ss:$12 sps:$4 sm:$0xff]  }
 0x3a0   :  { %2042 = vmatprep.subr.bf16.mxu1 %v6225_v6  ;;  %5386 = vmatprep.subr.bf16.mxu0 %v8926_v60  ;;  %v6228_v6 = vld [vmem:[%s8805_s8 + $0x78] ss:$12 sps:$4 sm:$0xff]  }
 0x3a3   :  { %2043 = vmatpush1.bf16.msra.mxu1 %v6226_v37  ;;  %5387 = vmatpush3.bf16.msra.mxu0 %v5947_v54  ;;  %v5949_v37 = vld [vmem:[%s8805_s8 + $0x98] ss:$12 sps:$4 sm:$0xff]   ;;  %v6229_v54 = vld [vmem:[%s8805_s8 + $0x94] ss:$12 sps:$4 sm:$0xff]  }
 0x3a4   :  { %2044 = vmatprep.subr.bf16.mxu1 %v6227_v34  ;;  %5388 = vmatprep.subr.bf16.mxu0 %v8926_v60  ;;  %v6230_v34 = vld [vmem:[%s8805_s8 + $0x90] ss:$12 sps:$4 sm:$0xff]  }
 0x3a7   :  { %2045 = vmatpush1.bf16.msra.mxu1 %v6228_v6  ;;  %5389 = vmatpush3.bf16.msra.mxu0 %v5948_v47  ;;  %v5950_v47 = vld [vmem:[%s8805_s8 + $0xb0] ss:$12 sps:$4 sm:$0xff]   ;;  %v6231_v6 = vld [vmem:[%s8805_s8 + $0xac] ss:$12 sps:$4 sm:$0xff]  }
 0x3a8   :  { %2046 = vmatprep.subr.bf16.mxu1 %v6229_v54  ;;  %5390 = vmatprep.subr.bf16.mxu0 %v8926_v60  ;;  %v6232_v54 = vld [vmem:[%s8805_s8 + $0xa8] ss:$12 sps:$4 sm:$0xff]  }
 0x3ab   :  { %2047 = vmatpush1.bf16.msra.mxu1 %v6230_v34  ;;  %5391 = vmatpush3.bf16.msra.mxu0 %v5949_v37  ;;  %v7417_v37 = vld [vmem:[%s8806_s9 + $0x4] ss:$12 sps:$4 sm:$0xff]  }
 0x3ac   :  { %2048 = vmatprep.subr.bf16.mxu1 %v6231_v6  ;;  %5392 = vmatprep.subr.bf16.mxu0 %v8926_v60  ;;  %8955 = vst [vmem:[#allocation42_spill] sm:$0xff] %v7417_v37 }
 0x3af   :  { %2049 = vmatpush1.bf16.msra.mxu1 %v6232_v54  ;;  %5393 = vmatpush3.bf16.msra.mxu0 %v5950_v47 }
 0x3b0   :  { %2116 = vmatprep.subr.bf16.mxu1 %v7417_v37  ;;  %5398 = vmatprep.subr.bf16.mxu0 %v8926_v60 }
 0x424   :  { %v1658_v34 = vpop.f32.mrb[40].mxu0 }
 0x425   :  { %v5336_v45 = vpop.f32.mrb[41].mxu0 }
 0x426   :  { %v1661_v6 = vpop.f32.mrb[42].mxu0 }
 0x427   :  { %v5337_v42 = vpop.f32.mrb[43].mxu0 }
 0x444   :  { %v1699_v33 = vpop.f32.mrb[20].mxu1  ;;  %v1754_v31 = vpop.f32.mrb[44].mxu0 }
 0x445   :  { %v5744_v30 = vadd.f32 %v1699_v33, %v7164_v36  ;;  %v1701_v28 = vpop.f32.mrb[21].mxu1  ;;  %v5356_v54 = vpop.f32.mrb[45].mxu0  ;;  %v1755_v19 = vadd.f32 %v8957_v61, %v1754_v31 }
 0x446   :  { %v1703_v47 = vpop.f32.mrb[22].mxu1  ;;  %v1757_v10 = vpop.f32.mrb[46].mxu0  ;;  %v5745_v22 = vadd.f32 %v1701_v28, %v8956_v24  ;;  %v1659_v54 = vadd.f32 %v1658_v34, %v7179_v13  ;;  %v8958_v28 = vld [vmem:[#allocation4_spill] sm:$0xff] }
 0x447   :  { %v4779_v11 = vmul.f32 -1.442695, %v5744_v30  ;;  %v1704_v43 = vpop.f32.mrb[23].mxu1  ;;  %v5357_v9 = vpop.f32.mrb[47].mxu0 }
 0x448   :  { %v4780_v37 = vmul.f32 -1.442695, %v5745_v22 }
 0x449   :  { %6068 = vpow2.f32 %v4779_v11 }
 0x44a   :  { %6070 = vpow2.f32 %v4780_v37  ;;  %v8959_v37 = vld [vmem:[#allocation5_spill] sm:$0xff] }
 0x453   :  { %v6069_v8 = vpop.eup %6068 }
 0x454   :  { %v1714_v45 = vadd.f32 1.0, %v6069_v8  ;;  %v6071_v42 = vpop.eup %6070 }
 0x455   :  { %v1715_v6 = vadd.f32 1.0, %v6071_v42 }
 0x456   :  { %6072 = vrcp.f32 %v1714_v45 }
 0x457   :  { %6074 = vrcp.f32 %v1715_v6 }
 0x460   :  { %v6073_v33 = vpop.eup %6072 }
 0x461   :  { %v1760_v47 = vmul.f32 %v6073_v33, %v1755_v19  ;;  %v6075_v61 = vpop.eup %6074 }
 0x462   :  { %v1763_v19 = vsub.f32 1.0, %v6075_v61 }
 0x463   :  { %v1761_v10 = vadd.f32 %v1760_v47, %v1659_v54  ;;  %v1765_v54 = vmul.f32 %v6075_v61, %v7188_v21  ;;  %v7860_v21 = vld [vmem:[%s8802_s5 + $0x60] ss:$12 sps:$4 sm:$0xff]  }
 0x464   :  { %v1805_v43 = vpop.f32.mrb[24].mxu1  ;;  %v1860_v9 = vpop.f32.mrb[48].mxu0 }
 0x465   :  { %6076 = vtanh.f32 %v1761_v10  ;;  %v1812_v11 = vadd.f32 %v1805_v43, %v8958_v28  ;;  %v1807_v22 = vpop.f32.mrb[25].mxu1  ;;  %v5376_v30 = vpop.f32.mrb[49].mxu0 }
 0x466   :  { %v1813_v8 = vadd.f32 %v1807_v22, %v8959_v37  ;;  %v1809_v45 = vpop.f32.mrb[26].mxu1  ;;  %v1863_v24 = vpop.f32.mrb[50].mxu0  ;;  %v8961_v30 = vld [vmem:[#allocation16_spill] sm:$0xff] }
 0x467   :  { %v4781_v42 = vmul.f32 -1.442695, %v1812_v11  ;;  %v1810_v36 = vpop.f32.mrb[27].mxu1  ;;  %v5377_v31 = vpop.f32.mrb[51].mxu0  ;;  %v1861_v24 = vadd.f32 %v6827_v14, %v1860_v9  ;;  %v8987_v9 = vld [vmem:[#allocation42_spill] sm:$0xff] }
 0x468   :  { %v4782_v34 = vmul.f32 -1.442695, %v1813_v8 }
 0x469   :  { %6078 = vpow2.f32 %v4781_v42 }
 0x46a   :  { %6080 = vpow2.f32 %v4782_v34 }
 0x46f   :  { %v6077_v6 = vpop.eup %6076 }
 0x470   :  { %v1764_v33 = vmul.f32 %v6077_v6, %v1763_v19 }
 0x472   :  { %v7428_v47 = vadd.f32 %v1765_v54, %v1764_v33 }
 0x473   :  { %v6079_v10 = vpop.eup %6078 }
 0x474   :  { %8960 = vst [vmem:[#allocation4_spill] sm:$0xff] %v7428_v47  ;;  %v1820_v43 = vadd.f32 1.0, %v6079_v10  ;;  %v6081_v28 = vpop.eup %6080  ;;  %v2115_v14 = vpack.c.bf16 %v7428_v47, %v7428_v47 }
 0x475   :  { %v1821_v22 = vadd.f32 1.0, %v6081_v28 }
 0x476   :  { %6082 = vrcp.f32 %v1820_v43 }
 0x477   :  { %6084 = vrcp.f32 %v1821_v22  ;;  %v8988_v22 = vld [vmem:[#allocation29_spill] sm:$0xff] }
 0x480   :  { %v6083_v36 = vpop.eup %6082 }
 0x481   :  { %v1866_v11 = vmul.f32 %v6083_v36, %v1861_v24  ;;  %v6085_v8 = vpop.eup %6084 }
 0x482   :  { %v1869_v45 = vsub.f32 1.0, %v6085_v8  ;;  %v1871_v61 = vmul.f32 %v6085_v8, %v7193_v27  ;;  %v7606_v27 = vld [vmem:[%s8805_s8 + $0xa8] ss:$12 sps:$4 sm:$0xff]  }
 0x483   :  { %v1867_v37 = vadd.f32 %v1866_v11, %v8961_v30 }
 0x485   :  { %6086 = vtanh.f32 %v1867_v37 }
 0x48f   :  { %v6087_v42 = vpop.eup %6086 }
 0x490   :  { %v1870_v31 = vmul.f32 %v6087_v42, %v1869_v45 }
 0x492   :  { %v7433_v34 = vadd.f32 %v1871_v61, %v1870_v31  ;;  %v8989_v31 = vld [vmem:[#allocation30_spill] sm:$0xff] }
 0x494   :  { %v7437_v19 = vpack.c.bf16 %v7433_v34, %v7433_v34 }
 0x496   :  { %2067 = vmatmul.mubr.bf16.vlgmr.msra.gmra.mrb[28].mxu1 %v7437_v19  ;;  %5395 = vmatmul.mubr.bf16.vlgmr.msra.gmra.mrb[52].mxu0 %v7437_v19 }
 0x497   :  { %2117 = vmatpush1.bf16.msra.mxu1 %v6836_v32  ;;  %5399 = vmatpush3.bf16.msra.mxu0 %v6841_v38  ;;  %v8975_v32 = vld [vmem:[#allocation39_spill] sm:$0xff]  ;;  %v8976_v38 = vld [vmem:[#allocation40_spill] sm:$0xff] }
 0x498   :  { %2118 = vmatprep.subr.bf16.mxu1 %v6850_v39  ;;  %5400 = vmatprep.subr.bf16.mxu0 %v8926_v60  ;;  %v8977_v39 = vld [vmem:[#allocation41_spill] sm:$0xff] }
 0x499   :  { %2148 = vmatprep.mubr.bf16.mxu1 %v8927_v16  ;;  %5414 = vmatprep.mubr.msk.bf16.mxu0 %vm6327_vm1, %v8926_v60 }
 0x49b   :  { %2119 = vmatpush1.bf16.msra.mxu1 %v6859_v49  ;;  %5401 = vmatpush3.bf16.msra.mxu0 %v6864_v56  ;;  %v5951_v49 = vld [vmem:[%s8805_s8 + $0x8] ss:$12 sps:$4 sm:$0xff]   ;;  %v5952_v56 = vld [vmem:[%s8805_s8 + $0x20] ss:$12 sps:$4 sm:$0xff]  }
 0x49c   :  { %2120 = vmatprep.subr.bf16.mxu1 %v6871_v63  ;;  %5402 = vmatprep.subr.bf16.mxu0 %v8926_v60  ;;  %v5953_v63 = vld [vmem:[%s8805_s8 + $0x38] ss:$12 sps:$4 sm:$0xff]  }
 0x49f   :  { %2121 = vmatpush1.bf16.msra.mxu1 %v6881_v46  ;;  %5403 = vmatpush3.bf16.msra.mxu0 %v6886_v48  ;;  %v7537_v46 = vld [vmem:[%s8805_s8 + $0x4c] ss:$12 sps:$4 sm:$0xff]   ;;  %v7543_v48 = vld [vmem:[%s8805_s8 + $0x48] ss:$12 sps:$4 sm:$0xff]  }
 0x4a0   :  { %2122 = vmatprep.subr.bf16.mxu1 %v6893_v51  ;;  %5404 = vmatprep.subr.bf16.mxu0 %v8926_v60  ;;  %8978 = vst [vmem:[#allocation5_spill] sm:$0xff] %v7543_v48  ;;  %v5957_v51 = vld [vmem:[%s8805_s8 + $0x50] ss:$12 sps:$4 sm:$0xff]  }
 0x4a3   :  { %2123 = vmatpush1.bf16.msra.mxu1 %v6900_v52  ;;  %5405 = vmatpush3.bf16.msra.mxu0 %v6905_v57  ;;  %v7553_v52 = vld [vmem:[%s8805_s8 + $0x64] ss:$12 sps:$4 sm:$0xff]   ;;  %v7559_v57 = vld [vmem:[%s8805_s8 + $0x60] ss:$12 sps:$4 sm:$0xff]  }
 0x4a4   :  { %2124 = vmatprep.subr.bf16.mxu1 %v6912_v1  ;;  %5406 = vmatprep.subr.bf16.mxu0 %v8926_v60  ;;  %8979 = vst [vmem:[#allocation16_spill] sm:$0xff] %v7553_v52  ;;  %v5961_v1 = vld [vmem:[%s8805_s8 + $0x68] ss:$12 sps:$4 sm:$0xff]  }
 0x4a7   :  { %2125 = vmatpush1.bf16.msra.mxu1 %v6919_v62  ;;  %5407 = vmatpush3.bf16.msra.mxu0 %v6924_v50  ;;  %v7568_v62 = vld [vmem:[%s8805_s8 + $0x7c] ss:$12 sps:$4 sm:$0xff]   ;;  %v7574_v50 = vld [vmem:[%s8805_s8 + $0x78] ss:$12 sps:$4 sm:$0xff]  }
 0x4a8   :  { %2126 = vmatprep.subr.bf16.mxu1 %v6931_v59  ;;  %5408 = vmatprep.subr.bf16.mxu0 %v8926_v60  ;;  %v5965_v59 = vld [vmem:[%s8805_s8 + $0x80] ss:$12 sps:$4 sm:$0xff]  }
 0x4ab   :  { %2127 = vmatpush1.bf16.msra.mxu1 %v6938_v20  ;;  %5409 = vmatpush3.bf16.msra.mxu0 %v6943_v44  ;;  %v8969_v44 = vld [vmem:[#allocation27_spill] sm:$0xff]  ;;  %v7584_v20 = vld [vmem:[%s8805_s8 + $0x94] ss:$12 sps:$4 sm:$0xff]  }
 0x4ac   :  { %2128 = vmatprep.subr.bf16.mxu1 %v6950_v53  ;;  %5410 = vmatprep.subr.bf16.mxu0 %v8926_v60  ;;  %v8971_v53 = vld [vmem:[#allocation35_spill] sm:$0xff] }
 0x4af   :  { %2129 = vmatpush1.bf16.msra.mxu1 %v6957_v35  ;;  %5411 = vmatpush3.bf16.msra.mxu0 %v6962_v15  ;;  %v8966_v15 = vld [vmem:[#allocation25_spill] sm:$0xff]  ;;  %v8968_v35 = vld [vmem:[#allocation34_spill] sm:$0xff] }
 0x4b0   :  { %2130 = vmatprep.subr.bf16.mxu1 %v6969_v55  ;;  %5412 = vmatprep.subr.bf16.mxu0 %v8926_v60  ;;  %v8974_v55 = vld [vmem:[#allocation38_spill] sm:$0xff]  ;;  %8986 = vst [vmem:[#allocation34_spill] sm:$0xff] %v7606_v27 }
 0x4b3   :  { %2131 = vmatpush1.bf16.msra.mxu1 %v6976_v26  ;;  %5413 = vmatpush3.bf16.msra.mxu0 %v6981_v23  ;;  %v8964_v23 = vld [vmem:[#allocation24_spill] sm:$0xff]  ;;  %v8965_v26 = vld [vmem:[#allocation33_spill] sm:$0xff] }
 0x4b4   :  { %2222 = vmatprep.subr.bf16.mxu1 %v6990_v29  ;;  %5418 = vmatprep.subr.bf16.mxu0 %v8926_v60  ;;  %v8973_v29 = vld [vmem:[#allocation37_spill] sm:$0xff]  ;;  %8982 = vst [vmem:[#allocation24_spill] sm:$0xff] %v7574_v50  ;;  %8983 = vst [vmem:[#allocation33_spill] sm:$0xff] %v7584_v20 }
 0x4b6   :  { %2149 = vmatmul.mubr.bf16.vlgmr.msra.gmra.mrb[28].mxu1 %v2115_v14  ;;  %5415 = vmatmul.mubr.bf16.vlgmr.msra.gmra.mrb[56].mxu0 %v2115_v14 }
 0x4b7   :  { %2223 = vmatpush1.bf16.msra.mxu1 %v6999_v17  ;;  %5419 = vmatpush3.bf16.msra.mxu0 %v7242_v41  ;;  %v8963_v17 = vld [vmem:[#allocation23_spill] sm:$0xff] }
 0x4b8   :  { %2224 = vmatprep.subr.bf16.mxu1 %v7006_v4  ;;  %5420 = vmatprep.subr.bf16.mxu0 %v8926_v60  ;;  %v8962_v4 = vld [vmem:[#allocation22_spill] sm:$0xff]  ;;  %8981 = vst [vmem:[#allocation23_spill] sm:$0xff] %v7568_v62 }
 0x4b9   :  { %2254 = vmatprep.mubr.bf16.mxu1 %v8927_v16  ;;  %5434 = vmatprep.mubr.msk.bf16.mxu0 %vm6327_vm1, %v8926_v60  ;;  %8980 = vst [vmem:[#allocation22_spill] sm:$0xff] %v7559_v57 }
 0x4bb   :  { %2225 = vmatpush1.bf16.msra.mxu1 %v7016_v40  ;;  %5421 = vmatpush3.bf16.msra.mxu0 %v7254_v25  ;;  %v7590_v40 = vld [vmem:[%s8805_s8 + $0x90] ss:$12 sps:$4 sm:$0xff]  }
 0x4bc   :  { %2226 = vmatprep.subr.bf16.mxu1 %v7023_v5  ;;  %5422 = vmatprep.subr.bf16.mxu0 %v8926_v60  ;;  %8984 = vst [vmem:[#allocation25_spill] sm:$0xff] %v7590_v40  ;;  %v5969_v5 = vld [vmem:[%s8805_s8 + $0x98] ss:$12 sps:$4 sm:$0xff]  }
 0x4bf   :  { %2227 = vmatpush1.bf16.msra.mxu1 %v7030_v3  ;;  %5423 = vmatpush3.bf16.msra.mxu0 %v7263_v18  ;;  %v8972_v3 = vld [vmem:[#allocation36_spill] sm:$0xff] }
 0x4c0   :  { %2228 = vmatprep.subr.bf16.mxu1 %v7037_v7  ;;  %5424 = vmatprep.subr.bf16.mxu0 %v8926_v60  ;;  %v7600_v7 = vld [vmem:[%s8805_s8 + $0xac] ss:$12 sps:$4 sm:$0xff]  }
 0x4c3   :  { %2229 = vmatpush1.bf16.msra.mxu1 %v7044_v2  ;;  %5425 = vmatpush3.bf16.msra.mxu0 %v7272_v12  ;;  %v8967_v2 = vld [vmem:[#allocation26_spill] sm:$0xff] }
 0x4c4   :  { %2230 = vmatprep.subr.bf16.mxu1 %v8942_v58  ;;  %5426 = vmatprep.subr.bf16.mxu0 %v8926_v60  ;;  %8985 = vst [vmem:[#allocation26_spill] sm:$0xff] %v7600_v7  ;;  %v5973_v58 = vld [vmem:[%s8805_s8 + $0xb0] ss:$12 sps:$4 sm:$0xff]  }
 0x4c7   :  { %2231 = vmatpush1.bf16.msra.mxu1 %v7058_v0  ;;  %5427 = vmatpush3.bf16.msra.mxu0 %v8962_v4  ;;  %v8970_v0 = vld [vmem:[#allocation28_spill] sm:$0xff] }
 0x4c8   :  { %2232 = vmatprep.subr.bf16.mxu1 %v8963_v17  ;;  %5428 = vmatprep.subr.bf16.mxu0 %v8926_v60 }
 0x4cb   :  { %2233 = vmatpush1.bf16.msra.mxu1 %v8964_v23  ;;  %5429 = vmatpush3.bf16.msra.mxu0 %v8965_v26 }
 0x4cc   :  { %2234 = vmatprep.subr.bf16.mxu1 %v8966_v15  ;;  %5430 = vmatprep.subr.bf16.mxu0 %v8926_v60 }
 0x4cf   :  { %2235 = vmatpush1.bf16.msra.mxu1 %v8967_v2  ;;  %5431 = vmatpush3.bf16.msra.mxu0 %v8968_v35  ;;  %v8990_v2 = vld [vmem:[#allocation31_spill] sm:$0xff] }
 0x4d0   :  { %2236 = vmatprep.subr.bf16.mxu1 %v8969_v44  ;;  %5432 = vmatprep.subr.bf16.mxu0 %v8926_v60 }
 0x4d3   :  { %2237 = vmatpush1.bf16.msra.mxu1 %v8970_v0  ;;  %5433 = vmatpush3.bf16.msra.mxu0 %v8971_v53 }
 0x4d4   :  { %2485 = vmatprep.subr.bf16.mxu1 %v8972_v3  ;;  %5438 = vmatprep.subr.bf16.mxu0 %v8926_v60 }
 0x4d6   :  { %2255 = vmatmul.mubr.bf16.vlgmr.msra.gmra.mrb[32].mxu1 %v7437_v19  ;;  %5435 = vmatmul.mubr.bf16.vlgmr.msra.gmra.mrb[60].mxu0 %v7437_v19 }
 0x4d7   :  { %2486 = vmatpush1.bf16.msra.mxu1 %v8973_v29  ;;  %2517 = vmatprep.mubr.bf16.mxu1 %v8927_v16 }
 0x4d8   :  { %2487 = vmatprep.subr.bf16.mxu1 %v8974_v55  ;;  %5454 = vmatprep.mubr.msk.bf16.mxu0 %vm6327_vm1, %v8926_v60 }
 0x4d9   :  { %5439 = vmatpush3.bf16.msra.mxu0 %v5951_v49 }
 0x4da   :  { %5440 = vmatprep.subr.bf16.mxu0 %v8926_v60 }
 0x4db   :  { %2488 = vmatpush1.bf16.msra.mxu1 %v8975_v32 }
 0x4dc   :  { %2489 = vmatprep.subr.bf16.mxu1 %v8976_v38 }
 0x4dd   :  { %5441 = vmatpush3.bf16.msra.mxu0 %v5952_v56 }
 0x4de   :  { %5442 = vmatprep.subr.bf16.mxu0 %v8926_v60 }
 0x4df   :  { %2490 = vmatpush1.bf16.msra.mxu1 %v8977_v39 }
 0x4e0   :  { %2491 = vmatprep.subr.bf16.mxu1 %v7537_v46 }
 0x4e1   :  { %5443 = vmatpush3.bf16.msra.mxu0 %v5953_v63 }
 0x4e2   :  { %5444 = vmatprep.subr.bf16.mxu0 %v8926_v60 }
 0x4e3   :  { %2492 = vmatpush1.bf16.msra.mxu1 %v7543_v48 }
 0x4e4   :  { %2493 = vmatprep.subr.bf16.mxu1 %v7553_v52 }
 0x4e5   :  { %5445 = vmatpush3.bf16.msra.mxu0 %v5957_v51 }
 0x4e6   :  { %5446 = vmatprep.subr.bf16.mxu0 %v8926_v60 }
 0x4e7   :  { %2494 = vmatpush1.bf16.msra.mxu1 %v7559_v57 }
 0x4e8   :  { %2495 = vmatprep.subr.bf16.mxu1 %v7568_v62 }
 0x4e9   :  { %5447 = vmatpush3.bf16.msra.mxu0 %v5961_v1 }
 0x4ea   :  { %5448 = vmatprep.subr.bf16.mxu0 %v8926_v60 }
 0x4eb   :  { %2496 = vmatpush1.bf16.msra.mxu1 %v7574_v50 }
 0x4ec   :  { %2497 = vmatprep.subr.bf16.mxu1 %v7584_v20 }
 0x4ed   :  { %5449 = vmatpush3.bf16.msra.mxu0 %v5965_v59  ;;  %v8991_v59 = vld [vmem:[#allocation6_spill] sm:$0xff] }
 0x4ee   :  { %5450 = vmatprep.subr.bf16.mxu0 %v8926_v60 }
 0x4ef   :  { %2498 = vmatpush1.bf16.msra.mxu1 %v7590_v40 }
 0x4f0   :  { %2499 = vmatprep.subr.bf16.mxu1 %v7600_v7 }
 0x4f1   :  { %5451 = vmatpush3.bf16.msra.mxu0 %v5969_v5 }
 0x4f2   :  { %5452 = vmatprep.subr.bf16.mxu0 %v8926_v60 }
 0x4f3   :  { %2500 = vmatpush1.bf16.msra.mxu1 %v7606_v27 }
 0x4f4   :  { %2567 = vmatprep.subr.bf16.mxu1 %v8987_v9 }
 0x4f5   :  { %5453 = vmatpush3.bf16.msra.mxu0 %v5973_v58 }
 0x4f6   :  { %5458 = vmatprep.subr.bf16.mxu0 %v8926_v60 }
 0x569   :  { %v2109_v6 = vpop.f32.mrb[52].mxu0 }
 0x56a   :  { %v5396_v33 = vpop.f32.mrb[53].mxu0  ;;  %v2110_v49 = vadd.f32 %v2109_v6, %v7179_v13 }
 0x56b   :  { %v2112_v54 = vpop.f32.mrb[54].mxu0 }
 0x56c   :  { %v5397_v10 = vpop.f32.mrb[55].mxu0  ;;  %v8992_v54 = vld [vmem:[#allocation7_spill] sm:$0xff] }
 0x589   :  { %v2150_v43 = vpop.f32.mrb[28].mxu1  ;;  %v2205_v28 = vpop.f32.mrb[56].mxu0 }
 0x58a   :  { %v5746_v24 = vadd.f32 %v2150_v43, %v8988_v22  ;;  %v2152_v36 = vpop.f32.mrb[29].mxu1  ;;  %v5416_v11 = vpop.f32.mrb[57].mxu0  ;;  %v2206_v44 = vadd.f32 %v8990_v2, %v2205_v28 }
 0x58b   :  { %v2154_v30 = vpop.f32.mrb[30].mxu1  ;;  %v2208_v37 = vpop.f32.mrb[58].mxu0  ;;  %v5747_v61 = vadd.f32 %v2152_v36, %v8989_v31 }
 0x58c   :  { %v4807_v8 = vmul.f32 -1.442695, %v5746_v24  ;;  %v2155_v45 = vpop.f32.mrb[31].mxu1  ;;  %v5417_v42 = vpop.f32.mrb[59].mxu0 }
 0x58d   :  { %v4808_v19 = vmul.f32 -1.442695, %v5747_v61 }
 0x58e   :  { %6088 = vpow2.f32 %v4807_v8 }
 0x58f   :  { %6090 = vpow2.f32 %v4808_v19 }
 0x598   :  { %v6089_v14 = vpop.eup %6088 }
 0x599   :  { %v2165_v17 = vadd.f32 1.0, %v6089_v14  ;;  %v6091_v23 = vpop.eup %6090 }
 0x59a   :  { %v2166_v15 = vadd.f32 1.0, %v6091_v23 }
 0x59b   :  { %6092 = vrcp.f32 %v2165_v17 }
 0x59c   :  { %6094 = vrcp.f32 %v2166_v15  ;;  %v7628_v15 = vld [vmem:[%s8808_s7] ss:$0 sm:$0xff] }
 0x5a5   :  { %v6093_v0 = vpop.eup %6092 }
 0x5a6   :  { %v2211_v56 = vmul.f32 %v6093_v0, %v2206_v44  ;;  %v6095_v30 = vpop.eup %6094 }
 0x5a7   :  { %v2214_v37 = vsub.f32 1.0, %v6095_v30  ;;  %v2216_v42 = vmul.f32 %v6095_v30, %v7428_v47  ;;  %v7697_v30 = vld [vmem:[%s8806_s9 + $0x4c] ss:$12 sps:$4 sm:$0xff]   ;;  %v7846_v47 = vld [vmem:[%s8802_s5 + $0x48] ss:$12 sps:$4 sm:$0xff]  }
 0x5a8   :  { %v2212_v63 = vadd.f32 %v2211_v56, %v2110_v49  ;;  %v8994_v49 = vld [vmem:[#allocation17_spill] sm:$0xff] }
 0x5a9   :  { %v2256_v51 = vpop.f32.mrb[32].mxu1  ;;  %v2311_v1 = vpop.f32.mrb[60].mxu0 }
 0x5aa   :  { %6096 = vtanh.f32 %v2212_v63  ;;  %v2263_v5 = vadd.f32 %v2256_v51, %v8991_v59  ;;  %v2258_v58 = vpop.f32.mrb[33].mxu1  ;;  %v5436_v33 = vpop.f32.mrb[61].mxu0  ;;  %v2312_v2 = vadd.f32 %v7628_v15, %v2311_v1  ;;  %v7644_v1 = vld [vmem:[%s8806_s9] ss:$12 sps:$4 sm:$0xff]  }
 0x5ab   :  { %v2264_v10 = vadd.f32 %v2258_v58, %v8992_v54  ;;  %v2260_v43 = vpop.f32.mrb[34].mxu1  ;;  %v2314_v24 = vpop.f32.mrb[62].mxu0 }
 0x5ac   :  { %v4809_v36 = vmul.f32 -1.442695, %v2263_v5  ;;  %v2261_v11 = vpop.f32.mrb[35].mxu1  ;;  %v5437_v28 = vpop.f32.mrb[63].mxu0  ;;  %v7666_v43 = vld [vmem:[%s8806_s9 + $0x18] ss:$12 sps:$4 sm:$0xff]  }
 0x5ad   :  { %v4810_v6 = vmul.f32 -1.442695, %v2264_v10  ;;  %v7656_v10 = vld [vmem:[%s8806_s9 + $0x1c] ss:$12 sps:$4 sm:$0xff]   ;;  %v7672_v24 = vld [vmem:[%s8806_s9 + $0x20] ss:$12 sps:$4 sm:$0xff]  }
 0x5ae   :  { %6098 = vpow2.f32 %v4809_v36  ;;  %v7678_v36 = vld [vmem:[%s8806_s9 + $0x34] ss:$12 sps:$4 sm:$0xff]   ;;  %v7685_v11 = vld [vmem:[%s8806_s9 + $0x30] ss:$12 sps:$4 sm:$0xff]   ;;  %v7691_v28 = vld [vmem:[%s8806_s9 + $0x38] ss:$12 sps:$4 sm:$0xff]  }
 0x5af   :  { %6100 = vpow2.f32 %v4810_v6  ;;  %v7704_v6 = vld [vmem:[%s8806_s9 + $0x48] ss:$12 sps:$4 sm:$0xff]  }
 0x5b4   :  { %v6097_v8 = vpop.eup %6096 }
 0x5b5   :  { %v2215_v45 = vmul.f32 %v6097_v8, %v2214_v37  ;;  %v7710_v37 = vld [vmem:[%s8806_s9 + $0x50] ss:$12 sps:$4 sm:$0xff]  }
 0x5b6   :  { %v7716_v8 = vld [vmem:[%s8806_s9 + $0x64] ss:$12 sps:$4 sm:$0xff]  }
 0x5b7   :  { %v7623_v61 = vadd.f32 %v2216_v42, %v2215_v45  ;;  %v7723_v45 = vld [vmem:[%s8806_s9 + $0x60] ss:$12 sps:$4 sm:$0xff]   ;;  %v7729_v42 = vld [vmem:[%s8806_s9 + $0x68] ss:$12 sps:$4 sm:$0xff]  }
 0x5b8   :  { %v6099_v19 = vpop.eup %6098 }
 0x5b9   :  { %8993 = vst [vmem:[#allocation27_spill] sm:$0xff] %v7623_v61  ;;  %v2271_v14 = vadd.f32 1.0, %v6099_v19  ;;  %v6101_v17 = vpop.eup %6100  ;;  %v7735_v19 = vld [vmem:[%s8806_s9 + $0x7c] ss:$12 sps:$4 sm:$0xff]  }
 0x5ba   :  { %v2272_v23 = vadd.f32 1.0, %v6101_v17  ;;  %v7748_v17 = vld [vmem:[%s8806_s9 + $0x80] ss:$12 sps:$4 sm:$0xff]  }
 0x5bb   :  { %6102 = vrcp.f32 %v2271_v14  ;;  %v7742_v14 = vld [vmem:[%s8806_s9 + $0x78] ss:$12 sps:$4 sm:$0xff]  }
 0x5bc   :  { %6104 = vrcp.f32 %v2272_v23  ;;  %v7754_v23 = vld [vmem:[%s8806_s9 + $0x94] ss:$12 sps:$4 sm:$0xff]  }
 0x5c5   :  { %v6103_v44 = vpop.eup %6102 }
 0x5c6   :  { %v2317_v0 = vmul.f32 %v6103_v44, %v2312_v2  ;;  %v6105_v63 = vpop.eup %6104  ;;  %v7761_v2 = vld [vmem:[%s8806_s9 + $0x90] ss:$12 sps:$4 sm:$0xff]   ;;  %v7767_v44 = vld [vmem:[%s8806_s9 + $0x98] ss:$12 sps:$4 sm:$0xff]  }
 0x5c7   :  { %v2320_v51 = vsub.f32 1.0, %v6105_v63  ;;  %v2322_v58 = vmul.f32 %v6105_v63, %v7433_v34  ;;  %v7650_v34 = vld [vmem:[%s8806_s9 + $0x8] ss:$12 sps:$4 sm:$0xff]   ;;  %v2566_v63 = vpack.c.bf16 %v7623_v61, %v7623_v61 }
 0x5c8   :  { %v2318_v56 = vadd.f32 %v2317_v0, %v8994_v49  ;;  %v7773_v0 = vld [vmem:[%s8806_s9 + $0xac] ss:$12 sps:$4 sm:$0xff]   ;;  %v7780_v49 = vld [vmem:[%s8806_s9 + $0xa8] ss:$12 sps:$4 sm:$0xff]  }
 0x5ca   :  { %6106 = vtanh.f32 %v2318_v56  ;;  %v7786_v56 = vld [vmem:[%s8806_s9 + $0xb0] ss:$12 sps:$4 sm:$0xff]  }
 0x5d4   :  { %v6107_v59 = vpop.eup %6106 }
 0x5d5   :  { %v2321_v5 = vmul.f32 %v6107_v59, %v2320_v51  ;;  %v7794_v51 = vld [vmem:[%s8802_s5 + $0x4] ss:$12 sps:$4 sm:$0xff]   ;;  %v7801_v59 = vld [vmem:[%s8802_s5] ss:$12 sps:$4 sm:$0xff]  }
 0x5d7   :  { %v7633_v33 = vadd.f32 %v2322_v58, %v2321_v5  ;;  %v7808_v5 = vld [vmem:[%s8802_s5 + $0x1c] ss:$12 sps:$4 sm:$0xff]   ;;  %v7818_v58 = vld [vmem:[%s8802_s5 + $0x18] ss:$12 sps:$4 sm:$0xff]  }
 0x5d9   :  { %v7637_v54 = vpack.c.bf16 %v7633_v33, %v7633_v33 }
 0x5db   :  { %2518 = vmatmul.mubr.bf16.vlgmr.msra.gmra.mrb[36].mxu1 %v7637_v54  ;;  %5455 = vmatmul.mubr.bf16.vlgmr.msra.gmra.mrb[64].mxu0 %v7637_v54 }
 0x5dc   :  { %2568 = vmatpush1.bf16.msra.mxu1 %v7644_v1  ;;  %5459 = vmatpush3.bf16.msra.mxu0 %v7650_v34 }
 0x5dd   :  { %2569 = vmatprep.subr.bf16.mxu1 %v7656_v10  ;;  %5460 = vmatprep.subr.bf16.mxu0 %v8926_v60 }
 0x5de   :  { %2599 = vmatprep.mubr.bf16.mxu1 %v8927_v16  ;;  %5474 = vmatprep.mubr.msk.bf16.mxu0 %vm6327_vm1, %v8926_v60 }
 0x5e0   :  { %2570 = vmatpush1.bf16.msra.mxu1 %v7666_v43  ;;  %5461 = vmatpush3.bf16.msra.mxu0 %v7672_v24 }
 0x5e1   :  { %2571 = vmatprep.subr.bf16.mxu1 %v7678_v36  ;;  %5462 = vmatprep.subr.bf16.mxu0 %v8926_v60 }
 0x5e4   :  { %2572 = vmatpush1.bf16.msra.mxu1 %v7685_v11  ;;  %5463 = vmatpush3.bf16.msra.mxu0 %v7691_v28 }
 0x5e5   :  { %2573 = vmatprep.subr.bf16.mxu1 %v7697_v30  ;;  %5464 = vmatprep.subr.bf16.mxu0 %v8926_v60 }
 0x5e8   :  { %2574 = vmatpush1.bf16.msra.mxu1 %v7704_v6  ;;  %5465 = vmatpush3.bf16.msra.mxu0 %v7710_v37 }
 0x5e9   :  { %2575 = vmatprep.subr.bf16.mxu1 %v7716_v8  ;;  %5466 = vmatprep.subr.bf16.mxu0 %v8926_v60 }
 0x5ec   :  { %2576 = vmatpush1.bf16.msra.mxu1 %v7723_v45  ;;  %5467 = vmatpush3.bf16.msra.mxu0 %v7729_v42 }
 0x5ed   :  { %2577 = vmatprep.subr.bf16.mxu1 %v7735_v19  ;;  %5468 = vmatprep.subr.bf16.mxu0 %v8926_v60 }
 0x5f0   :  { %2578 = vmatpush1.bf16.msra.mxu1 %v7742_v14  ;;  %5469 = vmatpush3.bf16.msra.mxu0 %v7748_v17 }
 0x5f1   :  { %2579 = vmatprep.subr.bf16.mxu1 %v7754_v23  ;;  %5470 = vmatprep.subr.bf16.mxu0 %v8926_v60 }
 0x5f4   :  { %2580 = vmatpush1.bf16.msra.mxu1 %v7761_v2  ;;  %5471 = vmatpush3.bf16.msra.mxu0 %v7767_v44 }
 0x5f5   :  { %2581 = vmatprep.subr.bf16.mxu1 %v7773_v0  ;;  %5472 = vmatprep.subr.bf16.mxu0 %v8926_v60 }
 0x5f8   :  { %2582 = vmatpush1.bf16.msra.mxu1 %v7780_v49  ;;  %5473 = vmatpush3.bf16.msra.mxu0 %v7786_v56 }
 0x5f9   :  { %2673 = vmatprep.subr.bf16.mxu1 %v7794_v51  ;;  %5478 = vmatprep.subr.bf16.mxu0 %v8926_v60 }
 0x5fb   :  { %2600 = vmatmul.mubr.bf16.vlgmr.msra.gmra.mrb[36].mxu1 %v2566_v63  ;;  %5475 = vmatmul.mubr.bf16.vlgmr.msra.gmra.mrb[68].mxu0 %v2566_v63  ;;  %v7832_v63 = vld [vmem:[%s8802_s5 + $0x30] ss:$12 sps:$4 sm:$0xff]  }
 0x5fc   :  { %2674 = vmatpush1.bf16.msra.mxu1 %v7801_v59  ;;  %5479 = vmatpush3.bf16.msra.mxu0 %v7242_v41  ;;  %v7825_v41 = vld [vmem:[%s8802_s5 + $0x34] ss:$12 sps:$4 sm:$0xff]  }
 0x5fd   :  { %2675 = vmatprep.subr.bf16.mxu1 %v7808_v5  ;;  %5480 = vmatprep.subr.bf16.mxu0 %v8926_v60 }
 0x5fe   :  { %2705 = vmatprep.mubr.bf16.mxu1 %v8927_v16  ;;  %5494 = vmatprep.mubr.msk.bf16.mxu0 %vm6327_vm1, %v8926_v60 }
 0x600   :  { %2676 = vmatpush1.bf16.msra.mxu1 %v7818_v58  ;;  %5481 = vmatpush3.bf16.msra.mxu0 %v7254_v25  ;;  %v7839_v25 = vld [vmem:[%s8802_s5 + $0x4c] ss:$12 sps:$4 sm:$0xff]  }
 0x601   :  { %2677 = vmatprep.subr.bf16.mxu1 %v7825_v41  ;;  %5482 = vmatprep.subr.bf16.mxu0 %v8926_v60 }
 0x604   :  { %2678 = vmatpush1.bf16.msra.mxu1 %v7832_v63  ;;  %5483 = vmatpush3.bf16.msra.mxu0 %v7263_v18  ;;  %v7853_v18 = vld [vmem:[%s8802_s5 + $0x64] ss:$12 sps:$4 sm:$0xff]  }
 0x605   :  { %2679 = vmatprep.subr.bf16.mxu1 %v7839_v25  ;;  %5484 = vmatprep.subr.bf16.mxu0 %v8926_v60  ;;  %8995 = vst [vmem:[#allocation28_spill] sm:$0xff] %v7853_v18 }
 0x608   :  { %2680 = vmatpush1.bf16.msra.mxu1 %v7846_v47  ;;  %5485 = vmatpush3.bf16.msra.mxu0 %v7272_v12  ;;  %v7867_v12 = vld [vmem:[%s8802_s5 + $0x7c] ss:$12 sps:$4 sm:$0xff]  }
 0x609   :  { %2681 = vmatprep.subr.bf16.mxu1 %v7853_v18  ;;  %5486 = vmatprep.subr.bf16.mxu0 %v8926_v60  ;;  %8996 = vst [vmem:[#allocation35_spill] sm:$0xff] %v7867_v12  ;;  %v7874_v18 = vld [vmem:[%s8802_s5 + $0x78] ss:$12 sps:$4 sm:$0xff]  }
 0x60a   :  { %8997 = vst [vmem:[#allocation36_spill] sm:$0xff] %v7874_v18 }
 0x60c   :  { %2682 = vmatpush1.bf16.msra.mxu1 %v7860_v21  ;;  %5487 = vmatpush3.bf16.msra.mxu0 %v8962_v4  ;;  %v7881_v4 = vld [vmem:[%s8802_s5 + $0x94] ss:$12 sps:$4 sm:$0xff]  }
 0x60d   :  { %2683 = vmatprep.subr.bf16.mxu1 %v7867_v12  ;;  %5488 = vmatprep.subr.bf16.mxu0 %v8926_v60  ;;  %8998 = vst [vmem:[#allocation37_spill] sm:$0xff] %v7881_v4  ;;  %v7888_v12 = vld [vmem:[%s8802_s5 + $0x90] ss:$12 sps:$4 sm:$0xff]  }
 0x60e   :  { %8999 = vst [vmem:[#allocation38_spill] sm:$0xff] %v7888_v12 }
 0x610   :  { %2684 = vmatpush1.bf16.msra.mxu1 %v7874_v18  ;;  %5489 = vmatpush3.bf16.msra.mxu0 %v8965_v26  ;;  %v7895_v26 = vld [vmem:[%s8802_s5 + $0xac] ss:$12 sps:$4 sm:$0xff]  }
 0x611   :  { %2685 = vmatprep.subr.bf16.mxu1 %v7881_v4  ;;  %5490 = vmatprep.subr.bf16.mxu0 %v8926_v60  ;;  %9000 = vst [vmem:[#allocation39_spill] sm:$0xff] %v7895_v26  ;;  %v7902_v4 = vld [vmem:[%s8802_s5 + $0xa8] ss:$12 sps:$4 sm:$0xff]  }
 0x612   :  { %9001 = vst [vmem:[#allocation40_spill] sm:$0xff] %v7902_v4 }
 0x614   :  { %2686 = vmatpush1.bf16.msra.mxu1 %v7888_v12  ;;  %5491 = vmatpush3.bf16.msra.mxu0 %v8968_v35  ;;  %v5974_v35 = vld [vmem:[%s8805_s8 + $0x8] ss:$12 sps:$4 sm:$0xff]  }
 0x615   :  { %2687 = vmatprep.subr.bf16.mxu1 %v7895_v26  ;;  %5492 = vmatprep.subr.bf16.mxu0 %v8926_v60 }
 0x618   :  { %2688 = vmatpush1.bf16.msra.mxu1 %v7902_v4  ;;  %5493 = vmatpush3.bf16.msra.mxu0 %v8971_v53  ;;  %v5975_v53 = vld [vmem:[%s8805_s8 + $0x20] ss:$12 sps:$4 sm:$0xff]  }
 0x619   :  { %2936 = vmatprep.subr.bf16.mxu1 %v8972_v3  ;;  %5498 = vmatprep.subr.bf16.mxu0 %v8926_v60  ;;  %v5976_v3 = vld [vmem:[%s8805_s8 + $0x38] ss:$12 sps:$4 sm:$0xff]  }
 0x61b   :  { %2706 = vmatmul.mubr.bf16.vlgmr.msra.gmra.mrb[40].mxu1 %v7637_v54  ;;  %5495 = vmatmul.mubr.bf16.vlgmr.msra.gmra.mrb[72].mxu0 %v7637_v54 }
 0x61c   :  { %2937 = vmatpush1.bf16.msra.mxu1 %v8973_v29  ;;  %2968 = vmatprep.mubr.bf16.mxu1 %v8927_v16  ;;  %v5977_v29 = vld [vmem:[%s8805_s8 + $0x50] ss:$12 sps:$4 sm:$0xff]  }
 0x61d   :  { %2938 = vmatprep.subr.bf16.mxu1 %v8974_v55  ;;  %5514 = vmatprep.mubr.msk.bf16.mxu0 %vm6327_vm1, %v8926_v60  ;;  %v5978_v55 = vld [vmem:[%s8805_s8 + $0x68] ss:$12 sps:$4 sm:$0xff]  }
 0x61e   :  { %5499 = vmatpush3.bf16.msra.mxu0 %v5974_v35 }
 0x61f   :  { %5500 = vmatprep.subr.bf16.mxu0 %v8926_v60 }
 0x620   :  { %2939 = vmatpush1.bf16.msra.mxu1 %v8975_v32  ;;  %v5979_v32 = vld [vmem:[%s8805_s8 + $0x80] ss:$12 sps:$4 sm:$0xff]  }
 0x621   :  { %2940 = vmatprep.subr.bf16.mxu1 %v8976_v38  ;;  %v5980_v38 = vld [vmem:[%s8805_s8 + $0x98] ss:$12 sps:$4 sm:$0xff]  }
 0x622   :  { %5501 = vmatpush3.bf16.msra.mxu0 %v5975_v53 }
 0x623   :  { %5502 = vmatprep.subr.bf16.mxu0 %v8926_v60 }
 0x624   :  { %2941 = vmatpush1.bf16.msra.mxu1 %v8977_v39  ;;  %v5981_v39 = vld [vmem:[%s8805_s8 + $0xb0] ss:$12 sps:$4 sm:$0xff]  }
 0x625   :  { %2942 = vmatprep.subr.bf16.mxu1 %v7537_v46 }
 0x626   :  { %5503 = vmatpush3.bf16.msra.mxu0 %v5976_v3 }
 0x627   :  { %5504 = vmatprep.subr.bf16.mxu0 %v8926_v60 }
 0x628   :  { %2943 = vmatpush1.bf16.msra.mxu1 %v7543_v48 }
 0x629   :  { %2944 = vmatprep.subr.bf16.mxu1 %v7553_v52 }
 0x62a   :  { %5505 = vmatpush3.bf16.msra.mxu0 %v5977_v29 }
 0x62b   :  { %5506 = vmatprep.subr.bf16.mxu0 %v8926_v60 }
 0x62c   :  { %2945 = vmatpush1.bf16.msra.mxu1 %v7559_v57 }
 0x62d   :  { %2946 = vmatprep.subr.bf16.mxu1 %v7568_v62 }
 0x62e   :  { %5507 = vmatpush3.bf16.msra.mxu0 %v5978_v55 }
 0x62f   :  { %5508 = vmatprep.subr.bf16.mxu0 %v8926_v60 }
 0x630   :  { %2947 = vmatpush1.bf16.msra.mxu1 %v7574_v50 }
 0x631   :  { %2948 = vmatprep.subr.bf16.mxu1 %v7584_v20 }
 0x632   :  { %5509 = vmatpush3.bf16.msra.mxu0 %v5979_v32 }
 0x633   :  { %5510 = vmatprep.subr.bf16.mxu0 %v8926_v60 }
 0x634   :  { %2949 = vmatpush1.bf16.msra.mxu1 %v7590_v40 }
 0x635   :  { %2950 = vmatprep.subr.bf16.mxu1 %v7600_v7 }
 0x636   :  { %5511 = vmatpush3.bf16.msra.mxu0 %v5980_v38 }
 0x637   :  { %5512 = vmatprep.subr.bf16.mxu0 %v8926_v60 }
 0x638   :  { %2951 = vmatpush1.bf16.msra.mxu1 %v7606_v27 }
 0x639   :  { %3018 = vmatprep.subr.bf16.mxu1 %v8987_v9 }
 0x63a   :  { %5513 = vmatpush3.bf16.msra.mxu0 %v5981_v39 }
 0x63b   :  { %5518 = vmatprep.subr.bf16.mxu0 %v8926_v60 }
 0x6ae   :  { %v2560_v9 = vpop.f32.mrb[64].mxu0 }
 0x6af   :  { %v5456_v54 = vpop.f32.mrb[65].mxu0 }
 0x6b0   :  { %v2563_v35 = vpop.f32.mrb[66].mxu0 }
 0x6b1   :  { %v5457_v53 = vpop.f32.mrb[67].mxu0 }
 0x6ce   :  { %v2601_v3 = vpop.f32.mrb[36].mxu1  ;;  %v2656_v29 = vpop.f32.mrb[68].mxu0 }
 0x6cf   :  { %v5748_v55 = vadd.f32 %v2601_v3, %v8988_v22  ;;  %v2603_v32 = vpop.f32.mrb[37].mxu1  ;;  %v5476_v27 = vpop.f32.mrb[69].mxu0  ;;  %v7966_v3 = vld [vmem:[%s8810_s11] ss:$0 sm:$0xff] }
 0x6d0   :  { %v2605_v38 = vpop.f32.mrb[38].mxu1  ;;  %v2659_v7 = vpop.f32.mrb[70].mxu0  ;;  %v5749_v62 = vadd.f32 %v2603_v32, %v8989_v31  ;;  %9002 = vst [vmem:[#allocation41_spill] sm:$0xff] %v7966_v3 }
 0x6d1   :  { %v4835_v40 = vmul.f32 -1.442695, %v5748_v55  ;;  %v2606_v20 = vpop.f32.mrb[39].mxu1  ;;  %v5477_v50 = vpop.f32.mrb[71].mxu0  ;;  %v2657_v7 = vadd.f32 %v7966_v3, %v2656_v29 }
 0x6d2   :  { %v4836_v39 = vmul.f32 -1.442695, %v5749_v62  ;;  %v2561_v50 = vadd.f32 %v2560_v9, %v7179_v13 }
 0x6d3   :  { %6108 = vpow2.f32 %v4835_v40 }
 0x6d4   :  { %6110 = vpow2.f32 %v4836_v39 }
 0x6dd   :  { %v6109_v57 = vpop.eup %6108 }
 0x6de   :  { %v2616_v54 = vadd.f32 1.0, %v6109_v57  ;;  %v6111_v35 = vpop.eup %6110  ;;  %v9003_v57 = vld [vmem:[#allocation8_spill] sm:$0xff] }
 0x6df   :  { %v2617_v53 = vadd.f32 1.0, %v6111_v35 }
 0x6e0   :  { %6112 = vrcp.f32 %v2616_v54  ;;  %v9004_v54 = vld [vmem:[#allocation9_spill] sm:$0xff] }
 0x6e1   :  { %6114 = vrcp.f32 %v2617_v53 }
 0x6ea   :  { %v6113_v27 = vpop.eup %6112 }
 0x6eb   :  { %v2662_v20 = vmul.f32 %v6113_v27, %v2657_v7  ;;  %v6115_v3 = vpop.eup %6114 }
 0x6ec   :  { %v2665_v7 = vsub.f32 1.0, %v6115_v3 }
 0x6ed   :  { %v2663_v40 = vadd.f32 %v2662_v20, %v2561_v50  ;;  %v2667_v50 = vmul.f32 %v6115_v3, %v7623_v61  ;;  %v9020_v61 = vld [vmem:[#allocation16_spill] sm:$0xff] }
 0x6ee   :  { %v2707_v62 = vpop.f32.mrb[40].mxu1  ;;  %v2762_v55 = vpop.f32.mrb[72].mxu0 }
 0x6ef   :  { %6116 = vtanh.f32 %v2663_v40  ;;  %v2714_v32 = vadd.f32 %v2707_v62, %v9003_v57  ;;  %v2709_v38 = vpop.f32.mrb[41].mxu1  ;;  %v5496_v39 = vpop.f32.mrb[73].mxu0 }
 0x6f0   :  { %v2715_v35 = vadd.f32 %v2709_v38, %v9004_v54  ;;  %v2711_v31 = vpop.f32.mrb[42].mxu1  ;;  %v2765_v22 = vpop.f32.mrb[74].mxu0 }
 0x6f1   :  { %v4837_v52 = vmul.f32 -1.442695, %v2714_v32  ;;  %v2712_v48 = vpop.f32.mrb[43].mxu1  ;;  %v5497_v29 = vpop.f32.mrb[75].mxu0  ;;  %v2763_v22 = vadd.f32 %v7628_v15, %v2762_v55  ;;  %v8027_v55 = vld [vmem:[%s8802_s5 + $0x8] ss:$12 sps:$4 sm:$0xff]  }
 0x6f2   :  { %v4838_v9 = vmul.f32 -1.442695, %v2715_v35 }
 0x6f3   :  { %6118 = vpow2.f32 %v4837_v52  ;;  %v9005_v52 = vld [vmem:[#allocation19_spill] sm:$0xff] }
 0x6f4   :  { %6120 = vpow2.f32 %v4838_v9 }
 0x6f9   :  { %v6117_v53 = vpop.eup %6116 }
 0x6fa   :  { %v2666_v27 = vmul.f32 %v6117_v53, %v2665_v7  ;;  %v8039_v53 = vld [vmem:[%s8802_s5 + $0x20] ss:$12 sps:$4 sm:$0xff]  }
 0x6fc   :  { %v7973_v20 = vadd.f32 %v2667_v50, %v2666_v27  ;;  %v8048_v27 = vld [vmem:[%s8802_s5 + $0x38] ss:$12 sps:$4 sm:$0xff]   ;;  %v8057_v50 = vld [vmem:[%s8802_s5 + $0x50] ss:$12 sps:$4 sm:$0xff]  }
 0x6fd   :  { %v6119_v40 = vpop.eup %6118 }
 0x6fe   :  { %v2722_v62 = vadd.f32 1.0, %v6119_v40  ;;  %v6121_v57 = vpop.eup %6120  ;;  %v9006_v40 = vld [vmem:[#allocation28_spill] sm:$0xff] }
 0x6ff   :  { %v2723_v31 = vadd.f32 1.0, %v6121_v57  ;;  %v9008_v57 = vld [vmem:[#allocation35_spill] sm:$0xff] }
 0x700   :  { %6122 = vrcp.f32 %v2722_v62  ;;  %v8066_v62 = vld [vmem:[%s8802_s5 + $0x68] ss:$12 sps:$4 sm:$0xff]  }
 0x701   :  { %6124 = vrcp.f32 %v2723_v31  ;;  %9007 = vst [vmem:[#allocation42_spill] sm:$0xff] %v8066_v62  ;;  %v8075_v31 = vld [vmem:[%s8802_s5 + $0x80] ss:$12 sps:$4 sm:$0xff]  }
 0x702   :  { %9009 = vst [vmem:[#allocation31_spill] sm:$0xff] %v8075_v31 }
 0x70a   :  { %v6123_v48 = vpop.eup %6122 }
 0x70b   :  { %v2768_v32 = vmul.f32 %v6123_v48, %v2763_v22  ;;  %v6125_v39 = vpop.eup %6124  ;;  %v9010_v22 = vld [vmem:[#allocation37_spill] sm:$0xff]  ;;  %v8084_v48 = vld [vmem:[%s8802_s5 + $0x98] ss:$12 sps:$4 sm:$0xff]  }
 0x70c   :  { %v2771_v54 = vsub.f32 1.0, %v6125_v39  ;;  %v2773_v3 = vmul.f32 %v6125_v39, %v7633_v33  ;;  %v3017_v33 = vpack.c.bf16 %v7973_v20, %v7973_v20  ;;  %9011 = vst [vmem:[#allocation6_spill] sm:$0xff] %v8084_v48  ;;  %v5985_v39 = vld [vmem:[%s8805_s8 + $0x8] ss:$12 sps:$4 sm:$0xff]  }
 0x70d   :  { %v2769_v38 = vadd.f32 %v2768_v32, %v9005_v52  ;;  %v8093_v32 = vld [vmem:[%s8802_s5 + $0xb0] ss:$12 sps:$4 sm:$0xff]  }
 0x70e   :  { %9012 = vst [vmem:[#allocation7_spill] sm:$0xff] %v8093_v32  ;;  %v8105_v52 = vld [vmem:[%s8805_s8 + $0x4] ss:$12 sps:$4 sm:$0xff]  }
 0x70f   :  { %6126 = vtanh.f32 %v2769_v38  ;;  %9013 = vst [vmem:[#allocation17_spill] sm:$0xff] %v8105_v52  ;;  %v8110_v38 = vld [vmem:[%s8805_s8] ss:$12 sps:$4 sm:$0xff]  }
 0x710   :  { %9014 = vst [vmem:[#allocation8_spill] sm:$0xff] %v8110_v38 }
 0x719   :  { %v6127_v35 = vpop.eup %6126 }
 0x71a   :  { %v2772_v29 = vmul.f32 %v6127_v35, %v2771_v54  ;;  %v8120_v54 = vld [vmem:[%s8805_s8 + $0x1c] ss:$12 sps:$4 sm:$0xff]   ;;  %v8126_v35 = vld [vmem:[%s8805_s8 + $0x18] ss:$12 sps:$4 sm:$0xff]  }
 0x71b   :  { %9015 = vst [vmem:[#allocation9_spill] sm:$0xff] %v8120_v54  ;;  %9016 = vst [vmem:[#allocation19_spill] sm:$0xff] %v8126_v35 }
 0x71c   :  { %v7978_v9 = vadd.f32 %v2773_v3, %v2772_v29  ;;  %v5989_v29 = vld [vmem:[%s8805_s8 + $0x20] ss:$12 sps:$4 sm:$0xff]  }
 0x71d   :  { %v8136_v3 = vld [vmem:[%s8805_s8 + $0x34] ss:$12 sps:$4 sm:$0xff]  }
 0x71e   :  { %v7982_v7 = vpack.c.bf16 %v7978_v9, %v7978_v9  ;;  %9017 = vst [vmem:[#allocation28_spill] sm:$0xff] %v8136_v3 }
 0x720   :  { %2969 = vmatmul.mubr.bf16.vlgmr.msra.gmra.mrb[44].mxu1 %v7982_v7  ;;  %5515 = vmatmul.mubr.bf16.vlgmr.msra.gmra.mrb[76].mxu0 %v7982_v7 }
 0x721   :  { %3019 = vmatpush1.bf16.msra.mxu1 %v7644_v1  ;;  %5519 = vmatpush3.bf16.msra.mxu0 %v7650_v34 }
 0x722   :  { %3020 = vmatprep.subr.bf16.mxu1 %v7656_v10  ;;  %5520 = vmatprep.subr.bf16.mxu0 %v8926_v60 }
 0x723   :  { %3050 = vmatprep.mubr.bf16.mxu1 %v8927_v16  ;;  %5534 = vmatprep.mubr.msk.bf16.mxu0 %vm6327_vm1, %v8926_v60 }
 0x725   :  { %3021 = vmatpush1.bf16.msra.mxu1 %v7666_v43  ;;  %5521 = vmatpush3.bf16.msra.mxu0 %v7672_v24 }
 0x726   :  { %3022 = vmatprep.subr.bf16.mxu1 %v7678_v36  ;;  %5522 = vmatprep.subr.bf16.mxu0 %v8926_v60 }
 0x729   :  { %3023 = vmatpush1.bf16.msra.mxu1 %v7685_v11  ;;  %5523 = vmatpush3.bf16.msra.mxu0 %v7691_v28 }
 0x72a   :  { %3024 = vmatprep.subr.bf16.mxu1 %v7697_v30  ;;  %5524 = vmatprep.subr.bf16.mxu0 %v8926_v60 }
 0x72d   :  { %3025 = vmatpush1.bf16.msra.mxu1 %v7704_v6  ;;  %5525 = vmatpush3.bf16.msra.mxu0 %v7710_v37 }
 0x72e   :  { %3026 = vmatprep.subr.bf16.mxu1 %v7716_v8  ;;  %5526 = vmatprep.subr.bf16.mxu0 %v8926_v60 }
 0x731   :  { %3027 = vmatpush1.bf16.msra.mxu1 %v7723_v45  ;;  %5527 = vmatpush3.bf16.msra.mxu0 %v7729_v42 }
 0x732   :  { %3028 = vmatprep.subr.bf16.mxu1 %v7735_v19  ;;  %5528 = vmatprep.subr.bf16.mxu0 %v8926_v60 }
 0x735   :  { %3029 = vmatpush1.bf16.msra.mxu1 %v7742_v14  ;;  %5529 = vmatpush3.bf16.msra.mxu0 %v7748_v17 }
 0x736   :  { %3030 = vmatprep.subr.bf16.mxu1 %v7754_v23  ;;  %5530 = vmatprep.subr.bf16.mxu0 %v8926_v60 }
 0x739   :  { %3031 = vmatpush1.bf16.msra.mxu1 %v7761_v2  ;;  %5531 = vmatpush3.bf16.msra.mxu0 %v7767_v44 }
 0x73a   :  { %3032 = vmatprep.subr.bf16.mxu1 %v7773_v0  ;;  %5532 = vmatprep.subr.bf16.mxu0 %v8926_v60 }
 0x73d   :  { %3033 = vmatpush1.bf16.msra.mxu1 %v7780_v49  ;;  %5533 = vmatpush3.bf16.msra.mxu0 %v7786_v56 }
 0x73e   :  { %3124 = vmatprep.subr.bf16.mxu1 %v7794_v51  ;;  %5538 = vmatprep.subr.bf16.mxu0 %v8926_v60 }
 0x740   :  { %3051 = vmatmul.mubr.bf16.vlgmr.msra.gmra.mrb[44].mxu1 %v3017_v33  ;;  %5535 = vmatmul.mubr.bf16.vlgmr.msra.gmra.mrb[80].mxu0 %v3017_v33  ;;  %v5993_v33 = vld [vmem:[%s8805_s8 + $0x38] ss:$12 sps:$4 sm:$0xff]  }
 0x741   :  { %3125 = vmatpush1.bf16.msra.mxu1 %v7801_v59  ;;  %5539 = vmatpush3.bf16.msra.mxu0 %v8027_v55 }
 0x742   :  { %3126 = vmatprep.subr.bf16.mxu1 %v7808_v5  ;;  %5540 = vmatprep.subr.bf16.mxu0 %v8926_v60 }
 0x743   :  { %3156 = vmatprep.mubr.bf16.mxu1 %v8927_v16  ;;  %5554 = vmatprep.mubr.msk.bf16.mxu0 %vm6327_vm1, %v8926_v60 }
 0x745   :  { %3127 = vmatpush1.bf16.msra.mxu1 %v7818_v58  ;;  %5541 = vmatpush3.bf16.msra.mxu0 %v8039_v53 }
 0x746   :  { %3128 = vmatprep.subr.bf16.mxu1 %v7825_v41  ;;  %5542 = vmatprep.subr.bf16.mxu0 %v8926_v60 }
 0x749   :  { %3129 = vmatpush1.bf16.msra.mxu1 %v7832_v63  ;;  %5543 = vmatpush3.bf16.msra.mxu0 %v8048_v27 }
 0x74a   :  { %3130 = vmatprep.subr.bf16.mxu1 %v7839_v25  ;;  %5544 = vmatprep.subr.bf16.mxu0 %v8926_v60 }
 0x74d   :  { %3131 = vmatpush1.bf16.msra.mxu1 %v7846_v47  ;;  %5545 = vmatpush3.bf16.msra.mxu0 %v8057_v50 }
 0x74e   :  { %3132 = vmatprep.subr.bf16.mxu1 %v9006_v40  ;;  %5546 = vmatprep.subr.bf16.mxu0 %v8926_v60 }
 0x751   :  { %3133 = vmatpush1.bf16.msra.mxu1 %v7860_v21  ;;  %5547 = vmatpush3.bf16.msra.mxu0 %v8066_v62 }
 0x752   :  { %3134 = vmatprep.subr.bf16.mxu1 %v9008_v57  ;;  %5548 = vmatprep.subr.bf16.mxu0 %v8926_v60  ;;  %v9031_v57 = vld [vmem:[#allocation41_spill] sm:$0xff] }
 0x755   :  { %3135 = vmatpush1.bf16.msra.mxu1 %v7874_v18  ;;  %5549 = vmatpush3.bf16.msra.mxu0 %v8075_v31 }
 0x756   :  { %3136 = vmatprep.subr.bf16.mxu1 %v9010_v22  ;;  %5550 = vmatprep.subr.bf16.mxu0 %v8926_v60  ;;  %v9030_v22 = vld [vmem:[#allocation30_spill] sm:$0xff] }
 0x759   :  { %3137 = vmatpush1.bf16.msra.mxu1 %v7888_v12  ;;  %5551 = vmatpush3.bf16.msra.mxu0 %v8084_v48 }
 0x75a   :  { %3138 = vmatprep.subr.bf16.mxu1 %v7895_v26  ;;  %5552 = vmatprep.subr.bf16.mxu0 %v8926_v60 }
 0x75d   :  { %3139 = vmatpush1.bf16.msra.mxu1 %v7902_v4  ;;  %5553 = vmatpush3.bf16.msra.mxu0 %v8093_v32 }
 0x75e   :  { %5558 = vmatprep.subr.bf16.mxu0 %v8926_v60  ;;  %3387 = vmatprep.subr.bf16.mxu1 %v8105_v52 }
 0x760   :  { %3157 = vmatmul.mubr.bf16.vlgmr.msra.gmra.mrb[48].mxu1 %v7982_v7  ;;  %5555 = vmatmul.mubr.bf16.vlgmr.msra.gmra.mrb[84].mxu0 %v7982_v7  ;;  %v8142_v7 = vld [vmem:[%s8805_s8 + $0x30] ss:$12 sps:$4 sm:$0xff]  }
 0x761   :  { %3419 = vmatprep.mubr.bf16.mxu1 %v8927_v16  ;;  %5574 = vmatprep.mubr.msk.bf16.mxu0 %vm6327_vm1, %v8926_v60  ;;  %9018 = vst [vmem:[#allocation43_spill] sm:$0xff] %v8142_v7 }
 0x762   :  { %3388 = vmatpush1.bf16.msra.mxu1 %v8110_v38  ;;  %5559 = vmatpush3.bf16.msra.mxu0 %v5985_v39  ;;  %v5994_v39 = vld [vmem:[%s8805_s8 + $0x50] ss:$12 sps:$4 sm:$0xff]   ;;  %v9029_v38 = vld [vmem:[#allocation29_spill] sm:$0xff] }
 0x763   :  { %5560 = vmatprep.subr.bf16.mxu0 %v8926_v60  ;;  %3389 = vmatprep.subr.bf16.mxu1 %v8120_v54 }
 0x766   :  { %3390 = vmatpush1.bf16.msra.mxu1 %v8126_v35  ;;  %5561 = vmatpush3.bf16.msra.mxu0 %v5989_v29  ;;  %v9019_v29 = vld [vmem:[#allocation5_spill] sm:$0xff] }
 0x767   :  { %5562 = vmatprep.subr.bf16.mxu0 %v8926_v60  ;;  %3391 = vmatprep.subr.bf16.mxu1 %v8136_v3  ;;  %v9022_v3 = vld [vmem:[#allocation23_spill] sm:$0xff] }
 0x76a   :  { %3392 = vmatpush1.bf16.msra.mxu1 %v8142_v7  ;;  %5563 = vmatpush3.bf16.msra.mxu0 %v5993_v33  ;;  %v5995_v7 = vld [vmem:[%s8805_s8 + $0x68] ss:$12 sps:$4 sm:$0xff]  }
 0x76b   :  { %3393 = vmatprep.subr.bf16.mxu1 %v7537_v46  ;;  %5564 = vmatprep.subr.bf16.mxu0 %v8926_v60  ;;  %v9021_v33 = vld [vmem:[#allocation22_spill] sm:$0xff]  ;;  %v5996_v46 = vld [vmem:[%s8805_s8 + $0x80] ss:$12 sps:$4 sm:$0xff]  }
 0x76e   :  { %3394 = vmatpush1.bf16.msra.mxu1 %v9019_v29  ;;  %5565 = vmatpush3.bf16.msra.mxu0 %v5994_v39  ;;  %v9023_v39 = vld [vmem:[#allocation24_spill] sm:$0xff]  ;;  %v9024_v29 = vld [vmem:[#allocation33_spill] sm:$0xff] }
 0x76f   :  { %3395 = vmatprep.subr.bf16.mxu1 %v9020_v61  ;;  %5566 = vmatprep.subr.bf16.mxu0 %v8926_v60  ;;  %v5997_v61 = vld [vmem:[%s8805_s8 + $0x98] ss:$12 sps:$4 sm:$0xff]  }
 0x772   :  { %3396 = vmatpush1.bf16.msra.mxu1 %v9021_v33  ;;  %5567 = vmatpush3.bf16.msra.mxu0 %v5995_v7  ;;  %v9025_v7 = vld [vmem:[#allocation25_spill] sm:$0xff]  ;;  %v9026_v33 = vld [vmem:[#allocation26_spill] sm:$0xff] }
 0x773   :  { %3397 = vmatprep.subr.bf16.mxu1 %v9022_v3  ;;  %5568 = vmatprep.subr.bf16.mxu0 %v8926_v60  ;;  %v5998_v3 = vld [vmem:[%s8805_s8 + $0xb0] ss:$12 sps:$4 sm:$0xff]  }
 0x776   :  { %3398 = vmatpush1.bf16.msra.mxu1 %v9023_v39  ;;  %5569 = vmatpush3.bf16.msra.mxu0 %v5996_v46  ;;  %v9027_v46 = vld [vmem:[#allocation34_spill] sm:$0xff] }
 0x777   :  { %3399 = vmatprep.subr.bf16.mxu1 %v9024_v29  ;;  %5570 = vmatprep.subr.bf16.mxu0 %v8926_v60  ;;  %v8182_v39 = vld [vmem:[%s8806_s9 + $0x4] ss:$12 sps:$4 sm:$0xff]  }
 0x778   :  { %9028 = vst [vmem:[#allocation5_spill] sm:$0xff] %v8182_v39 }
 0x77a   :  { %3400 = vmatpush1.bf16.msra.mxu1 %v9025_v7  ;;  %5571 = vmatpush3.bf16.msra.mxu0 %v5997_v61 }
 0x77b   :  { %3401 = vmatprep.subr.bf16.mxu1 %v9026_v33  ;;  %5572 = vmatprep.subr.bf16.mxu0 %v8926_v60 }
 0x77e   :  { %3402 = vmatpush1.bf16.msra.mxu1 %v9027_v46  ;;  %5573 = vmatpush3.bf16.msra.mxu0 %v5998_v3 }
 0x77f   :  { %3469 = vmatprep.subr.bf16.mxu1 %v8182_v39  ;;  %5578 = vmatprep.subr.bf16.mxu0 %v8926_v60 }
 0x7f3   :  { %v3011_v61 = vpop.f32.mrb[76].mxu0 }
 0x7f4   :  { %v5516_v29 = vpop.f32.mrb[77].mxu0 }
 0x7f5   :  { %v3014_v7 = vpop.f32.mrb[78].mxu0 }
 0x7f6   :  { %v5517_v35 = vpop.f32.mrb[79].mxu0 }
 0x813   :  { %v3052_v54 = vpop.f32.mrb[44].mxu1  ;;  %v3107_v33 = vpop.f32.mrb[80].mxu0 }
 0x814   :  { %v5750_v52 = vadd.f32 %v3052_v54, %v9029_v38  ;;  %v3054_v32 = vpop.f32.mrb[45].mxu1  ;;  %v5536_v46 = vpop.f32.mrb[81].mxu0  ;;  %v3108_v62 = vadd.f32 %v9031_v57, %v3107_v33 }
 0x815   :  { %v3056_v3 = vpop.f32.mrb[46].mxu1  ;;  %v3110_v4 = vpop.f32.mrb[82].mxu0  ;;  %v5751_v31 = vadd.f32 %v3054_v32, %v9030_v22  ;;  %v3012_v46 = vadd.f32 %v3011_v61, %v7179_v13  ;;  %v9032_v32 = vld [vmem:[#allocation10_spill] sm:$0xff] }
 0x816   :  { %v4863_v26 = vmul.f32 -1.442695, %v5750_v52  ;;  %v3057_v48 = vpop.f32.mrb[47].mxu1  ;;  %v5537_v12 = vpop.f32.mrb[83].mxu0 }
 0x817   :  { %v4864_v39 = vmul.f32 -1.442695, %v5751_v31 }
 0x818   :  { %6128 = vpow2.f32 %v4863_v26 }
 0x819   :  { %6130 = vpow2.f32 %v4864_v39  ;;  %v9033_v39 = vld [vmem:[#allocation11_spill] sm:$0xff] }
 0x822   :  { %v6129_v18 = vpop.eup %6128 }
 0x823   :  { %v3067_v29 = vadd.f32 1.0, %v6129_v18  ;;  %v6131_v35 = vpop.eup %6130 }
 0x824   :  { %v3068_v7 = vadd.f32 1.0, %v6131_v35 }
 0x825   :  { %6132 = vrcp.f32 %v3067_v29 }
 0x826   :  { %6134 = vrcp.f32 %v3068_v7 }
 0x82f   :  { %v6133_v54 = vpop.eup %6132 }
 0x830   :  { %v3113_v3 = vmul.f32 %v6133_v54, %v3108_v62  ;;  %v6135_v57 = vpop.eup %6134 }
 0x831   :  { %v3116_v62 = vsub.f32 1.0, %v6135_v57 }
 0x832   :  { %v3114_v4 = vadd.f32 %v3113_v3, %v3012_v46  ;;  %v3118_v46 = vmul.f32 %v6135_v57, %v7973_v20 }
 0x833   :  { %v3158_v48 = vpop.f32.mrb[48].mxu1  ;;  %v3213_v12 = vpop.f32.mrb[84].mxu0 }
 0x834   :  { %6136 = vtanh.f32 %v3114_v4  ;;  %v3165_v26 = vadd.f32 %v3158_v48, %v9032_v32  ;;  %v3160_v31 = vpop.f32.mrb[49].mxu1  ;;  %v5556_v52 = vpop.f32.mrb[85].mxu0 }
 0x835   :  { %v3166_v18 = vadd.f32 %v3160_v31, %v9033_v39  ;;  %v3162_v29 = vpop.f32.mrb[50].mxu1  ;;  %v3216_v22 = vpop.f32.mrb[86].mxu0  ;;  %v9034_v52 = vld [vmem:[#allocation21_spill] sm:$0xff] }
 0x836   :  { %v4865_v35 = vmul.f32 -1.442695, %v3165_v26  ;;  %v3163_v38 = vpop.f32.mrb[51].mxu1  ;;  %v5557_v33 = vpop.f32.mrb[87].mxu0  ;;  %v3214_v22 = vadd.f32 %v7628_v15, %v3213_v12  ;;  %v9051_v12 = vld [vmem:[#allocation5_spill] sm:$0xff] }
 0x837   :  { %v4866_v61 = vmul.f32 -1.442695, %v3166_v18 }
 0x838   :  { %6138 = vpow2.f32 %v4865_v35 }
 0x839   :  { %6140 = vpow2.f32 %v4866_v61 }
 0x83e   :  { %v6137_v7 = vpop.eup %6136 }
 0x83f   :  { %v3117_v54 = vmul.f32 %v6137_v7, %v3116_v62 }
 0x841   :  { %v8193_v3 = vadd.f32 %v3118_v46, %v3117_v54 }
 0x842   :  { %v6139_v4 = vpop.eup %6138 }
 0x843   :  { %v3173_v48 = vadd.f32 1.0, %v6139_v4  ;;  %v6141_v32 = vpop.eup %6140  ;;  %v3468_v15 = vpack.c.bf16 %v8193_v3, %v8193_v3 }
 0x844   :  { %v3174_v31 = vadd.f32 1.0, %v6141_v32 }
 0x845   :  { %6142 = vrcp.f32 %v3173_v48 }
 0x846   :  { %6144 = vrcp.f32 %v3174_v31  ;;  %v9052_v31 = vld [vmem:[#allocation29_spill] sm:$0xff] }
 0x84f   :  { %v6143_v38 = vpop.eup %6142 }
 0x850   :  { %v3219_v26 = vmul.f32 %v6143_v38, %v3214_v22  ;;  %v6145_v18 = vpop.eup %6144 }
 0x851   :  { %v3222_v29 = vsub.f32 1.0, %v6145_v18  ;;  %v3224_v57 = vmul.f32 %v6145_v18, %v7978_v9  ;;  %v8371_v9 = vld [vmem:[%s8805_s8 + $0xa8] ss:$12 sps:$4 sm:$0xff]  }
 0x852   :  { %v3220_v39 = vadd.f32 %v3219_v26, %v9034_v52 }
 0x854   :  { %6146 = vtanh.f32 %v3220_v39 }
 0x85e   :  { %v6147_v35 = vpop.eup %6146 }
 0x85f   :  { %v3223_v33 = vmul.f32 %v6147_v35, %v3222_v29 }
 0x861   :  { %v8198_v61 = vadd.f32 %v3224_v57, %v3223_v33  ;;  %v9053_v33 = vld [vmem:[#allocation30_spill] sm:$0xff] }
 0x863   :  { %v8202_v62 = vpack.c.bf16 %v8198_v61, %v8198_v61 }
 0x865   :  { %3420 = vmatmul.mubr.bf16.vlgmr.msra.gmra.mrb[52].mxu1 %v8202_v62  ;;  %5575 = vmatmul.mubr.bf16.vlgmr.msra.gmra.mrb[88].mxu0 %v8202_v62 }
 0x866   :  { %3470 = vmatpush1.bf16.msra.mxu1 %v7644_v1  ;;  %5579 = vmatpush3.bf16.msra.mxu0 %v7650_v34  ;;  %v9035_v1 = vld [vmem:[#allocation42_spill] sm:$0xff]  ;;  %v9036_v34 = vld [vmem:[#allocation35_spill] sm:$0xff] }
 0x867   :  { %3471 = vmatprep.subr.bf16.mxu1 %v7656_v10  ;;  %5580 = vmatprep.subr.bf16.mxu0 %v8926_v60  ;;  %v9037_v10 = vld [vmem:[#allocation36_spill] sm:$0xff] }
 0x868   :  { %3501 = vmatprep.mubr.bf16.mxu1 %v8927_v16  ;;  %5594 = vmatprep.mubr.msk.bf16.mxu0 %vm6327_vm1, %v8926_v60 }
 0x86a   :  { %3472 = vmatpush1.bf16.msra.mxu1 %v7666_v43  ;;  %5581 = vmatpush3.bf16.msra.mxu0 %v7672_v24  ;;  %v9038_v43 = vld [vmem:[#allocation31_spill] sm:$0xff]  ;;  %v9039_v24 = vld [vmem:[#allocation37_spill] sm:$0xff] }
 0x86b   :  { %3473 = vmatprep.subr.bf16.mxu1 %v7678_v36  ;;  %5582 = vmatprep.subr.bf16.mxu0 %v8926_v60  ;;  %v9041_v36 = vld [vmem:[#allocation6_spill] sm:$0xff] }
 0x86e   :  { %3474 = vmatpush1.bf16.msra.mxu1 %v7685_v11  ;;  %5583 = vmatpush3.bf16.msra.mxu0 %v7691_v28  ;;  %v9042_v11 = vld [vmem:[#allocation39_spill] sm:$0xff] }
 0x86f   :  { %3475 = vmatprep.subr.bf16.mxu1 %v7697_v30  ;;  %5584 = vmatprep.subr.bf16.mxu0 %v8926_v60  ;;  %v9044_v28 = vld [vmem:[#allocation7_spill] sm:$0xff]  ;;  %v9045_v30 = vld [vmem:[#allocation17_spill] sm:$0xff] }
 0x872   :  { %3476 = vmatpush1.bf16.msra.mxu1 %v7704_v6  ;;  %5585 = vmatpush3.bf16.msra.mxu0 %v7710_v37  ;;  %v9046_v6 = vld [vmem:[#allocation8_spill] sm:$0xff]  ;;  %v9047_v37 = vld [vmem:[#allocation9_spill] sm:$0xff] }
 0x873   :  { %3477 = vmatprep.subr.bf16.mxu1 %v7716_v8  ;;  %5586 = vmatprep.subr.bf16.mxu0 %v8926_v60  ;;  %v9048_v8 = vld [vmem:[#allocation19_spill] sm:$0xff] }
 0x876   :  { %3478 = vmatpush1.bf16.msra.mxu1 %v7723_v45  ;;  %5587 = vmatpush3.bf16.msra.mxu0 %v7729_v42  ;;  %v9049_v45 = vld [vmem:[#allocation28_spill] sm:$0xff]  ;;  %v9050_v42 = vld [vmem:[#allocation43_spill] sm:$0xff] }
 0x877   :  { %3479 = vmatprep.subr.bf16.mxu1 %v7735_v19  ;;  %5588 = vmatprep.subr.bf16.mxu0 %v8926_v60  ;;  %v5999_v19 = vld [vmem:[%s8805_s8 + $0x8] ss:$12 sps:$4 sm:$0xff]  }
 0x87a   :  { %3480 = vmatpush1.bf16.msra.mxu1 %v7742_v14  ;;  %5589 = vmatpush3.bf16.msra.mxu0 %v7748_v17  ;;  %v6000_v14 = vld [vmem:[%s8805_s8 + $0x20] ss:$12 sps:$4 sm:$0xff]   ;;  %v6001_v17 = vld [vmem:[%s8805_s8 + $0x38] ss:$12 sps:$4 sm:$0xff]  }
 0x87b   :  { %3481 = vmatprep.subr.bf16.mxu1 %v7754_v23  ;;  %5590 = vmatprep.subr.bf16.mxu0 %v8926_v60  ;;  %v8302_v23 = vld [vmem:[%s8805_s8 + $0x4c] ss:$12 sps:$4 sm:$0xff]  }
 0x87e   :  { %3482 = vmatpush1.bf16.msra.mxu1 %v7761_v2  ;;  %5591 = vmatpush3.bf16.msra.mxu0 %v7767_v44  ;;  %v8308_v2 = vld [vmem:[%s8805_s8 + $0x48] ss:$12 sps:$4 sm:$0xff]   ;;  %v6005_v44 = vld [vmem:[%s8805_s8 + $0x50] ss:$12 sps:$4 sm:$0xff]  }
 0x87f   :  { %3483 = vmatprep.subr.bf16.mxu1 %v7773_v0  ;;  %5592 = vmatprep.subr.bf16.mxu0 %v8926_v60  ;;  %v8318_v0 = vld [vmem:[%s8805_s8 + $0x64] ss:$12 sps:$4 sm:$0xff]  }
 0x882   :  { %3484 = vmatpush1.bf16.msra.mxu1 %v7780_v49  ;;  %5593 = vmatpush3.bf16.msra.mxu0 %v7786_v56  ;;  %v8324_v49 = vld [vmem:[%s8805_s8 + $0x60] ss:$12 sps:$4 sm:$0xff]   ;;  %v6009_v56 = vld [vmem:[%s8805_s8 + $0x68] ss:$12 sps:$4 sm:$0xff]  }
 0x883   :  { %3575 = vmatprep.subr.bf16.mxu1 %v7794_v51  ;;  %5598 = vmatprep.subr.bf16.mxu0 %v8926_v60  ;;  %v8333_v51 = vld [vmem:[%s8805_s8 + $0x7c] ss:$12 sps:$4 sm:$0xff]  }
 0x885   :  { %3502 = vmatmul.mubr.bf16.vlgmr.msra.gmra.mrb[52].mxu1 %v3468_v15  ;;  %5595 = vmatmul.mubr.bf16.vlgmr.msra.gmra.mrb[92].mxu0 %v3468_v15 }
 0x886   :  { %3576 = vmatpush1.bf16.msra.mxu1 %v7801_v59  ;;  %5599 = vmatpush3.bf16.msra.mxu0 %v8027_v55  ;;  %v8339_v59 = vld [vmem:[%s8805_s8 + $0x78] ss:$12 sps:$4 sm:$0xff]  }
 0x887   :  { %3577 = vmatprep.subr.bf16.mxu1 %v7808_v5  ;;  %5600 = vmatprep.subr.bf16.mxu0 %v8926_v60  ;;  %v6013_v5 = vld [vmem:[%s8805_s8 + $0x80] ss:$12 sps:$4 sm:$0xff]  }
 0x888   :  { %3607 = vmatprep.mubr.bf16.mxu1 %v8927_v16  ;;  %5614 = vmatprep.mubr.msk.bf16.mxu0 %vm6327_vm1, %v8926_v60 }
 0x88a   :  { %3578 = vmatpush1.bf16.msra.mxu1 %v7818_v58  ;;  %5601 = vmatpush3.bf16.msra.mxu0 %v8039_v53  ;;  %v8349_v58 = vld [vmem:[%s8805_s8 + $0x94] ss:$12 sps:$4 sm:$0xff]  }
 0x88b   :  { %3579 = vmatprep.subr.bf16.mxu1 %v7825_v41  ;;  %5602 = vmatprep.subr.bf16.mxu0 %v8926_v60  ;;  %v8355_v41 = vld [vmem:[%s8805_s8 + $0x90] ss:$12 sps:$4 sm:$0xff]  }
 0x88e   :  { %3580 = vmatpush1.bf16.msra.mxu1 %v7832_v63  ;;  %5603 = vmatpush3.bf16.msra.mxu0 %v8048_v27  ;;  %v6017_v63 = vld [vmem:[%s8805_s8 + $0x98] ss:$12 sps:$4 sm:$0xff]  }
 0x88f   :  { %3581 = vmatprep.subr.bf16.mxu1 %v7839_v25  ;;  %5604 = vmatprep.subr.bf16.mxu0 %v8926_v60  ;;  %v8365_v25 = vld [vmem:[%s8805_s8 + $0xac] ss:$12 sps:$4 sm:$0xff]  }
 0x892   :  { %3582 = vmatpush1.bf16.msra.mxu1 %v7846_v47  ;;  %5605 = vmatpush3.bf16.msra.mxu0 %v8057_v50  ;;  %v9040_v47 = vld [vmem:[#allocation38_spill] sm:$0xff] }
 0x893   :  { %3583 = vmatprep.subr.bf16.mxu1 %v9006_v40  ;;  %5606 = vmatprep.subr.bf16.mxu0 %v8926_v60  ;;  %v6021_v40 = vld [vmem:[%s8805_s8 + $0xb0] ss:$12 sps:$4 sm:$0xff]  }
 0x896   :  { %3584 = vmatpush1.bf16.msra.mxu1 %v7860_v21  ;;  %5607 = vmatpush3.bf16.msra.mxu0 %v9035_v1  ;;  %v9043_v21 = vld [vmem:[#allocation40_spill] sm:$0xff] }
 0x897   :  { %3585 = vmatprep.subr.bf16.mxu1 %v9036_v34  ;;  %5608 = vmatprep.subr.bf16.mxu0 %v8926_v60 }
 0x89a   :  { %3586 = vmatpush1.bf16.msra.mxu1 %v9037_v10  ;;  %5609 = vmatpush3.bf16.msra.mxu0 %v9038_v43 }
 0x89b   :  { %3587 = vmatprep.subr.bf16.mxu1 %v9039_v24  ;;  %5610 = vmatprep.subr.bf16.mxu0 %v8926_v60 }
 0x89e   :  { %3588 = vmatpush1.bf16.msra.mxu1 %v9040_v47  ;;  %5611 = vmatpush3.bf16.msra.mxu0 %v9041_v36  ;;  %v9054_v47 = vld [vmem:[#allocation41_spill] sm:$0xff] }
 0x89f   :  { %3589 = vmatprep.subr.bf16.mxu1 %v9042_v11  ;;  %5612 = vmatprep.subr.bf16.mxu0 %v8926_v60 }
 0x8a2   :  { %3590 = vmatpush1.bf16.msra.mxu1 %v9043_v21  ;;  %5613 = vmatpush3.bf16.msra.mxu0 %v9044_v28 }
 0x8a3   :  { %3838 = vmatprep.subr.bf16.mxu1 %v9045_v30  ;;  %5618 = vmatprep.subr.bf16.mxu0 %v8926_v60 }
 0x8a5   :  { %3608 = vmatmul.mubr.bf16.vlgmr.msra.gmra.mrb[56].mxu1 %v8202_v62  ;;  %5615 = vmatmul.mubr.bf16.vlgmr.msra.gmra.mrb[96].mxu0 %v8202_v62 }
 0x8a6   :  { %3839 = vmatpush1.bf16.msra.mxu1 %v9046_v6  ;;  %3870 = vmatprep.mubr.bf16.mxu1 %v8927_v16 }
 0x8a7   :  { %3840 = vmatprep.subr.bf16.mxu1 %v9047_v37  ;;  %5634 = vmatprep.mubr.msk.bf16.mxu0 %vm6327_vm1, %v8926_v60 }
 0x8a8   :  { %5619 = vmatpush3.bf16.msra.mxu0 %v5999_v19 }
 0x8a9   :  { %5620 = vmatprep.subr.bf16.mxu0 %v8926_v60 }
 0x8aa   :  { %3841 = vmatpush1.bf16.msra.mxu1 %v9048_v8 }
 0x8ab   :  { %3842 = vmatprep.subr.bf16.mxu1 %v9049_v45 }
 0x8ac   :  { %5621 = vmatpush3.bf16.msra.mxu0 %v6000_v14 }
 0x8ad   :  { %5622 = vmatprep.subr.bf16.mxu0 %v8926_v60 }
 0x8ae   :  { %3843 = vmatpush1.bf16.msra.mxu1 %v9050_v42 }
 0x8af   :  { %3844 = vmatprep.subr.bf16.mxu1 %v8302_v23 }
 0x8b0   :  { %5623 = vmatpush3.bf16.msra.mxu0 %v6001_v17 }
 0x8b1   :  { %5624 = vmatprep.subr.bf16.mxu0 %v8926_v60 }
 0x8b2   :  { %3845 = vmatpush1.bf16.msra.mxu1 %v8308_v2 }
 0x8b3   :  { %3846 = vmatprep.subr.bf16.mxu1 %v8318_v0 }
 0x8b4   :  { %5625 = vmatpush3.bf16.msra.mxu0 %v6005_v44 }
 0x8b5   :  { %5626 = vmatprep.subr.bf16.mxu0 %v8926_v60 }
 0x8b6   :  { %3847 = vmatpush1.bf16.msra.mxu1 %v8324_v49 }
 0x8b7   :  { %3848 = vmatprep.subr.bf16.mxu1 %v8333_v51 }
 0x8b8   :  { %5627 = vmatpush3.bf16.msra.mxu0 %v6009_v56 }
 0x8b9   :  { %5628 = vmatprep.subr.bf16.mxu0 %v8926_v60 }
 0x8ba   :  { %3849 = vmatpush1.bf16.msra.mxu1 %v8339_v59 }
 0x8bb   :  { %3850 = vmatprep.subr.bf16.mxu1 %v8349_v58 }
 0x8bc   :  { %5629 = vmatpush3.bf16.msra.mxu0 %v6013_v5  ;;  %v9055_v5 = vld [vmem:[#allocation12_spill] sm:$0xff] }
 0x8bd   :  { %5630 = vmatprep.subr.bf16.mxu0 %v8926_v60 }
 0x8be   :  { %3851 = vmatpush1.bf16.msra.mxu1 %v8355_v41 }
 0x8bf   :  { %3852 = vmatprep.subr.bf16.mxu1 %v8365_v25 }
 0x8c0   :  { %5631 = vmatpush3.bf16.msra.mxu0 %v6017_v63 }
 0x8c1   :  { %5632 = vmatprep.subr.bf16.mxu0 %v8926_v60 }
 0x8c2   :  { %3853 = vmatpush1.bf16.msra.mxu1 %v8371_v9 }
 0x8c3   :  { %3920 = vmatprep.subr.bf16.mxu1 %v9051_v12 }
 0x8c4   :  { %5633 = vmatpush3.bf16.msra.mxu0 %v6021_v40 }
 0x8c5   :  { %5638 = vmatprep.subr.bf16.mxu0 %v8926_v60 }
 0x938   :  { %v3462_v7 = vpop.f32.mrb[88].mxu0 }
 0x939   :  { %v5576_v54 = vpop.f32.mrb[89].mxu0  ;;  %v3463_v19 = vadd.f32 %v3462_v7, %v7179_v13 }
 0x93a   :  { %v3465_v46 = vpop.f32.mrb[90].mxu0 }
 0x93b   :  { %v5577_v4 = vpop.f32.mrb[91].mxu0  ;;  %v9056_v46 = vld [vmem:[#allocation13_spill] sm:$0xff] }
 0x958   :  { %v3503_v48 = vpop.f32.mrb[52].mxu1  ;;  %v3558_v32 = vpop.f32.mrb[92].mxu0 }
 0x959   :  { %v5752_v22 = vadd.f32 %v3503_v48, %v9052_v31  ;;  %v3505_v38 = vpop.f32.mrb[53].mxu1  ;;  %v5596_v26 = vpop.f32.mrb[93].mxu0  ;;  %v3559_v11 = vadd.f32 %v9054_v47, %v3558_v32 }
 0x95a   :  { %v3507_v52 = vpop.f32.mrb[54].mxu1  ;;  %v3561_v39 = vpop.f32.mrb[94].mxu0  ;;  %v5753_v57 = vadd.f32 %v3505_v38, %v9053_v33 }
 0x95b   :  { %v4891_v18 = vmul.f32 -1.442695, %v5752_v22  ;;  %v3508_v29 = vpop.f32.mrb[55].mxu1  ;;  %v5597_v35 = vpop.f32.mrb[95].mxu0 }
 0x95c   :  { %v4892_v62 = vmul.f32 -1.442695, %v5753_v57 }
 0x95d   :  { %6148 = vpow2.f32 %v4891_v18 }
 0x95e   :  { %6150 = vpow2.f32 %v4892_v62 }
 0x967   :  { %v6149_v15 = vpop.eup %6148 }
 0x968   :  { %v3518_v34 = vadd.f32 1.0, %v6149_v15  ;;  %v6151_v10 = vpop.eup %6150 }
 0x969   :  { %v3519_v24 = vadd.f32 1.0, %v6151_v10 }
 0x96a   :  { %6152 = vrcp.f32 %v3518_v34 }
 0x96b   :  { %6154 = vrcp.f32 %v3519_v24  ;;  %v8393_v24 = vld [vmem:[%s8808_s7] ss:$0 sm:$0xff] }
 0x974   :  { %v6153_v21 = vpop.eup %6152 }
 0x975   :  { %v3564_v14 = vmul.f32 %v6153_v21, %v3559_v11  ;;  %v6155_v52 = vpop.eup %6154 }
 0x976   :  { %v3567_v39 = vsub.f32 1.0, %v6155_v52  ;;  %v3569_v35 = vmul.f32 %v6155_v52, %v8193_v3  ;;  %v8462_v52 = vld [vmem:[%s8806_s9 + $0x4c] ss:$12 sps:$4 sm:$0xff]  }
 0x977   :  { %v3565_v17 = vadd.f32 %v3564_v14, %v3463_v19  ;;  %v9057_v19 = vld [vmem:[#allocation18_spill] sm:$0xff] }
 0x978   :  { %v3609_v44 = vpop.f32.mrb[56].mxu1  ;;  %v3664_v56 = vpop.f32.mrb[96].mxu0 }
 0x979   :  { %6156 = vtanh.f32 %v3565_v17  ;;  %v3616_v63 = vadd.f32 %v3609_v44, %v9055_v5  ;;  %v3611_v40 = vpop.f32.mrb[57].mxu1  ;;  %v5616_v54 = vpop.f32.mrb[97].mxu0  ;;  %v3665_v47 = vadd.f32 %v8393_v24, %v3664_v56  ;;  %v8409_v56 = vld [vmem:[%s8806_s9] ss:$12 sps:$4 sm:$0xff]  }
 0x97a   :  { %v3617_v4 = vadd.f32 %v3611_v40, %v9056_v46  ;;  %v3613_v48 = vpop.f32.mrb[58].mxu1  ;;  %v3667_v22 = vpop.f32.mrb[98].mxu0 }
 0x97b   :  { %v4893_v38 = vmul.f32 -1.442695, %v3616_v63  ;;  %v3614_v26 = vpop.f32.mrb[59].mxu1  ;;  %v5617_v32 = vpop.f32.mrb[99].mxu0  ;;  %v8431_v48 = vld [vmem:[%s8806_s9 + $0x18] ss:$12 sps:$4 sm:$0xff]  }
 0x97c   :  { %v4894_v7 = vmul.f32 -1.442695, %v3617_v4  ;;  %v8421_v4 = vld [vmem:[%s8806_s9 + $0x1c] ss:$12 sps:$4 sm:$0xff]   ;;  %v8437_v22 = vld [vmem:[%s8806_s9 + $0x20] ss:$12 sps:$4 sm:$0xff]  }
 0x97d   :  { %6158 = vpow2.f32 %v4893_v38  ;;  %v8443_v38 = vld [vmem:[%s8806_s9 + $0x34] ss:$12 sps:$4 sm:$0xff]   ;;  %v8450_v26 = vld [vmem:[%s8806_s9 + $0x30] ss:$12 sps:$4 sm:$0xff]   ;;  %v8456_v32 = vld [vmem:[%s8806_s9 + $0x38] ss:$12 sps:$4 sm:$0xff]  }
 0x97e   :  { %6160 = vpow2.f32 %v4894_v7  ;;  %v8469_v7 = vld [vmem:[%s8806_s9 + $0x48] ss:$12 sps:$4 sm:$0xff]  }
 0x983   :  { %v6157_v18 = vpop.eup %6156 }
 0x984   :  { %v3568_v29 = vmul.f32 %v6157_v18, %v3567_v39  ;;  %v8475_v39 = vld [vmem:[%s8806_s9 + $0x50] ss:$12 sps:$4 sm:$0xff]  }
 0x985   :  { %v8481_v18 = vld [vmem:[%s8806_s9 + $0x64] ss:$12 sps:$4 sm:$0xff]  }
 0x986   :  { %v8388_v57 = vadd.f32 %v3569_v35, %v3568_v29  ;;  %v8488_v29 = vld [vmem:[%s8806_s9 + $0x60] ss:$12 sps:$4 sm:$0xff]   ;;  %v8494_v35 = vld [vmem:[%s8806_s9 + $0x68] ss:$12 sps:$4 sm:$0xff]  }
 0x987   :  { %v6159_v62 = vpop.eup %6158 }
 0x988   :  { %v3624_v15 = vadd.f32 1.0, %v6159_v62  ;;  %v6161_v34 = vpop.eup %6160  ;;  %v8500_v62 = vld [vmem:[%s8806_s9 + $0x7c] ss:$12 sps:$4 sm:$0xff]  }
 0x989   :  { %v3625_v10 = vadd.f32 1.0, %v6161_v34  ;;  %v8513_v34 = vld [vmem:[%s8806_s9 + $0x80] ss:$12 sps:$4 sm:$0xff]  }
 0x98a   :  { %6162 = vrcp.f32 %v3624_v15  ;;  %v8507_v15 = vld [vmem:[%s8806_s9 + $0x78] ss:$12 sps:$4 sm:$0xff]  }
 0x98b   :  { %6164 = vrcp.f32 %v3625_v10  ;;  %v8519_v10 = vld [vmem:[%s8806_s9 + $0x94] ss:$12 sps:$4 sm:$0xff]  }
 0x994   :  { %v6163_v11 = vpop.eup %6162 }
 0x995   :  { %v3670_v21 = vmul.f32 %v6163_v11, %v3665_v47  ;;  %v6165_v17 = vpop.eup %6164  ;;  %v8526_v47 = vld [vmem:[%s8806_s9 + $0x90] ss:$12 sps:$4 sm:$0xff]   ;;  %v8532_v11 = vld [vmem:[%s8806_s9 + $0x98] ss:$12 sps:$4 sm:$0xff]  }
 0x996   :  { %v3673_v44 = vsub.f32 1.0, %v6165_v17  ;;  %v3675_v40 = vmul.f32 %v6165_v17, %v8198_v61  ;;  %v8415_v61 = vld [vmem:[%s8806_s9 + $0x8] ss:$12 sps:$4 sm:$0xff]   ;;  %v3919_v17 = vpack.c.bf16 %v8388_v57, %v8388_v57 }
 0x997   :  { %v3671_v14 = vadd.f32 %v3670_v21, %v9057_v19  ;;  %v8538_v21 = vld [vmem:[%s8806_s9 + $0xac] ss:$12 sps:$4 sm:$0xff]   ;;  %v8545_v19 = vld [vmem:[%s8806_s9 + $0xa8] ss:$12 sps:$4 sm:$0xff]  }
 0x999   :  { %6166 = vtanh.f32 %v3671_v14  ;;  %v8551_v14 = vld [vmem:[%s8806_s9 + $0xb0] ss:$12 sps:$4 sm:$0xff]  }
 0x9a3   :  { %v6167_v5 = vpop.eup %6166 }
 0x9a4   :  { %v3674_v63 = vmul.f32 %v6167_v5, %v3673_v44  ;;  %v6308_v44 = vld [vmem:[%s8802_s5 + $0x4] ss:$12 sps:$4 sm:$0xff]   ;;  %v6309_v5 = vld [vmem:[%s8802_s5] ss:$12 sps:$4 sm:$0xff]  }
 0x9a6   :  { %v8398_v54 = vadd.f32 %v3675_v40, %v3674_v63  ;;  %v6310_v63 = vld [vmem:[%s8802_s5 + $0x1c] ss:$12 sps:$4 sm:$0xff]   ;;  %v6311_v40 = vld [vmem:[%s8802_s5 + $0x18] ss:$12 sps:$4 sm:$0xff]  }
 0x9a8   :  { %v8402_v46 = vpack.c.bf16 %v8398_v54, %v8398_v54 }
 0x9aa   :  { %3871 = vmatmul.mubr.bf16.vlgmr.msra.gmra.mrb[60].mxu1 %v8402_v46  ;;  %5635 = vmatmul.mubr.bf16.vlgmr.msra.gmra.mrb[100].mxu0 %v8402_v46 }
 0x9ab   :  { %3921 = vmatpush1.bf16.msra.mxu1 %v8409_v56  ;;  %5639 = vmatpush3.bf16.msra.mxu0 %v8415_v61 }
 0x9ac   :  { %3922 = vmatprep.subr.bf16.mxu1 %v8421_v4  ;;  %5640 = vmatprep.subr.bf16.mxu0 %v8926_v60 }
 0x9ad   :  { %3952 = vmatprep.mubr.bf16.mxu1 %v8927_v16  ;;  %5654 = vmatprep.mubr.msk.bf16.mxu0 %vm6327_vm1, %v8926_v60 }
 0x9af   :  { %3923 = vmatpush1.bf16.msra.mxu1 %v8431_v48  ;;  %5641 = vmatpush3.bf16.msra.mxu0 %v8437_v22 }
 0x9b0   :  { %3924 = vmatprep.subr.bf16.mxu1 %v8443_v38  ;;  %5642 = vmatprep.subr.bf16.mxu0 %v8926_v60 }
 0x9b3   :  { %3925 = vmatpush1.bf16.msra.mxu1 %v8450_v26  ;;  %5643 = vmatpush3.bf16.msra.mxu0 %v8456_v32 }
 0x9b4   :  { %3926 = vmatprep.subr.bf16.mxu1 %v8462_v52  ;;  %5644 = vmatprep.subr.bf16.mxu0 %v8926_v60 }
 0x9b7   :  { %3927 = vmatpush1.bf16.msra.mxu1 %v8469_v7  ;;  %5645 = vmatpush3.bf16.msra.mxu0 %v8475_v39 }
 0x9b8   :  { %3928 = vmatprep.subr.bf16.mxu1 %v8481_v18  ;;  %5646 = vmatprep.subr.bf16.mxu0 %v8926_v60 }
 0x9bb   :  { %3929 = vmatpush1.bf16.msra.mxu1 %v8488_v29  ;;  %5647 = vmatpush3.bf16.msra.mxu0 %v8494_v35 }
 0x9bc   :  { %3930 = vmatprep.subr.bf16.mxu1 %v8500_v62  ;;  %5648 = vmatprep.subr.bf16.mxu0 %v8926_v60 }
 0x9bf   :  { %3931 = vmatpush1.bf16.msra.mxu1 %v8507_v15  ;;  %5649 = vmatpush3.bf16.msra.mxu0 %v8513_v34 }
 0x9c0   :  { %3932 = vmatprep.subr.bf16.mxu1 %v8519_v10  ;;  %5650 = vmatprep.subr.bf16.mxu0 %v8926_v60 }
 0x9c3   :  { %3933 = vmatpush1.bf16.msra.mxu1 %v8526_v47  ;;  %5651 = vmatpush3.bf16.msra.mxu0 %v8532_v11 }
 0x9c4   :  { %3934 = vmatprep.subr.bf16.mxu1 %v8538_v21  ;;  %5652 = vmatprep.subr.bf16.mxu0 %v8926_v60 }
 0x9c7   :  { %3935 = vmatpush1.bf16.msra.mxu1 %v8545_v19  ;;  %5653 = vmatpush3.bf16.msra.mxu0 %v8551_v14 }
 0x9c8   :  { %4026 = vmatprep.subr.bf16.mxu1 %v6308_v44  ;;  %5658 = vmatprep.subr.bf16.mxu0 %v8926_v60  ;;  %v6314_v44 = vld [vmem:[%s8802_s5 + $0x4c] ss:$12 sps:$4 sm:$0xff]  }
 0x9ca   :  { %3953 = vmatmul.mubr.bf16.vlgmr.msra.gmra.mrb[60].mxu1 %v3919_v17  ;;  %5655 = vmatmul.mubr.bf16.vlgmr.msra.gmra.mrb[104].mxu0 %v3919_v17  ;;  %v6313_v17 = vld [vmem:[%s8802_s5 + $0x30] ss:$12 sps:$4 sm:$0xff]  }
 0x9cb   :  { %4027 = vmatpush1.bf16.msra.mxu1 %v6309_v5  ;;  %5659 = vmatpush3.bf16.msra.mxu0 %v8027_v55  ;;  %v6312_v55 = vld [vmem:[%s8802_s5 + $0x34] ss:$12 sps:$4 sm:$0xff]   ;;  %v6316_v5 = vld [vmem:[%s8802_s5 + $0x64] ss:$12 sps:$4 sm:$0xff]  }
 0x9cc   :  { %4028 = vmatprep.subr.bf16.mxu1 %v6310_v63  ;;  %5660 = vmatprep.subr.bf16.mxu0 %v8926_v60  ;;  %v6318_v63 = vld [vmem:[%s8802_s5 + $0x7c] ss:$12 sps:$4 sm:$0xff]  }
 0x9cd   :  { %4058 = vmatprep.mubr.bf16.mxu1 %v8927_v16  ;;  %5674 = vmatprep.mubr.msk.bf16.mxu0 %vm6327_vm1, %v8926_v60 }
 0x9cf   :  { %4029 = vmatpush1.bf16.msra.mxu1 %v6311_v40  ;;  %5661 = vmatpush3.bf16.msra.mxu0 %v8039_v53  ;;  %v6315_v53 = vld [vmem:[%s8802_s5 + $0x48] ss:$12 sps:$4 sm:$0xff]  }
 0x9d0   :  { %4030 = vmatprep.subr.bf16.mxu1 %v6312_v55  ;;  %5662 = vmatprep.subr.bf16.mxu0 %v8926_v60  ;;  %v6320_v40 = vld [vmem:[%s8802_s5 + $0x94] ss:$12 sps:$4 sm:$0xff]   ;;  %v6322_v55 = vld [vmem:[%s8802_s5 + $0xac] ss:$12 sps:$4 sm:$0xff]  }
 0x9d3   :  { %4031 = vmatpush1.bf16.msra.mxu1 %v6313_v17  ;;  %5663 = vmatpush3.bf16.msra.mxu0 %v8048_v27  ;;  %v6317_v27 = vld [vmem:[%s8802_s5 + $0x60] ss:$12 sps:$4 sm:$0xff]  }
 0x9d4   :  { %4032 = vmatprep.subr.bf16.mxu1 %v6314_v44  ;;  %5664 = vmatprep.subr.bf16.mxu0 %v8926_v60 }
 0x9d7   :  { %4033 = vmatpush1.bf16.msra.mxu1 %v6315_v53  ;;  %5665 = vmatpush3.bf16.msra.mxu0 %v8057_v50  ;;  %v6319_v50 = vld [vmem:[%s8802_s5 + $0x78] ss:$12 sps:$4 sm:$0xff]  }
 0x9d8   :  { %4034 = vmatprep.subr.bf16.mxu1 %v6316_v5  ;;  %5666 = vmatprep.subr.bf16.mxu0 %v8926_v60 }
 0x9db   :  { %4035 = vmatpush1.bf16.msra.mxu1 %v6317_v27  ;;  %5667 = vmatpush3.bf16.msra.mxu0 %v9035_v1  ;;  %v6321_v1 = vld [vmem:[%s8802_s5 + $0x90] ss:$12 sps:$4 sm:$0xff]  }
 0x9dc   :  { %4036 = vmatprep.subr.bf16.mxu1 %v6318_v63  ;;  %5668 = vmatprep.subr.bf16.mxu0 %v8926_v60 }
 0x9df   :  { %4037 = vmatpush1.bf16.msra.mxu1 %v6319_v50  ;;  %5669 = vmatpush3.bf16.msra.mxu0 %v9038_v43  ;;  %v6323_v43 = vld [vmem:[%s8802_s5 + $0xa8] ss:$12 sps:$4 sm:$0xff]  }
 0x9e0   :  { %4038 = vmatprep.subr.bf16.mxu1 %v6320_v40  ;;  %5670 = vmatprep.subr.bf16.mxu0 %v8926_v60 }
 0x9e3   :  { %4039 = vmatpush1.bf16.msra.mxu1 %v6321_v1  ;;  %5671 = vmatpush3.bf16.msra.mxu0 %v9041_v36  ;;  %v6022_v36 = vld [vmem:[%s8805_s8 + $0x8] ss:$12 sps:$4 sm:$0xff]   ;;  %v8683_v1 = vld [vmem:[%s8810_s11] ss:$0 sm:$0xff] }
 0x9e4   :  { %4040 = vmatprep.subr.bf16.mxu1 %v6322_v55  ;;  %5672 = vmatprep.subr.bf16.mxu0 %v8926_v60 }
 0x9e7   :  { %4041 = vmatpush1.bf16.msra.mxu1 %v6323_v43  ;;  %5673 = vmatpush3.bf16.msra.mxu0 %v9044_v28  ;;  %v6023_v28 = vld [vmem:[%s8805_s8 + $0x20] ss:$12 sps:$4 sm:$0xff]  }
 0x9e8   :  { %4290 = vmatprep.subr.bf16.mxu1 %v9045_v30  ;;  %5678 = vmatprep.subr.bf16.mxu0 %v8926_v60  ;;  %v6024_v30 = vld [vmem:[%s8805_s8 + $0x38] ss:$12 sps:$4 sm:$0xff]  }
 0x9ea   :  { %4059 = vmatmul.mubr.bf16.vlgmr.msra.gmra.mrb[64].mxu1 %v8402_v46  ;;  %5675 = vmatmul.mubr.bf16.vlgmr.msra.gmra.mrb[108].mxu0 %v8402_v46 }
 0x9eb   :  { %4291 = vmatpush1.bf16.msra.mxu1 %v9046_v6  ;;  %4322 = vmatprep.mubr.bf16.mxu1 %v8927_v16  ;;  %v6025_v6 = vld [vmem:[%s8805_s8 + $0x50] ss:$12 sps:$4 sm:$0xff]  }
 0x9ec   :  { %4292 = vmatprep.subr.bf16.mxu1 %v9047_v37  ;;  %5694 = vmatprep.mubr.msk.bf16.mxu0 %vm6327_vm1, %v8926_v60  ;;  %v6026_v37 = vld [vmem:[%s8805_s8 + $0x68] ss:$12 sps:$4 sm:$0xff]  }
 0x9ed   :  { %5679 = vmatpush3.bf16.msra.mxu0 %v6022_v36 }
 0x9ee   :  { %5680 = vmatprep.subr.bf16.mxu0 %v8926_v60 }
 0x9ef   :  { %4293 = vmatpush1.bf16.msra.mxu1 %v9048_v8  ;;  %v6027_v8 = vld [vmem:[%s8805_s8 + $0x80] ss:$12 sps:$4 sm:$0xff]  }
 0x9f0   :  { %4294 = vmatprep.subr.bf16.mxu1 %v9049_v45  ;;  %v6028_v45 = vld [vmem:[%s8805_s8 + $0x98] ss:$12 sps:$4 sm:$0xff]  }
 0x9f1   :  { %5681 = vmatpush3.bf16.msra.mxu0 %v6023_v28 }
 0x9f2   :  { %5682 = vmatprep.subr.bf16.mxu0 %v8926_v60 }
 0x9f3   :  { %4295 = vmatpush1.bf16.msra.mxu1 %v9050_v42  ;;  %v6029_v42 = vld [vmem:[%s8805_s8 + $0xb0] ss:$12 sps:$4 sm:$0xff]  }
 0x9f4   :  { %4296 = vmatprep.subr.bf16.mxu1 %v8302_v23 }
 0x9f5   :  { %5683 = vmatpush3.bf16.msra.mxu0 %v6024_v30 }
 0x9f6   :  { %5684 = vmatprep.subr.bf16.mxu0 %v8926_v60 }
 0x9f7   :  { %4297 = vmatpush1.bf16.msra.mxu1 %v8308_v2 }
 0x9f8   :  { %4298 = vmatprep.subr.bf16.mxu1 %v8318_v0 }
 0x9f9   :  { %5685 = vmatpush3.bf16.msra.mxu0 %v6025_v6 }
 0x9fa   :  { %5686 = vmatprep.subr.bf16.mxu0 %v8926_v60 }
 0x9fb   :  { %4299 = vmatpush1.bf16.msra.mxu1 %v8324_v49 }
 0x9fc   :  { %4300 = vmatprep.subr.bf16.mxu1 %v8333_v51 }
 0x9fd   :  { %5687 = vmatpush3.bf16.msra.mxu0 %v6026_v37 }
 0x9fe   :  { %5688 = vmatprep.subr.bf16.mxu0 %v8926_v60 }
 0x9ff   :  { %4301 = vmatpush1.bf16.msra.mxu1 %v8339_v59 }
 0xa00   :  { %4302 = vmatprep.subr.bf16.mxu1 %v8349_v58 }
 0xa01   :  { %5689 = vmatpush3.bf16.msra.mxu0 %v6027_v8  ;;  %v9058_v8 = vld [vmem:[#allocation14_spill] sm:$0xff] }
 0xa02   :  { %5690 = vmatprep.subr.bf16.mxu0 %v8926_v60 }
 0xa03   :  { %4303 = vmatpush1.bf16.msra.mxu1 %v8355_v41 }
 0xa04   :  { %4304 = vmatprep.subr.bf16.mxu1 %v8365_v25 }
 0xa05   :  { %5691 = vmatpush3.bf16.msra.mxu0 %v6028_v45 }
 0xa06   :  { %5692 = vmatprep.subr.bf16.mxu0 %v8926_v60 }
 0xa07   :  { %4305 = vmatpush1.bf16.msra.mxu1 %v8371_v9 }
 0xa08   :  { %4372 = vmatprep.subr.bf16.mxu1 %v9051_v12 }
 0xa09   :  { %5693 = vmatpush3.bf16.msra.mxu0 %v6029_v42 }
 0xa0a   :  { %5698 = vmatprep.subr.bf16.mxu0 %v8926_v60 }
 0xa7d   :  { %v3913_v23 = vpop.f32.mrb[100].mxu0 }
 0xa7e   :  { %v5636_v2 = vpop.f32.mrb[101].mxu0  ;;  %v3914_v36 = vadd.f32 %v3913_v23, %v7179_v13 }
 0xa7f   :  { %v3916_v0 = vpop.f32.mrb[102].mxu0 }
 0xa80   :  { %v5637_v49 = vpop.f32.mrb[103].mxu0  ;;  %v9059_v0 = vld [vmem:[#allocation15_spill] sm:$0xff] }
 0xa9d   :  { %v3954_v51 = vpop.f32.mrb[60].mxu1  ;;  %v4009_v59 = vpop.f32.mrb[104].mxu0 }
 0xa9e   :  { %v5754_v58 = vadd.f32 %v3954_v51, %v9052_v31  ;;  %v3956_v41 = vpop.f32.mrb[61].mxu1  ;;  %v5656_v25 = vpop.f32.mrb[105].mxu0  ;;  %v4010_v55 = vadd.f32 %v8683_v1, %v4009_v59 }
 0xa9f   :  { %v3958_v9 = vpop.f32.mrb[62].mxu1  ;;  %v4012_v12 = vpop.f32.mrb[106].mxu0  ;;  %v5755_v53 = vadd.f32 %v3956_v41, %v9053_v33 }
 0xaa0   :  { %v4919_v46 = vmul.f32 -1.442695, %v5754_v58  ;;  %v3959_v17 = vpop.f32.mrb[63].mxu1  ;;  %v5657_v44 = vpop.f32.mrb[107].mxu0 }
 0xaa1   :  { %v4920_v5 = vmul.f32 -1.442695, %v5755_v53 }
 0xaa2   :  { %6168 = vpow2.f32 %v4919_v46 }
 0xaa3   :  { %6170 = vpow2.f32 %v4920_v5 }
 0xaac   :  { %v6169_v27 = vpop.eup %6168 }
 0xaad   :  { %v3969_v63 = vadd.f32 1.0, %v6169_v27  ;;  %v6171_v50 = vpop.eup %6170 }
 0xaae   :  { %v3970_v40 = vadd.f32 1.0, %v6171_v50 }
 0xaaf   :  { %6172 = vrcp.f32 %v3969_v63 }
 0xab0   :  { %6174 = vrcp.f32 %v3970_v40 }
 0xab9   :  { %v6173_v43 = vpop.eup %6172 }
 0xaba   :  { %v4015_v28 = vmul.f32 %v6173_v43, %v4010_v55  ;;  %v6175_v9 = vpop.eup %6174 }
 0xabb   :  { %v4018_v12 = vsub.f32 1.0, %v6175_v9  ;;  %v4020_v44 = vmul.f32 %v6175_v9, %v8388_v57 }
 0xabc   :  { %v4016_v30 = vadd.f32 %v4015_v28, %v3914_v36  ;;  %v9060_v36 = vld [vmem:[#allocation20_spill] sm:$0xff] }
 0xabd   :  { %v4060_v6 = vpop.f32.mrb[64].mxu1  ;;  %v4115_v37 = vpop.f32.mrb[108].mxu0 }
 0xabe   :  { %6176 = vtanh.f32 %v4016_v30  ;;  %v4067_v45 = vadd.f32 %v4060_v6, %v9058_v8  ;;  %v4062_v42 = vpop.f32.mrb[65].mxu1  ;;  %v5676_v2 = vpop.f32.mrb[109].mxu0  ;;  %v4116_v40 = vadd.f32 %v8393_v24, %v4115_v37 }
 0xabf   :  { %v4068_v49 = vadd.f32 %v4062_v42, %v9059_v0  ;;  %v4064_v51 = vpop.f32.mrb[66].mxu1  ;;  %v4118_v58 = vpop.f32.mrb[110].mxu0 }
 0xac0   :  { %v4921_v41 = vmul.f32 -1.442695, %v4067_v45  ;;  %v4065_v25 = vpop.f32.mrb[67].mxu1  ;;  %v5677_v59 = vpop.f32.mrb[111].mxu0 }
 0xac1   :  { %v4922_v23 = vmul.f32 -1.442695, %v4068_v49 }
 0xac2   :  { %6178 = vpow2.f32 %v4921_v41 }
 0xac3   :  { %6180 = vpow2.f32 %v4922_v23  ;;  %v4950_v23 = vld [vmem:[%s8813_s13] ss:$0 sm:$0xff] }
 0xac8   :  { %v6177_v46 = vpop.eup %6176 }
 0xac9   :  { %v4019_v17 = vmul.f32 %v6177_v46, %v4018_v12 }
 0xacb   :  { %v8690_v53 = vadd.f32 %v4020_v44, %v4019_v17 }
 0xacc   :  { %v6179_v5 = vpop.eup %6178 }
 0xacd   :  { %v4075_v27 = vadd.f32 1.0, %v6179_v5  ;;  %v6181_v63 = vpop.eup %6180  ;;  %v4371_v24 = vpack.c.bf16 %v8690_v53, %v8690_v53 }
 0xace   :  { %v4076_v50 = vadd.f32 1.0, %v6181_v63 }
 0xacf   :  { %6182 = vrcp.f32 %v4075_v27 }
 0xad0   :  { %6184 = vrcp.f32 %v4076_v50 }
 0xad9   :  { %v6183_v55 = vpop.eup %6182 }
 0xada   :  { %v4121_v43 = vmul.f32 %v6183_v55, %v4116_v40  ;;  %v6185_v30 = vpop.eup %6184 }
 0xadb   :  { %v4124_v6 = vsub.f32 1.0, %v6185_v30  ;;  %v4126_v42 = vmul.f32 %v6185_v30, %v8398_v54  ;;  %v6031_v54 = vld [vmem:[%s8811_s12 + $0x8] sm:$0xff]  }
 0xadc   :  { %v4122_v28 = vadd.f32 %v4121_v43, %v9060_v36 }
 0xade   :  { %6186 = vtanh.f32 %v4122_v28 }
 0xae8   :  { %v6187_v8 = vpop.eup %6186 }
 0xae9   :  { %v4125_v45 = vmul.f32 %v6187_v8, %v4124_v6 }
 0xaeb   :  { %v4127_v2 = vadd.f32 %v4126_v42, %v4125_v45 }
 0xaed   :  { %v4129_v0 = vpack.c.bf16 %v4127_v2, %v4127_v2  ;;  %4128 = vst [vmem:[%s8812_s15] sm:$0xff] %v4127_v2 }
 0xaef   :  { %4323 = vmatmul.mubr.bf16.vlgmr.msra.gmra.mrb[68].mxu1 %v4129_v0  ;;  %5695 = vmatmul.mubr.bf16.vlgmr.msra.gmra.mrb[112].mxu0 %v4129_v0 }
 0xaf0   :  { %4373 = vmatpush1.bf16.msra.mxu1 %v8409_v56  ;;  %5699 = vmatpush3.bf16.msra.mxu0 %v8415_v61  ;;  %v9061_v56 = vld [vmem:[#allocation32_spill] sm:$0xff] }
 0xaf1   :  { %4374 = vmatprep.subr.bf16.mxu1 %v8421_v4  ;;  %5700 = vmatprep.subr.bf16.mxu0 %v8926_v60  ;;  %v9062_v61 = vld [vmem:[#allocation4_spill] sm:$0xff] }
 0xaf2   :  { %4404 = vmatprep.mubr.bf16.mxu1 %v8927_v16  ;;  %5714 = vmatprep.mubr.msk.bf16.mxu0 %vm6327_vm1, %v8926_v60  ;;  %v6030_v16 = vld [vmem:[%s8811_s12] sm:$0xff]   ;;  %v4485_v4 = vpack.c.bf16 %v9062_v61, %v9061_v56 }
 0xaf4   :  { %4375 = vmatpush1.bf16.msra.mxu1 %v8431_v48  ;;  %5701 = vmatpush3.bf16.msra.mxu0 %v8437_v22  ;;  %v6033_v48 = vld [vmem:[%s8811_s12 + $0x18] sm:$0xff]   ;;  %v6034_v22 = vld [vmem:[%s8811_s12 + $0x20] sm:$0xff]  }
 0xaf5   :  { %4376 = vmatprep.subr.bf16.mxu1 %v8443_v38  ;;  %5702 = vmatprep.subr.bf16.mxu0 %v8926_v60  ;;  %v6035_v38 = vld [vmem:[%s8811_s12 + $0x28] sm:$0xff]  }
 0xaf8   :  { %4377 = vmatpush1.bf16.msra.mxu1 %v8450_v26  ;;  %5703 = vmatpush3.bf16.msra.mxu0 %v8456_v32  ;;  %v6036_v26 = vld [vmem:[%s8811_s12 + $0x30] sm:$0xff]   ;;  %v6037_v32 = vld [vmem:[%s8811_s12 + $0x38] sm:$0xff]  }
 0xaf9   :  { %4378 = vmatprep.subr.bf16.mxu1 %v8462_v52  ;;  %5704 = vmatprep.subr.bf16.mxu0 %v8926_v60  ;;  %v9063_v52 = vld [vmem:[#allocation27_spill] sm:$0xff] }
 0xafc   :  { %4379 = vmatpush1.bf16.msra.mxu1 %v8469_v7  ;;  %5705 = vmatpush3.bf16.msra.mxu0 %v8475_v39  ;;  %v4486_v7 = vpack.c.bf16 %v7973_v20, %v9063_v52  ;;  %v4487_v39 = vpack.c.bf16 %v8388_v57, %v8193_v3 }
 0xafd   :  { %4380 = vmatprep.subr.bf16.mxu1 %v8481_v18  ;;  %5706 = vmatprep.subr.bf16.mxu0 %v8926_v60 }
 0xb00   :  { %4381 = vmatpush1.bf16.msra.mxu1 %v8488_v29  ;;  %5707 = vmatpush3.bf16.msra.mxu0 %v8494_v35 }
 0xb01   :  { %4382 = vmatprep.subr.bf16.mxu1 %v8500_v62  ;;  %5708 = vmatprep.subr.bf16.mxu0 %v8926_v60 }
 0xb04   :  { %4383 = vmatpush1.bf16.msra.mxu1 %v8507_v15  ;;  %5709 = vmatpush3.bf16.msra.mxu0 %v8513_v34 }
 0xb05   :  { %4384 = vmatprep.subr.bf16.mxu1 %v8519_v10  ;;  %5710 = vmatprep.subr.bf16.mxu0 %v8926_v60 }
 0xb08   :  { %4385 = vmatpush1.bf16.msra.mxu1 %v8526_v47  ;;  %5711 = vmatpush3.bf16.msra.mxu0 %v8532_v11 }
 0xb09   :  { %4386 = vmatprep.subr.bf16.mxu1 %v8538_v21  ;;  %5712 = vmatprep.subr.bf16.mxu0 %v8926_v60  ;;  %v6032_v60 = vld [vmem:[%s8811_s12 + $0x10] sm:$0xff]  }
 0xb0c   :  { %4387 = vmatpush1.bf16.msra.mxu1 %v8545_v19  ;;  %5713 = vmatpush3.bf16.msra.mxu0 %v8551_v14 }
 0xb0d   :  { %5718 = vmatprep.subr.bf16.mxu1 %v6030_v16 }
 0xb0f   :  { %4405 = vmatmul.mubr.bf16.vlgmr.msra.gmra.mrb[68].mxu1 %v4371_v24  ;;  %5715 = vmatmul.mubr.bf16.vlgmr.msra.gmra.mrb[116].mxu0 %v4371_v24 }
 0xb10   :  { %5719 = vmatpush3.bf16.msra.mxu1 %v6030_v16  ;;  %5734 = vmatprep.mubr.bf16.mxu1 %v4485_v4 }
 0xb11   :  { %5720 = vmatprep.subr.bf16.mxu1 %v6031_v54 }
 0xb14   :  { %5721 = vmatpush3.bf16.msra.mxu1 %v6031_v54 }
 0xb15   :  { %5722 = vmatprep.subr.bf16.mxu1 %v6032_v60 }
 0xb18   :  { %5723 = vmatpush3.bf16.msra.mxu1 %v6032_v60 }
 0xb19   :  { %5724 = vmatprep.subr.bf16.mxu1 %v6033_v48 }
 0xb1c   :  { %5725 = vmatpush3.bf16.msra.mxu1 %v6033_v48 }
 0xb1d   :  { %5726 = vmatprep.subr.bf16.mxu1 %v6034_v22 }
 0xb20   :  { %5727 = vmatpush3.bf16.msra.mxu1 %v6034_v22 }
 0xb21   :  { %5728 = vmatprep.subr.bf16.mxu1 %v6035_v38 }
 0xb24   :  { %5729 = vmatpush3.bf16.msra.mxu1 %v6035_v38 }
 0xb25   :  { %5730 = vmatprep.subr.bf16.mxu1 %v6036_v26 }
 0xb28   :  { %5731 = vmatpush3.bf16.msra.mxu1 %v6036_v26 }
 0xb29   :  { %5732 = vmatprep.subr.bf16.mxu1 %v6037_v32 }
 0xb2c   :  { %5733 = vmatpush3.bf16.msra.mxu1 %v6037_v32 }
 0xb2f   :  { %5735 = vmatmul.mubr.bf16.vlgmr.msra.gmra.mrb[72].mxu1 %v4486_v7 }
 0xb30   :  { %5738 = vmatprep.mubr.bf16.mxu1 %v4487_v39 }
 0xbc2   :  { %v4365_v18 = vpop.f32.mrb[112].mxu0 }
 0xbc3   :  { %v5696_v29 = vpop.f32.mrb[113].mxu0  ;;  %v4366_v59 = vadd.f32 %v4365_v18, %v7179_v13 }
 0xbc4   :  { %v4368_v35 = vpop.f32.mrb[114].mxu0 }
 0xbc5   :  { %v5697_v62 = vpop.f32.mrb[115].mxu0 }
 0xbe2   :  { %v4406_v15 = vpop.f32.mrb[68].mxu1  ;;  %v4461_v34 = vpop.f32.mrb[116].mxu0 }
 0xbe3   :  { %v5756_v10 = vadd.f32 %v4406_v15, %v9052_v31  ;;  %v4408_v47 = vpop.f32.mrb[69].mxu1  ;;  %v5716_v11 = vpop.f32.mrb[117].mxu0  ;;  %v4462_v25 = vadd.f32 %v8683_v1, %v4461_v34 }
 0xbe4   :  { %v4410_v21 = vpop.f32.mrb[70].mxu1  ;;  %v4464_v19 = vpop.f32.mrb[118].mxu0  ;;  %v5757_v49 = vadd.f32 %v4408_v47, %v9053_v33 }
 0xbe5   :  { %v4947_v14 = vmul.f32 -1.442695, %v5756_v10  ;;  %v4411_v37 = vpop.f32.mrb[71].mxu1  ;;  %v5717_v20 = vpop.f32.mrb[119].mxu0 }
 0xbe6   :  { %v4948_v3 = vmul.f32 -1.442695, %v5757_v49 }
 0xbe7   :  { %6188 = vpow2.f32 %v4947_v14 }
 0xbe8   :  { %6190 = vpow2.f32 %v4948_v3 }
 0xbf1   :  { %v6189_v57 = vpop.eup %6188 }
 0xbf2   :  { %v4421_v51 = vadd.f32 1.0, %v6189_v57  ;;  %v6191_v58 = vpop.eup %6190 }
 0xbf3   :  { %v4422_v41 = vadd.f32 1.0, %v6191_v58 }
 0xbf4   :  { %6192 = vrcp.f32 %v4421_v51 }
 0xbf5   :  { %6194 = vrcp.f32 %v4422_v41 }
 0xbfe   :  { %v6193_v31 = vpop.eup %6192 }
 0xbff   :  { %v4467_v9 = vmul.f32 %v6193_v31, %v4462_v25  ;;  %v6195_v63 = vpop.eup %6194 }
 0xc00   :  { %v4470_v50 = vsub.f32 1.0, %v6195_v63  ;;  %v4472_v43 = vmul.f32 %v6195_v63, %v8690_v53 }
 0xc01   :  { %v4468_v33 = vadd.f32 %v4467_v9, %v4366_v59 }
 0xc02   :  { %v5736_v12 = vpop.f32.mrb[72].mxu1 }
 0xc03   :  { %6196 = vtanh.f32 %v4468_v33  ;;  %v4603_v46 = vadd.f32 %v5736_v12, %v4950_v23  ;;  %v4594_v17 = vpop.f32.mrb[73].mxu1 }
 0xc04   :  { %v4595_v44 = vadd.f32 %v4950_v23, %v4594_v17  ;;  %v5737_v5 = vpop.f32.mrb[74].mxu1 }
 0xc05   :  { %4627 = vst [vmem:[%s8814_s14 + $0x10] sm:$0xff] %v4603_v46  ;;  %v4606_v1 = vadd.f32 %v5737_v5, %v4950_v23  ;;  %v4597_v27 = vpop.f32.mrb[75].mxu1 }
 0xc06   :  { %4625 = vst [vmem:[%s8814_s14] sm:$0xff] %v4595_v44  ;;  %v4598_v13 = vadd.f32 %v4950_v23, %v4597_v27 }
 0xc07   :  { %4628 = vst [vmem:[%s8814_s14 + $0x18] sm:$0xff] %v4606_v1 }
 0xc08   :  { %4626 = vst [vmem:[%s8814_s14 + $0x8] sm:$0xff] %v4598_v13 }
 0xc0d   :  { %v6197_v40 = vpop.eup %6196 }
 0xc0e   :  { %v4471_v55 = vmul.f32 %v6197_v40, %v4470_v50 }
 0xc10   :  { %v4473_v36 = vadd.f32 %v4472_v43, %v4471_v55 }
 0xc12   :  { %4949 = vst [vmem:[%s8812_s15 + $0x8] sm:$0xff] %v4473_v36  ;;  %v4488_v28 = vpack.c.bf16 %v4473_v36, %v8690_v53 }
 0xc14   :  { %5739 = vmatmul.mubr.bf16.gmra.mrb[76].mxu1 %v4488_v28 }
 0xce7   :  { %v5740_v30 = vpop.f32.mrb[76].mxu1 }
 0xce8   :  { %v4619_v6 = vadd.f32 %v5740_v30, %v4950_v23  ;;  %v4610_v8 = vpop.f32.mrb[77].mxu1 }
 0xce9   :  { %v4611_v45 = vadd.f32 %v4950_v23, %v4610_v8  ;;  %v5741_v42 = vpop.f32.mrb[78].mxu1 }
 0xcea   :  { %4631 = vst [vmem:[%s8814_s14 + $0x30] sm:$0xff] %v4619_v6  ;;  %v4622_v2 = vadd.f32 %v5741_v42, %v4950_v23  ;;  %v4613_v0 = vpop.f32.mrb[79].mxu1 }
 0xceb   :  { %4629 = vst [vmem:[%s8814_s14 + $0x20] sm:$0xff] %v4611_v45  ;;  %v4614_v16 = vadd.f32 %v4950_v23, %v4613_v0 }
 0xcec   :  { %4632 = vst [vmem:[%s8814_s14 + $0x38] sm:$0xff] %v4622_v2 }
 0xced   :  { %4630 = vst [vmem:[%s8814_s14 + $0x28] sm:$0xff] %v4614_v16 }

</bundles_post_ra>
